<compile_context>
chip_gen: v7x
topology: tpu7x:2x2x1
jax: 0.10.0
libtpu: 0.0.40
codegen_flags: <defaults>
</compile_context>

<pallas_src>
import math

import jax
import jax.numpy as jnp
from jax.experimental import pallas as pl
from jax.experimental.pallas import tpu as pltpu


def _pe_kernel(sel_ref, freq_ref, phase_ref, scale_ref, v_ref, out_ref):
    """Lane-dense positional encoding over one block of grouped rows.

    sel_ref   : (in_L, L) bf16 0/1 replication matrix (channel -> its 2m lanes)
    freq_ref  : (1, L)    f32  2*pi*bvals tiled per output lane
    phase_ref : (1, L)    f32  pi/2 on cos lanes, 0 on sin lanes
    scale_ref : (1, L)    f32  avals / ||avals|| tiled per output lane
    v_ref     : (BR, in_L) f32 block of grouped input rows
    out_ref   : (BR, L)        block of grouped output rows
    """
    f32 = jnp.float32
    bf16 = jnp.bfloat16
    v = v_ref[...]
    sel = sel_ref[...]
    # Exact 3-term bf16 split: v == hi + mid + lo bit-for-bit in f32, and each
    # single-pass bf16 MXU matmul against the 0/1 matrix is exact, so v_rep
    # reproduces the f32 input exactly (no reliance on Precision.HIGHEST).
    hi = v.astype(bf16)
    r1 = v - hi.astype(f32)
    mid = r1.astype(bf16)
    lo = (r1 - mid.astype(f32)).astype(bf16)
    v_rep = (jnp.dot(hi, sel, preferred_element_type=f32)
             + jnp.dot(mid, sel, preferred_element_type=f32)
             + jnp.dot(lo, sel, preferred_element_type=f32))
    vp = v_rep * freq_ref[...]                       # same rounding as reference
    # cos(x) == sin(x + pi/2): one full-width EUP pass instead of cos + sin.
    out_ref[...] = (scale_ref[...] * jnp.sin(vp + phase_ref[...])).astype(out_ref.dtype)


def _round_up(x, n):
    return ((x + n - 1) // n) * n


def _cdiv(a, b):
    return -(-a // b)


def positional_encoding_map(v, bvals, avals, *,
                            block_rows=2048,
                            out_block_bytes=4 * 1024 * 1024,
                            lane_target=1024,
                            max_lanes=4096,
                            out_dtype=jnp.float32,
                            trim=True):
    """v: (B, N, C) float -> (B, N, 2 * C * len(bvals)) in out_dtype.

    trim=False returns the row-padded (T_pad, 2*C*m) tensor without the final
    [:T] slice (which would materialize a full copy of the dominant output);
    consumers that tolerate padded rows should slice lazily downstream.
    """
    B, N, C = v.shape
    m = int(bvals.shape[0])
    out_cols = 2 * C * m
    T = B * N
    f32 = jnp.float32

    # Row grouping: pack G logical rows per grouped row so blocks are lane-dense:
    #  * output lanes L = G*out_cols is a multiple of 128 and >= lane_target
    #  * input lanes in_L = G*C reaches the MXU K depth (>=128) when cheap.
    G = math.lcm(128, out_cols) // out_cols
    while G * out_cols < lane_target:
        G *= 2
    while G * C < 128 and G * out_cols * 2 <= max_lanes:
        G *= 2
    L = G * out_cols          # output lanes per grouped row
    in_L = G * C              # input lanes per grouped row

    rows_g = _cdiv(T, G)

    # Block rows: target ~out_block_bytes per output block (the kernel is
    # output-write bound; 2-8 MiB blocks keep per-step DMA well above the
    # ~0.35us fixed step overhead on every gen, incl. v7x's 3.2 TB/s HBM).
    BR = max(8, (out_block_bytes // (L * 4)) // 8 * 8)   # sized vs f32 working set
    BR = min(BR, block_rows, _round_up(rows_g, 8))
    BR = max(8, (BR // 8) * 8)                           # sublane-aligned rows
    # Keep >=4 grid steps when possible (v7x 2-TC split + pipeline warm-up).
    while BR > 8 and _cdiv(rows_g, BR) < 4:
        BR = max(8, ((BR // 2) // 8) * 8)

    rows_g_pad = _round_up(rows_g, BR)
    T_pad = rows_g_pad * G
    grid = (rows_g_pad // BR,)

    # --- lane-dense constants, built once in the wrapper ---
    bvals = bvals.astype(f32)
    avals = avals.astype(f32)
    freq = (2.0 * jnp.pi) * bvals                                   # (m,)
    freq2 = jnp.concatenate([freq, freq])                           # cos | sin halves
    freq_lane = jnp.tile(freq2, G * C).reshape(1, L)

    half_pi = jnp.float32(0.5 * jnp.pi)
    phase2 = jnp.concatenate([jnp.full((m,), half_pi, f32), jnp.zeros((m,), f32)])
    phase_lane = jnp.tile(phase2, G * C).reshape(1, L)

    a = jnp.broadcast_to(avals / jnp.linalg.norm(avals), (m,)).astype(f32)
    scale_lane = jnp.tile(jnp.concatenate([a, a]), G * C).reshape(1, L)

    # 0/1 replication matrix (exact in bf16): input lane (g*C + c) -> its 2m lanes.
    sel = jnp.kron(jnp.eye(in_L, dtype=f32),
                   jnp.ones((1, 2 * m), f32)).astype(jnp.bfloat16)  # (in_L, L)

    # --- pack input rows: (T, C) -> (rows_g_pad, G*C); zero-pad ragged tail ---
    v_flat = v.reshape(T, C).astype(f32)
    if T_pad != T:
        v_flat = jnp.pad(v_flat, ((0, T_pad - T), (0, 0)))
    v_g = v_flat.reshape(rows_g_pad, in_L)

    out_g = pl.pallas_call(
        _pe_kernel,
        out_shape=jax.ShapeDtypeStruct((rows_g_pad, L), out_dtype),
        grid_spec=pltpu.PrefetchScalarGridSpec(
            num_scalar_prefetch=0,
            grid=grid,
            in_specs=[
                pl.BlockSpec((in_L, L), lambda i: (0, 0)),   # sel (grid-resident)
                pl.BlockSpec((1, L), lambda i: (0, 0)),      # freq
                pl.BlockSpec((1, L), lambda i: (0, 0)),      # phase
                pl.BlockSpec((1, L), lambda i: (0, 0)),      # scale
                pl.BlockSpec((BR, in_L), lambda i: (i, 0)),  # v rows (lane-dense)
            ],
            out_specs=pl.BlockSpec((BR, L), lambda i: (i, 0)),
        ),
        compiler_params=pltpu.CompilerParams(
            dimension_semantics=("parallel",),
            vmem_limit_bytes=48 * 1024 * 1024),
    )(sel, freq_lane, phase_lane, scale_lane, v_g)

    out_flat = out_g.reshape(T_pad, out_cols)
    if not trim:
        return out_flat
    if T_pad != T:
        # NOTE: this slice materializes a full copy of the (dominant) output
        # tensor in XLA whenever the row count is ragged; consumers that can
        # handle row padding should call with trim=False instead.
        out_flat = out_flat[:T]
    return out_flat.reshape(B, N, out_cols)


def _reference(v, bvals, avals):
    vp = 2.0 * jnp.pi * bvals * v[..., None]                 # (..., C, m)
    vp_cat = jnp.concatenate(
        (avals * jnp.cos(vp), avals * jnp.sin(vp)), axis=-1
    ) / jnp.linalg.norm(avals)                               # (..., C, 2m)
    return vp_cat.reshape(*vp_cat.shape[:-2], -1)            # (..., C*2m)


if __name__ == "__main__":
    # TODO(synk): the optional MLP head (with_mlp=True) is not part of the
    # default forward (self.layer = nn.Identity()); it is not implemented here.
    key = jax.random.PRNGKey(0)
    k1, k2 = jax.random.split(key)

    # Case 1: default module config (m=8, avals=[1.0]); normalized coords in [-1, 1].
    B, N, C, m = 2, 512, 4, 8
    v = jax.random.uniform(k1, (B, N, C), dtype=jnp.float32, minval=-1.0, maxval=1.0)
    bvals = 2.0 ** (jnp.arange(m, dtype=jnp.float32) - 1.0)   # [0.5, 1, ..., 64]
    avals = jnp.array([1.0], dtype=jnp.float32)

    out = jax.block_until_ready(positional_encoding_map(v, bvals, avals))
    ref = _reference(v, bvals, avals)
    assert out.shape == (B, N, 2 * C * m)
    # |vp| reaches ~2*pi*64: the sin(x + pi/2) == cos(x) trick costs a few ulp
    # of the ~4e2 argument (~few e-5 in the output). The MXU replication path
    # is exact (3-term bf16 split), so it adds no error.
    assert jnp.allclose(out, ref, atol=2e-4, rtol=1e-4), float(jnp.max(jnp.abs(out - ref)))

    # Case 2: ragged row count (zero-pad + trim path) and per-frequency avals (m,).
    B2, N2, C2 = 2, 100, 3
    v2 = jax.random.uniform(k2, (B2, N2, C2), dtype=jnp.float32, minval=-1.0, maxval=1.0)
    avals2 = jnp.linspace(1.0, 0.25, m).astype(jnp.float32)
    out2 = jax.block_until_ready(positional_encoding_map(v2, bvals, avals2))
    ref2 = _reference(v2, bvals, avals2)
    assert out2.shape == (B2, N2, 2 * C2 * m)
    assert jnp.allclose(out2, ref2, atol=2e-4, rtol=1e-4), float(jnp.max(jnp.abs(out2 - ref2)))

    # Case 3: bf16 output (halves the dominant HBM writeback when tolerated).
    out_bf16 = jax.block_until_ready(
        positional_encoding_map(v, bvals, avals, out_dtype=jnp.bfloat16))
    assert out_bf16.dtype == jnp.bfloat16
    assert jnp.allclose(out_bf16.astype(jnp.float32), ref, atol=2e-2, rtol=2e-2)

    print("KERNEL_OK")
</pallas_src>

<mosaic_0001>
module attributes {stable_mosaic.version = 11 : i64} {
  func.func @_pe_kernel(%arg0: i32, %arg1: memref<128x2048xbf16, #tpu.memory_space<vmem>>, %arg2: memref<1x2048xf32, #tpu.memory_space<vmem>>, %arg3: memref<1x2048xf32, #tpu.memory_space<vmem>>, %arg4: memref<1x2048xf32, #tpu.memory_space<vmem>>, %arg5: memref<8x128xf32, #tpu.memory_space<vmem>>, %arg6: memref<8x2048xf32, #tpu.memory_space<vmem>>) attributes {dimension_semantics = [#tpu.dimension_semantics<parallel>], iteration_bounds = array<i64: 4>, scalar_prefetch = 0 : i64, scratch_operands = 0 : i64, tpu.core_type = #tpu.core_type<tc>, window_params = [{pipeline_mode = #tpu.pipeline_mode<synchronous>, transform_indices = @transform_0, window_bounds = array<i64: 128, 2048>}, {pipeline_mode = #tpu.pipeline_mode<synchronous>, transform_indices = @transform_1, window_bounds = array<i64: 1, 2048>}, {pipeline_mode = #tpu.pipeline_mode<synchronous>, transform_indices = @transform_2, window_bounds = array<i64: 1, 2048>}, {pipeline_mode = #tpu.pipeline_mode<synchronous>, transform_indices = @transform_3, window_bounds = array<i64: 1, 2048>}, {transform_indices = @transform_4, window_bounds = array<i64: 8, 128>}, {transform_indices = @transform_5, window_bounds = array<i64: 8, 2048>}]} {
    %c0 = arith.constant 0 : index
    %c0_0 = arith.constant 0 : index
    %0 = vector.load %arg5[%c0, %c0_0] : memref<8x128xf32, #tpu.memory_space<vmem>>, vector<8x128xf32>
    %c0_1 = arith.constant 0 : index
    %c0_2 = arith.constant 0 : index
    %1 = vector.load %arg1[%c0_1, %c0_2] : memref<128x2048xbf16, #tpu.memory_space<vmem>>, vector<128x2048xbf16>
    %2 = arith.truncf %0 : vector<8x128xf32> to vector<8x128xbf16>
    %3 = arith.extf %2 : vector<8x128xbf16> to vector<8x128xf32>
    %4 = arith.subf %0, %3 : vector<8x128xf32>
    %5 = arith.truncf %4 : vector<8x128xf32> to vector<8x128xbf16>
    %6 = arith.extf %5 : vector<8x128xbf16> to vector<8x128xf32>
    %7 = arith.subf %4, %6 : vector<8x128xf32>
    %8 = arith.truncf %7 : vector<8x128xf32> to vector<8x128xbf16>
    %cst = arith.constant dense<0.000000e+00> : vector<8x2048xf32>
    %9 = tpu.matmul %2, %1, %cst {dimension_numbers = #tpu.dot_dimension_numbers<[1], [0], [0], [1], [0, 0, 1, 1], [], []>} : vector<8x128xbf16>, vector<128x2048xbf16>, vector<8x2048xf32> -> vector<8x2048xf32>
    %cst_3 = arith.constant dense<0.000000e+00> : vector<8x2048xf32>
    %10 = tpu.matmul %5, %1, %cst_3 {dimension_numbers = #tpu.dot_dimension_numbers<[1], [0], [0], [1], [0, 0, 1, 1], [], []>} : vector<8x128xbf16>, vector<128x2048xbf16>, vector<8x2048xf32> -> vector<8x2048xf32>
    %11 = arith.addf %9, %10 : vector<8x2048xf32>
    %cst_4 = arith.constant dense<0.000000e+00> : vector<8x2048xf32>
    %12 = tpu.matmul %8, %1, %cst_4 {dimension_numbers = #tpu.dot_dimension_numbers<[1], [0], [0], [1], [0, 0, 1, 1], [], []>} : vector<8x128xbf16>, vector<128x2048xbf16>, vector<8x2048xf32> -> vector<8x2048xf32>
    %13 = arith.addf %11, %12 : vector<8x2048xf32>
    %c0_5 = arith.constant 0 : index
    %c0_6 = arith.constant 0 : index
    %14 = vector.load %arg2[%c0_5, %c0_6] : memref<1x2048xf32, #tpu.memory_space<vmem>>, vector<1x2048xf32>
    %15 = vector.broadcast %14 : vector<1x2048xf32> to vector<8x2048xf32>
    %16 = arith.mulf %13, %15 : vector<8x2048xf32>
    %c0_7 = arith.constant 0 : index
    %c0_8 = arith.constant 0 : index
    %17 = vector.load %arg4[%c0_7, %c0_8] : memref<1x2048xf32, #tpu.memory_space<vmem>>, vector<1x2048xf32>
    %c0_9 = arith.constant 0 : index
    %c0_10 = arith.constant 0 : index
    %18 = vector.load %arg3[%c0_9, %c0_10] : memref<1x2048xf32, #tpu.memory_space<vmem>>, vector<1x2048xf32>
    %19 = vector.broadcast %18 : vector<1x2048xf32> to vector<8x2048xf32>
    %20 = arith.addf %16, %19 : vector<8x2048xf32>
    %21 = math.sin %20 : vector<8x2048xf32>
    %22 = vector.broadcast %17 : vector<1x2048xf32> to vector<8x2048xf32>
    %23 = arith.mulf %22, %21 : vector<8x2048xf32>
    %c0_11 = arith.constant 0 : index
    %c0_12 = arith.constant 0 : index
    %24 = vector.load %arg6[%c0_11, %c0_12] : memref<8x2048xf32, #tpu.memory_space<vmem>>, vector<8x2048xf32>
    tpu.vector_store %arg6[%c0_11, %c0_12], %23 {strides = array<i32>} : memref<8x2048xf32, #tpu.memory_space<vmem>>, vector<8x2048xf32>,
    return
  }
  func.func @transform_0(%arg0: i32) -> (i32, i32) {
    %c0_i32 = arith.constant 0 : i32
    %c0_i32_0 = arith.constant 0 : i32
    %c0_i32_1 = arith.constant 0 : i32
    return %c0_i32, %c0_i32_0 : i32, i32
  }
  func.func @transform_1(%arg0: i32) -> (i32, i32) {
    %c0_i32 = arith.constant 0 : i32
    %c0_i32_0 = arith.constant 0 : i32
    %c0_i32_1 = arith.constant 0 : i32
    return %c0_i32, %c0_i32_0 : i32, i32
  }
  func.func @transform_2(%arg0: i32) -> (i32, i32) {
    %c0_i32 = arith.constant 0 : i32
    %c0_i32_0 = arith.constant 0 : i32
    %c0_i32_1 = arith.constant 0 : i32
    return %c0_i32, %c0_i32_0 : i32, i32
  }
  func.func @transform_3(%arg0: i32) -> (i32, i32) {
    %c0_i32 = arith.constant 0 : i32
    %c0_i32_0 = arith.constant 0 : i32
    %c0_i32_1 = arith.constant 0 : i32
    return %c0_i32, %c0_i32_0 : i32, i32
  }
  func.func @transform_4(%arg0: i32) -> (i32, i32) {
    %c0_i32 = arith.constant 0 : i32
    %c0_i32_0 = arith.constant 0 : i32
    return %arg0, %c0_i32 : i32, i32
  }
  func.func @transform_5(%arg0: i32) -> (i32, i32) {
    %c0_i32 = arith.constant 0 : i32
    %c0_i32_0 = arith.constant 0 : i32
    return %arg0, %c0_i32 : i32, i32
  }
}

</mosaic_0001>

<bundles_post_ra>
// kernel: tpu_custom_call.1
= control target key start
LH: loop header
LB: loop body
LE: loop exit
PB: predicated region body
PF: predicated region fallthrough
CT: control target
= control target key end

     0   :  { %10 = vsyncpa [#allocation3], 0  ;;  %s7453_s0 = inlined_call_operand.hbm [shape: bf16[128,2048], index: 0, kind: input, shape index: {}]   ;;  %s7454_s1 = inlined_call_operand.hbm [shape: f32[1,2048], index: 1, kind: input, shape index: {}]   ;;  %s7455_s2 = inlined_call_operand.hbm [shape: f32[1,2048], index: 2, kind: input, shape index: {}]   ;;  %s7456_s3 = inlined_call_operand.hbm [shape: f32[1,2048], index: 3, kind: input, shape index: {}]   ;;  %s7457_s4 = inlined_call_operand.hbm [shape: f32[32,128], index: 4, kind: input, shape index: {}]   ;;  %s7458_s5 = inlined_call_operand.hbm [shape: f32[32,2048], index: 5, kind: output, shape index: {}]  }
   0x1   :  { %11 = vsyncpa [#allocation6], 0 }
   0x2   :  { %12 = vsyncpa [#allocation9], 0 }
   0x3   :  { %13 = vsyncpa [#allocation4], 0 }
   0x4   :  { %15 = vsyncpa [#allocation4 + $0x1], 0  ;;  %s4945_s18 = smov 0   ;;  %s4947_s19 = smov 0  }
   0x5   :  { %s4949_s20 = smov 0   ;;  %s4951_s21 = smov 0  }
   0x6 LB: > { %s4900_s22 = smov [#allocation2]   ;;  %s4966_s24 = sadd.s32 4294967295, %s4898_s21   ;;  %s4898_s21 = sphi %s4951_s21, %s7891_s21   ;;  %s4894_s20 = sphi %s4949_s20, %s7890_s20   ;;  %s4890_s19 = sphi %s4947_s19, %s7889_s19   ;;  %s4886_s18 = sphi %s4945_s18, %s7888_s18  }
   0x7   : > { %s174_s23 = sshll.u32 %s4900_s22, 4  ;;  %p4171_p0 = scmp.ge.s32.totalorder %s4898_s21, 1  ;;  %s4972_s23 = int_to_ptr.vmem [resolvable:$true] %s174_s23 }
   0x8   : > { %p7459_p1 = scmp.eq.s32.totalorder %s4966_s24, 0  ;;  %p162_p3 = scmp.lt.s32.totalorder %s4898_s21, 5 }
   0x9   : > { %s4901_s26 = smov [#allocation5]   ;;  %s4902_s29 = smov [#allocation7]  }
   0xa   : > { %p4974_p4 = pnand %p4171_p0, %p162_p3  ;;  %s188_s27 = sshll.u32 %s4901_s26, 4  ;;  %s4980_s27 = int_to_ptr.vmem [resolvable:$true] %s188_s27 }
   0xb   : > { %s199_s30 = sshll.u32 %s4902_s29, 4  ;;  %s4903_s6 = smov [#allocation8]   ;;  %s4988_s30 = int_to_ptr.vmem [resolvable:$true] %s199_s30 }
   0xc   : > { %s7617_s25 = scalar_select %p4974_p4, 1, 0 }
   0xd   : > { %p4532_p5 = pneg %p4974_p4  ;;  %s4990_s7 = sshll.u32 %s4903_s6, 4  ;;  %s211_s7 = int_to_ptr.vmem [resolvable:$true] %s4990_s7 }
   0xe   : > { %s4678_s10 = scalar_lea.hbm %s7453_s0, 16384 }
   0xf   : > { %p4984_p6 = pnand %p4532_p5, %p7459_p1  ;;  %p4679_p7 = scmp.ne.s32.totalorder %s7453_s0, %s4678_s10 }
  0x10   : > { %p4685_p11 = scmp.lt.u32.totalorder %s4678_s10, %s7453_s0 }
  0x11   : > { %p5000_p8 = pneg %p4984_p6 }
  0x13   : > { %p4681_p9 = pnand %p5000_p8, %p4679_p7 }
  0x15   : > { %p4682_p10 = pneg %p4681_p9 }
  0x17   : > { %p4687_p12 = pnand %p4685_p11, %p4682_p10 }
  0x19   : > { %4690 = shalt.err (!%p4687_p12)
}
  0x1a   : > { %s4691_s16 = scalar_lea.vmem %s4972_s23, 16384  ;;  %p4699_p5 = scmp.lt.s32.totalorder %s4972_s23, %s4972_s23 }
  0x1b   : > { %p4692_p13 = scmp.ne.s32.totalorder %s4972_s23, %s4691_s16  ;;  %p4700_p1 = scmp.lt.s32.totalorder %s4691_s16, %s4691_s16 }
  0x1d   : > { %p4694_p0 = pnand %p4692_p13, %p5000_p8  ;;  %p4701_p7 = por %p4700_p1, %p4699_p5 }
  0x1f   : > { %p4695_p3 = pneg %p4694_p0 }
  0x21   : > { %p4702_p9 = pnand %p4701_p7, %p4695_p3 }
  0x23   : > { %4705 = shalt.err (!%p4702_p9)
}
  0x24   : > { %s4904_s17 = smov 1024   ;;  %s4905_s22 = smov 64  }
  0x25   : > { %4535 = dma.hbm_to_vmem [thread:$0]  (!%p4984_p6), %s7453_s0, 16384, %s4972_s23, [#allocation3], %s4904_s17, %s4904_s17, %s4905_s22  }
  0x26   : > { %s4706_s9 = scalar_lea.hbm %s7454_s1, 256 }
  0x27   : > { %p4707_p1 = scmp.ne.s32.totalorder %s7454_s1, %s4706_s9  ;;  %p4713_p12 = scmp.lt.u32.totalorder %s4706_s9, %s7454_s1 }
  0x29   : > { %p4709_p10 = pnand %p4707_p1, %p5000_p8 }
  0x2b   : > { %p4710_p11 = pneg %p4709_p10 }
  0x2d   : > { %p4715_p13 = pnand %p4713_p12, %p4710_p11 }
  0x2f   : > { %4718 = shalt.err (!%p4715_p13)
}
  0x30   : > { %s4719_s23 = scalar_lea.vmem %s4980_s27, 256  ;;  %p4727_p7 = scmp.lt.s32.totalorder %s4980_s27, %s4980_s27 }
  0x31   : > { %p4720_p0 = scmp.ne.s32.totalorder %s4980_s27, %s4719_s23  ;;  %p4728_p9 = scmp.lt.s32.totalorder %s4719_s23, %s4719_s23 }
  0x33   : > { %p4722_p3 = pnand %p4720_p0, %p5000_p8  ;;  %p4729_p1 = por %p4728_p9, %p4727_p7 }
  0x35   : > { %p4723_p5 = pneg %p4722_p3 }
  0x37   : > { %p4730_p10 = pnand %p4729_p1, %p4723_p5 }
  0x39   : > { %4733 = shalt.err (!%p4730_p10)
}
  0x3a   : > { %4538 = dma.hbm_to_vmem [thread:$0]  (!%p4984_p6), %s7454_s1, 256, %s4980_s27, [#allocation6]  }
  0x3b   : > { %s4734_s26 = scalar_lea.hbm %s7455_s2, 256 }
  0x3c   : > { %p4735_p11 = scmp.ne.s32.totalorder %s7455_s2, %s4734_s26  ;;  %p4741_p0 = scmp.lt.u32.totalorder %s4734_s26, %s7455_s2 }
  0x3e   : > { %p4737_p12 = pnand %p4735_p11, %p5000_p8 }
  0x40   : > { %p4738_p13 = pneg %p4737_p12 }
  0x42   : > { %p4743_p3 = pnand %p4741_p0, %p4738_p13 }
  0x44   : > { %4746 = shalt.err (!%p4743_p3)
}
  0x45   : > { %s4747_s27 = scalar_lea.vmem %s4988_s30, 256  ;;  %p4755_p1 = scmp.lt.s32.totalorder %s4988_s30, %s4988_s30 }
  0x46   : > { %p4748_p5 = scmp.ne.s32.totalorder %s4988_s30, %s4747_s27  ;;  %p4756_p10 = scmp.lt.s32.totalorder %s4747_s27, %s4747_s27 }
  0x48   : > { %p4750_p7 = pnand %p4748_p5, %p5000_p8  ;;  %p4757_p11 = por %p4756_p10, %p4755_p1 }
  0x4a   : > { %p4751_p9 = pneg %p4750_p7 }
  0x4c   : > { %p4758_p12 = pnand %p4757_p11, %p4751_p9 }
  0x4e   : > { %4761 = shalt.err (!%p4758_p12)
}
  0x4f   : > { %4541 = dma.hbm_to_vmem [thread:$0]  (!%p4984_p6), %s7455_s2, 256, %s4988_s30, [#allocation6]  }
  0x50   : > { %s4762_s23 = scalar_lea.hbm %s7456_s3, 256 }
  0x51   : > { %p4763_p13 = scmp.ne.s32.totalorder %s7456_s3, %s4762_s23  ;;  %p4769_p5 = scmp.lt.u32.totalorder %s4762_s23, %s7456_s3 }
  0x53   : > { %p4765_p0 = pnand %p4763_p13, %p5000_p8 }
  0x55   : > { %p4766_p3 = pneg %p4765_p0 }
  0x57   : > { %p4771_p7 = pnand %p4769_p5, %p4766_p3 }
  0x59   : > { %4774 = shalt.err (!%p4771_p7)
}
  0x5a   : > { %s4775_s26 = scalar_lea.vmem %s211_s7, 256  ;;  %p4783_p11 = scmp.lt.s32.totalorder %s211_s7, %s211_s7 }
  0x5b   : > { %p4776_p9 = scmp.ne.s32.totalorder %s211_s7, %s4775_s26  ;;  %p4784_p12 = scmp.lt.s32.totalorder %s4775_s26, %s4775_s26 }
  0x5d   : > { %p4778_p1 = pnand %p4776_p9, %p5000_p8  ;;  %p4785_p2 = por %p4784_p12, %p4783_p11 }
  0x5f   : > { %p4779_p10 = pneg %p4778_p1 }
  0x61   : > { %p4786_p4 = pnand %p4785_p2, %p4779_p10 }
  0x63   : > { %4789 = shalt.err (!%p4786_p4)
}
  0x64   : > { %4544 = dma.hbm_to_vmem [thread:$0]  (!%p4984_p6), %s7456_s3, 256, %s211_s7, [#allocation9]  }
  0x65   : > { %s4170_s28 = sadd.s32 4294967294, %s4898_s21   ;;  %s5088_s13 = sadd.s32 1, %s4898_s21  }
  0x66   : > { %s112_s6 = sadd.s32 1, %s4894_s20  ;;  %s109_s8 = ssub.s32 %s4898_s21, %s5088_s13 }
  0x67   : > { %p119_p2 = scmp.ne.s32.totalorder %s4894_s20, %s4890_s19  ;;  %p110_p4 = scmp.eq.s32.totalorder %s109_s8, 0 }
  0x68   : > { %p120_p8 = scmp.eq.s32.totalorder %s4898_s21, 0  ;;  %p125_p13 = scmp.ne.s32.totalorder %s4890_s19, %s4886_s18 }
  0x69   : > { %p7620_p0 = scmp.eq.s32.totalorder %s4966_s24, 3  ;;  %p7622_p5 = scmp.eq.s32.totalorder %s4966_s24, 0 }
  0x6a   : > { %s5105_s27 = scalar_select %p110_p4, %s4894_s20, %s112_s6  }
  0x6b   : > { %p5100_p3 = por %p7620_p0, %p119_p2  ;;  %p121_p6 = por %p120_p8, %p119_p2 }
  0x6c   : > { %p5109_p7 = por %p7622_p5, %p125_p13  ;;  %p155_p9 = scmp.eq.s32.totalorder %s4170_s28, 3 }
  0x6d   : > { %s7621_s9 = scalar_select %p5100_p3, 1, 0 }
  0x6e   : > { %p4557_p1 = scmp.lt.s32.totalorder %s4898_s21, 4  ;;  %s221_s10 = sand.u32 1, %s4898_s21  }
  0x6f   : > { %s223_s11 = sand.u32 1, %s4894_s20   ;;  %p5116_p10 = por %p155_p9, %p125_p13 }
  0x70   : > { %s4177_s14 = sshll.u32 %s223_s11, 3  ;;  %s4178_s23 = sshll.u32 %s4898_s21, 7 }
  0x71   : > { %s7624_s12 = scalar_select %p5116_p10, 1, 0 }
  0x72   : > { %s5124_s17 = scalar_lea.hbm %s7457_s4, %s4178_s23  ;;  %s225_s22 = scalar_lea.vmem [#allocation10], %s4177_s14 }
  0x73   : > { %s232_s26 = sshll.u32 %s225_s22, 4  ;;  %p5126_p11 = pnand %p4557_p1, %p121_p6  ;;  %s5130_s26 = int_to_ptr.vmem [resolvable:$true] %s232_s26 }
  0x74   : > { %s222_s29 = scalar_lea.sflag [#allocation3], %s221_s10  ;;  %s4790_s28 = scalar_lea.hbm %s5124_s17, 128 }
  0x75   : > { %p4791_p12 = scmp.ne.s32.totalorder %s5124_s17, %s4790_s28  ;;  %p4792_p2 = pneg %p5126_p11 }
  0x76   : > { %s4795_s11 = scalar_lea.hbm %s7457_s4, 512  ;;  %p4796_p13 = scmp.lt.u32.totalorder %s5124_s17, %s7457_s4 }
  0x77   : > { %p4793_p4 = pnand %p4792_p2, %p4791_p12  ;;  %p4797_p0 = scmp.lt.u32.totalorder %s4795_s11, %s4790_s28 }
  0x78   : > { %p4799_p5 = scmp.lt.u32.totalorder %s4790_s28, %s5124_s17 }
  0x79   : > { %p4794_p8 = pneg %p4793_p4  ;;  %p4798_p6 = por %p4797_p0, %p4796_p13 }
  0x7b   : > { %p4800_p9 = por %p4799_p5, %p4798_p6 }
  0x7d   : > { %p4801_p1 = pnand %p4800_p9, %p4794_p8 }
  0x7f   : > { %4804 = shalt.err (!%p4801_p1)
}
  0x80   : > { %s4805_s10 = scalar_lea.vmem %s5130_s26, 128  ;;  %s4906_s15 = smov [#allocation10]  }
  0x81   : > { %p4806_p12 = scmp.ne.s32.totalorder %s5130_s26, %s4805_s10  ;;  %s4810_s16 = sshll.u32 %s4906_s15, 4  ;;  %s4811_s16 = int_to_ptr.vmem [resolvable:$false] %s4810_s16 }
  0x82   : > { %s4812_s22 = scalar_lea.vmem %s4811_s16, 256  ;;  %p4813_p3 = scmp.lt.s32.totalorder %s5130_s26, %s4811_s16 }
  0x83   : > { %p4808_p4 = pnand %p4806_p12, %p4792_p2  ;;  %p4814_p13 = scmp.lt.s32.totalorder %s4812_s22, %s4805_s10 }
  0x85   : > { %p4809_p10 = pneg %p4808_p4  ;;  %p4815_p0 = por %p4814_p13, %p4813_p3 }
  0x87   : > { %p4816_p6 = pnand %p4815_p0, %p4809_p10 }
  0x89   : > { %4819 = shalt.err (!%p4816_p6)
}
  0x8a   : > { %4548 = dma.hbm_to_vmem [thread:$0]  (!%p5126_p11), %s5124_s17, 128, %s5130_s26, %s222_s29  }
  0x8b   : > { %p7626_p8 = scmp.ne.s32.totalorder %s7617_s25, 0 }
  0x8d   : > { %241 = sbr.rel (%p7626_p8) target bundleno = 1133 (0x46d), region = 40 }
  0x94   : > { %p7627_p2 = scmp.eq.s32.totalorder %s4966_s24, 0 }
  0x96   : > { %4865 = dma.done.wait (%p7627_p2), [#allocation3], 16384   ;;  %p7628_p5 = pmov %p7627_p2 }
  0x97   : > { %p7629_p9 = pmov %p7627_p2 }
  0x98   : > { %4867 = vsyncadd (%p7628_p5), [#allocation3], 4294950912 }
  0x99   : > { %4869 = dma.done.wait (%p7629_p9), [#allocation6], 512   ;;  %p7630_p3 = pmov %p7627_p2 }
  0x9a   : > { %p7631_p10 = pmov %p7627_p2 }
  0x9b   : > { %4871 = vsyncadd (%p7630_p3), [#allocation6], 4294966784 }
  0x9c   : > { %4873 = dma.done.wait (%p7631_p10), [#allocation9], 256   ;;  %p7632_p11 = pmov %p7627_p2 }
  0x9d   : > { %s259_s25 = sand.u32 1, %s4966_s24   ;;  %s5173_s17 = sand.u32 1, %s4890_s19  }
  0x9e   : > { %4875 = vsyncadd (%p7632_p11), [#allocation9], 4294967040  ;;  %s4184_s26 = sshll.u32 %s5173_s17, 3  ;;  %s260_s30 = scalar_lea.sflag [#allocation3], %s259_s25 }
  0x9f   : > { %s5176_s29 = scalar_lea.vmem [#allocation10], %s4184_s26 }
  0xa0   : > { %4877 = dma.done.wait (%p5109_p7), %s260_s30, 128  }
  0xa1   : > { %4879 = vsyncadd (%p5109_p7), %s260_s30, 4294967168  ;;  %v7462_v0 = vmov 0   ;;  %v292_v1 = vld [vmem:[#allocation2] sm:$0xff]  ;;  %v293_v3 = vld [vmem:[#allocation2 + $0x8] sm:$0xff]  ;;  %s4185_s7 = sshll.u32 %s5173_s17, 7  ;;  %s4383_s6 = sshll.u32 %s4966_s24, 11 }
  0xa2   : > { %1099 = vmatprep.mubr.bf16.mxu0 %v7462_v0  ;;  %1140 = vmatprep.mubr.bf16.mxu1 %v7462_v0  ;;  %v300_v2 = vld [vmem:[#allocation2 + $0x40] sm:$0xff]  ;;  %v301_v5 = vld [vmem:[#allocation2 + $0x48] sm:$0xff]  ;;  %v291_v44 = vld [vmem:[%s5176_s29] sm:$0xff]  ;;  %s6281_s28 = scalar_lea.vmem [#allocation11], %s4185_s7  ;;  %s7409_s23 = scalar_lea.hbm %s7458_s5, %s4383_s6 }
  0xa3   : > { %v5184_v4 = vcombine.high %v292_v1, %v300_v2  ;;  %v5186_v6 = vcombine.low %v292_v1, %v300_v2  ;;  %v308_v7 = vld [vmem:[#allocation2 + $0x80] sm:$0xff]  ;;  %v5188_v9 = vcombine.high %v293_v3, %v301_v5  ;;  %v5190_v10 = vcombine.low %v293_v3, %v301_v5  ;;  %v309_v12 = vld [vmem:[#allocation2 + $0x88] sm:$0xff]  ;;  %v294_v3 = vld [vmem:[#allocation2 + $0x10] sm:$0xff]  ;;  %s4062_s8 = sshll.u32 %s6281_s28, 4  ;;  %s4048_s10 = scalar_lea.sflag [#allocation4], %s5173_s17  ;;  %s7411_s8 = int_to_ptr.vmem [resolvable:$true] %s4062_s8 }
  0xa4   : > { %v316_v8 = vld [vmem:[#allocation2 + $0xc0] sm:$0xff]  ;;  %v317_v13 = vld [vmem:[#allocation2 + $0xc8] sm:$0xff]  ;;  %v5247_v52 = vpack.c.bf16 %v291_v44, %v291_v44  ;;  %v302_v5 = vld [vmem:[#allocation2 + $0x50] sm:$0xff]  ;;  %s4820_s15 = scalar_lea.vmem %s7411_s8, 2048  ;;  %p7886_p1 = scmp.ne.s32.totalorder %s7621_s9, 0 }
  0xa5   : > { %v5192_v11 = vcombine.high %v308_v7, %v316_v8  ;;  %v324_v14 = vld [vmem:[#allocation2 + $0x100] sm:$0xff]  ;;  %1067 = vmatprep.subr.bf16.mxu0 %v5184_v4  ;;  %v5195_v15 = vcombine.high %v309_v12, %v317_v13  ;;  %v325_v17 = vld [vmem:[#allocation2 + $0x108] sm:$0xff]  ;;  %1108 = vmatprep.subr.bf16.mxu1 %v5188_v9  ;;  %v5199_v19 = vcombine.low %v308_v7, %v316_v8  ;;  %v295_v7 = vld [vmem:[#allocation2 + $0x18] sm:$0xff]  ;;  %p4821_p7 = scmp.ne.s32.totalorder %s7411_s8, %s4820_s15  ;;  %s4914_s24 = smov [#allocation11]  }
  0xa6   : > { %v332_v16 = vld [vmem:[#allocation2 + $0x140] sm:$0xff]  ;;  %v333_v18 = vld [vmem:[#allocation2 + $0x148] sm:$0xff]  ;;  %1068 = vmatpush1.bf16.msra.mxu0 %v5186_v6  ;;  %1109 = vmatpush1.bf16.msra.mxu1 %v5190_v10  ;;  %v5203_v20 = vcombine.low %v309_v12, %v317_v13  ;;  %v421_v61 = vunpack.c.l.bf16 %v5247_v52  ;;  %v303_v8 = vld [vmem:[#allocation2 + $0x58] sm:$0xff]  ;;  %s4824_s16 = sshll.u32 %s4914_s24, 4  ;;  %s4825_s16 = int_to_ptr.vmem [resolvable:$false] %s4824_s16 }
  0xa7   : > { %1069 = vmatprep.subr.bf16.mxu0 %v5192_v11  ;;  %v5205_v21 = vcombine.high %v324_v14, %v332_v16  ;;  %1110 = vmatprep.subr.bf16.mxu1 %v5195_v15  ;;  %v5208_v22 = vcombine.high %v325_v17, %v333_v18  ;;  %v340_v23 = vld [vmem:[#allocation2 + $0x180] sm:$0xff]  ;;  %v341_v25 = vld [vmem:[#allocation2 + $0x188] sm:$0xff]  ;;  %v5211_v27 = vcombine.low %v324_v14, %v332_v16  ;;  %p4822_p12 = pnand %p4821_p7, %p7886_p1  ;;  %s4826_s22 = scalar_lea.vmem %s4825_s16, 4096 }
  0xa8   : > { %v348_v24 = vld [vmem:[#allocation2 + $0x1c0] sm:$0xff]  ;;  %v349_v26 = vld [vmem:[#allocation2 + $0x1c8] sm:$0xff]  ;;  %v5215_v28 = vcombine.low %v325_v17, %v333_v18  ;;  %v5274_v12 = vsub.f32 %v291_v44, %v421_v61  ;;  %v5283_v16 = vcombine.high %v294_v3, %v302_v5  ;;  %v5286_v17 = vcombine.high %v295_v7, %v303_v8  ;;  %v310_v18 = vld [vmem:[#allocation2 + $0x90] sm:$0xff]  ;;  %p4827_p13 = scmp.lt.s32.totalorder %s7411_s8, %s4825_s16  ;;  %p4828_p0 = scmp.lt.s32.totalorder %s4826_s22, %s4820_s15 }
  0xa9   : > { %v5217_v29 = vcombine.high %v340_v23, %v348_v24  ;;  %v5220_v30 = vcombine.high %v341_v25, %v349_v26  ;;  %v356_v31 = vld [vmem:[#allocation2 + $0x200] sm:$0xff]  ;;  %v357_v33 = vld [vmem:[#allocation2 + $0x208] sm:$0xff]  ;;  %v5223_v35 = vcombine.low %v340_v23, %v348_v24  ;;  %v5227_v36 = vcombine.low %v341_v25, %v349_v26  ;;  %v318_v23 = vld [vmem:[#allocation2 + $0xd0] sm:$0xff]  ;;  %p4823_p4 = pneg %p4822_p12 }
  0xaa   : > { %1070 = vmatpush1.bf16.msra.mxu0 %v5199_v19  ;;  %1111 = vmatpush1.bf16.msra.mxu1 %v5203_v20  ;;  %v364_v32 = vld [vmem:[#allocation2 + $0x240] sm:$0xff]  ;;  %v365_v34 = vld [vmem:[#allocation2 + $0x248] sm:$0xff]  ;;  %7633 = vst [vmem:[#allocation17_spill] sm:$0xff] %v5274_v12  ;;  %v5290_v24 = vpack.c.bf16 %v5274_v12, %v5274_v12  ;;  %v311_v25 = vld [vmem:[#allocation2 + $0x98] sm:$0xff]  ;;  %v5307_v44 = vcombine.low %v310_v18, %v318_v23  ;;  %p4829_p6 = por %p4828_p0, %p4827_p13 }
  0xab   : > { %1071 = vmatprep.subr.bf16.mxu0 %v5205_v21  ;;  %1112 = vmatprep.subr.bf16.mxu1 %v5208_v22  ;;  %v5229_v37 = vcombine.high %v356_v31, %v364_v32  ;;  %v5232_v38 = vcombine.high %v357_v33, %v365_v34  ;;  %v372_v39 = vld [vmem:[#allocation2 + $0x280] sm:$0xff]  ;;  %v373_v41 = vld [vmem:[#allocation2 + $0x288] sm:$0xff]  ;;  %v5235_v43 = vcombine.low %v356_v31, %v364_v32  ;;  %v319_v26 = vld [vmem:[#allocation2 + $0xd8] sm:$0xff] }
  0xac   : > { %v380_v40 = vld [vmem:[#allocation2 + $0x2c0] sm:$0xff]  ;;  %v381_v42 = vld [vmem:[#allocation2 + $0x2c8] sm:$0xff]  ;;  %v5240_v45 = vcombine.low %v357_v33, %v365_v34  ;;  %v5293_v31 = vcombine.low %v294_v3, %v302_v5  ;;  %v5297_v32 = vcombine.low %v295_v7, %v303_v8  ;;  %v5299_v33 = vcombine.high %v310_v18, %v318_v23  ;;  %7635 = vst [vmem:[#allocation19_spill] sm:$0xff] %v5307_v44  ;;  %v358_v7 = vld [vmem:[#allocation2 + $0x210] sm:$0xff]  ;;  %p4830_p8 = pnand %p4829_p6, %p4823_p4 }
  0xad   : > { %v5242_v46 = vcombine.high %v372_v39, %v380_v40  ;;  %v5245_v47 = vcombine.high %v373_v41, %v381_v42  ;;  %v388_v48 = vld [vmem:[#allocation2 + $0x300] sm:$0xff]  ;;  %v389_v50 = vld [vmem:[#allocation2 + $0x308] sm:$0xff]  ;;  %v5250_v53 = vcombine.low %v372_v39, %v380_v40  ;;  %v5254_v54 = vcombine.low %v373_v41, %v381_v42  ;;  %v326_v39 = vld [vmem:[#allocation2 + $0x110] sm:$0xff] }
  0xae   : > { %1072 = vmatpush1.bf16.msra.mxu0 %v5211_v27  ;;  %1113 = vmatpush1.bf16.msra.mxu1 %v5215_v28  ;;  %v396_v49 = vld [vmem:[#allocation2 + $0x340] sm:$0xff]  ;;  %v397_v51 = vld [vmem:[#allocation2 + $0x348] sm:$0xff]  ;;  %v5302_v34 = vcombine.high %v311_v25, %v319_v26  ;;  %v334_v40 = vld [vmem:[#allocation2 + $0x150] sm:$0xff] }
  0xaf   : > { %1073 = vmatprep.subr.bf16.mxu0 %v5217_v29  ;;  %1114 = vmatprep.subr.bf16.mxu1 %v5220_v30  ;;  %v5256_v55 = vcombine.high %v388_v48, %v396_v49  ;;  %v5259_v56 = vcombine.high %v389_v50, %v397_v51  ;;  %v404_v57 = vld [vmem:[#allocation2 + $0x380] sm:$0xff]  ;;  %v405_v59 = vld [vmem:[#allocation2 + $0x388] sm:$0xff]  ;;  %v5263_v62 = vcombine.low %v388_v48, %v396_v49  ;;  %v327_v41 = vld [vmem:[#allocation2 + $0x118] sm:$0xff] }
  0xb0   : > { %v412_v58 = vld [vmem:[#allocation2 + $0x3c0] sm:$0xff]  ;;  %v413_v60 = vld [vmem:[#allocation2 + $0x3c8] sm:$0xff]  ;;  %v5267_v63 = vcombine.low %v389_v50, %v397_v51  ;;  %7634 = vst [vmem:[#allocation18_spill] sm:$0xff] %v5302_v34  ;;  %v335_v42 = vld [vmem:[#allocation2 + $0x158] sm:$0xff]  ;;  %v5311_v48 = vcombine.low %v311_v25, %v319_v26  ;;  %v5313_v49 = vcombine.high %v326_v39, %v334_v40 }
  0xb1   : > { %v5269_v1 = vcombine.high %v404_v57, %v412_v58  ;;  %v5272_v2 = vcombine.high %v405_v59, %v413_v60  ;;  %v5277_v13 = vcombine.low %v404_v57, %v412_v58  ;;  %v5281_v14 = vcombine.low %v405_v59, %v413_v60  ;;  %v342_v51 = vld [vmem:[#allocation2 + $0x190] sm:$0xff]  ;;  %v343_v58 = vld [vmem:[#allocation2 + $0x198] sm:$0xff] }
  0xb2   : > { %1074 = vmatpush1.bf16.msra.mxu0 %v5223_v35  ;;  %1115 = vmatpush1.bf16.msra.mxu1 %v5227_v36  ;;  %7636 = vst [vmem:[#allocation20_spill] sm:$0xff] %v5311_v48  ;;  %7637 = vst [vmem:[#allocation21_spill] sm:$0xff] %v5313_v49  ;;  %v5316_v50 = vcombine.high %v327_v41, %v335_v42  ;;  %v350_v57 = vld [vmem:[#allocation2 + $0x1d0] sm:$0xff]  ;;  %v351_v59 = vld [vmem:[#allocation2 + $0x1d8] sm:$0xff]  ;;  %v5321_v60 = vcombine.low %v326_v39, %v334_v40 }
  0xb3   : > { %1075 = vmatprep.subr.bf16.mxu0 %v5229_v37  ;;  %1116 = vmatprep.subr.bf16.mxu1 %v5232_v38  ;;  %v5325_v61 = vcombine.low %v327_v41, %v335_v42  ;;  %v5327_v3 = vcombine.high %v342_v51, %v350_v57  ;;  %v5330_v5 = vcombine.high %v343_v58, %v351_v59  ;;  %v366_v8 = vld [vmem:[#allocation2 + $0x250] sm:$0xff]  ;;  %v359_v18 = vld [vmem:[#allocation2 + $0x218] sm:$0xff] }
  0xb4   : > { %7638 = vst [vmem:[#allocation22_spill] sm:$0xff] %v5316_v50  ;;  %7639 = vst [vmem:[#allocation23_spill] sm:$0xff] %v5321_v60  ;;  %v367_v23 = vld [vmem:[#allocation2 + $0x258] sm:$0xff]  ;;  %v5333_v25 = vcombine.low %v342_v51, %v350_v57  ;;  %v5337_v26 = vcombine.low %v343_v58, %v351_v59  ;;  %v5339_v39 = vcombine.high %v358_v7, %v366_v8  ;;  %v374_v41 = vld [vmem:[#allocation2 + $0x290] sm:$0xff] }
  0xb5   : > { %7640 = vst [vmem:[#allocation24_spill] sm:$0xff] %v5325_v61  ;;  %7641 = vst [vmem:[#allocation25_spill] sm:$0xff] %v5327_v3  ;;  %v5342_v40 = vcombine.high %v359_v18, %v367_v23  ;;  %v382_v42 = vld [vmem:[#allocation2 + $0x2d0] sm:$0xff]  ;;  %v383_v12 = vld [vmem:[#allocation2 + $0x2d8] sm:$0xff]  ;;  %v5345_v51 = vcombine.low %v358_v7, %v366_v8  ;;  %v5349_v57 = vcombine.low %v359_v18, %v367_v23 }
  0xb6   : > { %1076 = vmatpush1.bf16.msra.mxu0 %v5235_v43  ;;  %1117 = vmatpush1.bf16.msra.mxu1 %v5240_v45  ;;  %7642 = vst [vmem:[#allocation26_spill] sm:$0xff] %v5330_v5  ;;  %7643 = vst [vmem:[#allocation27_spill] sm:$0xff] %v5333_v25  ;;  %v5351_v58 = vcombine.high %v374_v41, %v382_v42  ;;  %v5357_v7 = vcombine.low %v374_v41, %v382_v42 }
  0xb7   : > { %1077 = vmatprep.subr.bf16.mxu0 %v5242_v46  ;;  %1118 = vmatprep.subr.bf16.mxu1 %v5245_v47  ;;  %7644 = vst [vmem:[#allocation28_spill] sm:$0xff] %v5337_v26  ;;  %7645 = vst [vmem:[#allocation29_spill] sm:$0xff] %v5339_v39 }
  0xb8   : > { %7646 = vst [vmem:[#allocation30_spill] sm:$0xff] %v5342_v40  ;;  %7647 = vst [vmem:[#allocation31_spill] sm:$0xff] %v5345_v51 }
  0xb9   : > { %7648 = vst [vmem:[#allocation32_spill] sm:$0xff] %v5349_v57  ;;  %7649 = vst [vmem:[#allocation33_spill] sm:$0xff] %v5351_v58 }
  0xba   : > { %1078 = vmatpush1.bf16.msra.mxu0 %v5250_v53  ;;  %1119 = vmatpush1.bf16.msra.mxu1 %v5254_v54  ;;  %7651 = vst [vmem:[#allocation35_spill] sm:$0xff] %v5357_v7 }
  0xbb   : > { %1079 = vmatprep.subr.bf16.mxu0 %v5256_v55  ;;  %1120 = vmatprep.subr.bf16.mxu1 %v5259_v56 }
  0xbe   : > { %1080 = vmatpush1.bf16.msra.mxu0 %v5263_v62  ;;  %1121 = vmatpush1.bf16.msra.mxu1 %v5267_v63 }
  0xbf   : > { %1081 = vmatprep.subr.bf16.mxu0 %v5269_v1  ;;  %1122 = vmatprep.subr.bf16.mxu1 %v5272_v2 }
  0xc2   : > { %1082 = vmatpush1.bf16.msra.mxu0 %v5277_v13  ;;  %1123 = vmatpush1.bf16.msra.mxu1 %v5281_v14 }
  0xc3   : > { %1149 = vmatprep.subr.bf16.mxu0 %v5283_v16  ;;  %1190 = vmatprep.subr.bf16.mxu1 %v5286_v17 }
  0xc5   : > { %1100 = vmatmul.mubr.bf16.vlgmr.msra.gmra.mrb[0].mxu0 %v5290_v24  ;;  %1141 = vmatmul.mubr.bf16.vlgmr.msra.gmra.mrb[0].mxu1 %v5290_v24 }
  0xc6   : > { %1150 = vmatpush1.bf16.msra.mxu0 %v5293_v31  ;;  %1191 = vmatpush1.bf16.msra.mxu1 %v5297_v32 }
  0xc7   : > { %1151 = vmatprep.subr.bf16.mxu0 %v5299_v33  ;;  %1192 = vmatprep.subr.bf16.mxu1 %v5302_v34 }
  0xc8   : > { %1181 = vmatprep.mubr.bf16.mxu0 %v7462_v0  ;;  %1222 = vmatprep.mubr.bf16.mxu1 %v7462_v0  ;;  %v375_v0 = vld [vmem:[#allocation2 + $0x298] sm:$0xff] }
  0xc9   : > { %v5354_v59 = vcombine.high %v375_v0, %v383_v12  ;;  %v5361_v8 = vcombine.low %v375_v0, %v383_v12 }
  0xca   : > { %1152 = vmatpush1.bf16.msra.mxu0 %v5307_v44  ;;  %1193 = vmatpush1.bf16.msra.mxu1 %v5311_v48 }
  0xcb   : > { %1153 = vmatprep.subr.bf16.mxu0 %v5313_v49  ;;  %1194 = vmatprep.subr.bf16.mxu1 %v5316_v50  ;;  %7650 = vst [vmem:[#allocation34_spill] sm:$0xff] %v5354_v59  ;;  %7652 = vst [vmem:[#allocation36_spill] sm:$0xff] %v5361_v8  ;;  %v369_v50 = vld [vmem:[#allocation2 + $0x268] sm:$0xff] }
  0xce   : > { %1154 = vmatpush1.bf16.msra.mxu0 %v5321_v60  ;;  %1195 = vmatpush1.bf16.msra.mxu1 %v5325_v61  ;;  %v391_v61 = vld [vmem:[#allocation2 + $0x318] sm:$0xff] }
  0xcf   : > { %1155 = vmatprep.subr.bf16.mxu0 %v5327_v3  ;;  %1196 = vmatprep.subr.bf16.mxu1 %v5330_v5  ;;  %v390_v5 = vld [vmem:[#allocation2 + $0x310] sm:$0xff]  ;;  %v399_v60 = vld [vmem:[#allocation2 + $0x358] sm:$0xff] }
  0xd0   : > { %v398_v3 = vld [vmem:[#allocation2 + $0x350] sm:$0xff]  ;;  %v5366_v23 = vcombine.high %v391_v61, %v399_v60  ;;  %v5373_v0 = vcombine.low %v391_v61, %v399_v60 }
  0xd1   : > { %v5363_v18 = vcombine.high %v390_v5, %v398_v3  ;;  %v5369_v41 = vcombine.low %v390_v5, %v398_v3 }
  0xd2   : > { %1156 = vmatpush1.bf16.msra.mxu0 %v5333_v25  ;;  %1197 = vmatpush1.bf16.msra.mxu1 %v5337_v26  ;;  %7654 = vst [vmem:[#allocation38_spill] sm:$0xff] %v5366_v23  ;;  %v407_v26 = vld [vmem:[#allocation2 + $0x398] sm:$0xff]  ;;  %7656 = vst [vmem:[#allocation40_spill] sm:$0xff] %v5373_v0 }
  0xd3   : > { %1157 = vmatprep.subr.bf16.mxu0 %v5339_v39  ;;  %1198 = vmatprep.subr.bf16.mxu1 %v5342_v40  ;;  %7653 = vst [vmem:[#allocation37_spill] sm:$0xff] %v5363_v18  ;;  %v406_v40 = vld [vmem:[#allocation2 + $0x390] sm:$0xff]  ;;  %v415_v25 = vld [vmem:[#allocation2 + $0x3d8] sm:$0xff]  ;;  %7655 = vst [vmem:[#allocation39_spill] sm:$0xff] %v5369_v41 }
  0xd4   : > { %v414_v39 = vld [vmem:[#allocation2 + $0x3d0] sm:$0xff]  ;;  %v5378_v42 = vcombine.high %v407_v26, %v415_v25  ;;  %v5385_v60 = vcombine.low %v407_v26, %v415_v25 }
  0xd5   : > { %v5375_v12 = vcombine.high %v406_v40, %v414_v39  ;;  %v5381_v3 = vcombine.low %v406_v40, %v414_v39 }
  0xd6   : > { %1158 = vmatpush1.bf16.msra.mxu0 %v5345_v51  ;;  %1199 = vmatpush1.bf16.msra.mxu1 %v5349_v57  ;;  %7658 = vst [vmem:[#allocation42_spill] sm:$0xff] %v5378_v42  ;;  %v297_v57 = vld [vmem:[#allocation2 + $0x28] sm:$0xff]  ;;  %7660 = vst [vmem:[#allocation44_spill] sm:$0xff] %v5385_v60 }
  0xd7   : > { %1159 = vmatprep.subr.bf16.mxu0 %v5351_v58  ;;  %1200 = vmatprep.subr.bf16.mxu1 %v5354_v59  ;;  %7657 = vst [vmem:[#allocation41_spill] sm:$0xff] %v5375_v12  ;;  %v296_v59 = vld [vmem:[#allocation2 + $0x20] sm:$0xff]  ;;  %v305_v51 = vld [vmem:[#allocation2 + $0x68] sm:$0xff]  ;;  %7659 = vst [vmem:[#allocation43_spill] sm:$0xff] %v5381_v3 }
  0xd8   : > { %v304_v58 = vld [vmem:[#allocation2 + $0x60] sm:$0xff]  ;;  %v5390_v5 = vcombine.high %v297_v57, %v305_v51  ;;  %v5397_v25 = vcombine.low %v297_v57, %v305_v51 }
  0xd9   : > { %v5387_v61 = vcombine.high %v296_v59, %v304_v58  ;;  %v5393_v39 = vcombine.low %v296_v59, %v304_v58 }
  0xda   : > { %1160 = vmatpush1.bf16.msra.mxu0 %v5357_v7  ;;  %1201 = vmatpush1.bf16.msra.mxu1 %v5361_v8  ;;  %7662 = vst [vmem:[#allocation46_spill] sm:$0xff] %v5390_v5  ;;  %v313_v8 = vld [vmem:[#allocation2 + $0xa8] sm:$0xff]  ;;  %7664 = vst [vmem:[#allocation48_spill] sm:$0xff] %v5397_v25 }
  0xdb   : > { %1161 = vmatprep.subr.bf16.mxu0 %v5363_v18  ;;  %1202 = vmatprep.subr.bf16.mxu1 %v5366_v23  ;;  %7661 = vst [vmem:[#allocation45_spill] sm:$0xff] %v5387_v61  ;;  %v312_v23 = vld [vmem:[#allocation2 + $0xa0] sm:$0xff]  ;;  %v321_v7 = vld [vmem:[#allocation2 + $0xe8] sm:$0xff]  ;;  %7663 = vst [vmem:[#allocation47_spill] sm:$0xff] %v5393_v39 }
  0xdc   : > { %v320_v18 = vld [vmem:[#allocation2 + $0xe0] sm:$0xff]  ;;  %v5402_v40 = vcombine.high %v313_v8, %v321_v7  ;;  %v5411_v51 = vcombine.low %v313_v8, %v321_v7 }
  0xdd   : > { %v5399_v26 = vcombine.high %v312_v23, %v320_v18  ;;  %v5407_v58 = vcombine.low %v312_v23, %v320_v18 }
  0xde   : > { %1162 = vmatpush1.bf16.msra.mxu0 %v5369_v41  ;;  %1203 = vmatpush1.bf16.msra.mxu1 %v5373_v0  ;;  %7666 = vst [vmem:[#allocation50_spill] sm:$0xff] %v5402_v40  ;;  %v329_v0 = vld [vmem:[#allocation2 + $0x128] sm:$0xff]  ;;  %7668 = vst [vmem:[#allocation52_spill] sm:$0xff] %v5411_v51 }
  0xdf   : > { %1163 = vmatprep.subr.bf16.mxu0 %v5375_v12  ;;  %1204 = vmatprep.subr.bf16.mxu1 %v5378_v42  ;;  %7665 = vst [vmem:[#allocation49_spill] sm:$0xff] %v5399_v26  ;;  %v328_v42 = vld [vmem:[#allocation2 + $0x120] sm:$0xff]  ;;  %7667 = vst [vmem:[#allocation51_spill] sm:$0xff] %v5407_v58  ;;  %v345_v41 = vld [vmem:[#allocation2 + $0x1a8] sm:$0xff] }
  0xe0   : > { %v336_v12 = vld [vmem:[#allocation2 + $0x160] sm:$0xff] }
  0xe1   : > { %v5413_v57 = vcombine.high %v328_v42, %v336_v12  ;;  %v5421_v18 = vcombine.low %v328_v42, %v336_v12 }
  0xe2   : > { %1164 = vmatpush1.bf16.msra.mxu0 %v5381_v3  ;;  %1205 = vmatpush1.bf16.msra.mxu1 %v5385_v60  ;;  %v337_v3 = vld [vmem:[#allocation2 + $0x168] sm:$0xff]  ;;  %v7671_v60 = vmov 0  }
  0xe3   : > { %1231 = vmatprep.subr.bf16.mxu0 %v5387_v61  ;;  %1272 = vmatprep.subr.bf16.mxu1 %v5390_v5  ;;  %7669 = vst [vmem:[#allocation53_spill] sm:$0xff] %v5413_v57  ;;  %v5416_v59 = vcombine.high %v329_v0, %v337_v3  ;;  %v344_v5 = vld [vmem:[#allocation2 + $0x1a0] sm:$0xff]  ;;  %7672 = vst [vmem:[#allocation55_spill] sm:$0xff] %v5421_v18  ;;  %v5425_v7 = vcombine.low %v329_v0, %v337_v3 }
  0xe4   : > { %v352_v61 = vld [vmem:[#allocation2 + $0x1e0] sm:$0xff] }
  0xe5   : > { %1182 = vmatmul.mubr.bf16.vlgmr.msra.gmra.mrb[4].mxu0 %v5290_v24  ;;  %1223 = vmatmul.mubr.bf16.vlgmr.msra.gmra.mrb[4].mxu1 %v5290_v24  ;;  %7670 = vst [vmem:[#allocation54_spill] sm:$0xff] %v5416_v59  ;;  %7673 = vst [vmem:[#allocation56_spill] sm:$0xff] %v5425_v7  ;;  %v5427_v8 = vcombine.high %v344_v5, %v352_v61  ;;  %v5433_v12 = vcombine.low %v344_v5, %v352_v61 }
  0xe6   : > { %1232 = vmatpush1.bf16.msra.mxu0 %v5393_v39  ;;  %1273 = vmatpush1.bf16.msra.mxu1 %v5397_v25  ;;  %v353_v39 = vld [vmem:[#allocation2 + $0x1e8] sm:$0xff] }
  0xe7   : > { %1233 = vmatprep.subr.bf16.mxu0 %v5399_v26  ;;  %1274 = vmatprep.subr.bf16.mxu1 %v5402_v40  ;;  %7674 = vst [vmem:[#allocation57_spill] sm:$0xff] %v5427_v8  ;;  %v5430_v23 = vcombine.high %v345_v41, %v353_v39  ;;  %v360_v40 = vld [vmem:[#allocation2 + $0x220] sm:$0xff]  ;;  %v361_v25 = vld [vmem:[#allocation2 + $0x228] sm:$0xff]  ;;  %7676 = vst [vmem:[#allocation59_spill] sm:$0xff] %v5433_v12  ;;  %v5437_v0 = vcombine.low %v345_v41, %v353_v39 }
  0xe8   : > { %1263 = vmatprep.mubr.bf16.mxu0 %v7671_v60  ;;  %1304 = vmatprep.mubr.bf16.mxu1 %v7671_v60  ;;  %v368_v26 = vld [vmem:[#allocation2 + $0x260] sm:$0xff]  ;;  %v5442_v3 = vcombine.high %v361_v25, %v369_v50  ;;  %v5449_v41 = vcombine.low %v361_v25, %v369_v50 }
  0xe9   : > { %7675 = vst [vmem:[#allocation58_spill] sm:$0xff] %v5430_v23  ;;  %7677 = vst [vmem:[#allocation60_spill] sm:$0xff] %v5437_v0  ;;  %v5439_v42 = vcombine.high %v360_v40, %v368_v26  ;;  %v5445_v61 = vcombine.low %v360_v40, %v368_v26 }
  0xea   : > { %1234 = vmatpush1.bf16.msra.mxu0 %v5407_v58  ;;  %1275 = vmatpush1.bf16.msra.mxu1 %v5411_v51  ;;  %7679 = vst [vmem:[#allocation62_spill] sm:$0xff] %v5442_v3  ;;  %v377_v51 = vld [vmem:[#allocation2 + $0x2a8] sm:$0xff]  ;;  %7681 = vst [vmem:[#allocation64_spill] sm:$0xff] %v5449_v41 }
  0xeb   : > { %1235 = vmatprep.subr.bf16.mxu0 %v5413_v57  ;;  %1276 = vmatprep.subr.bf16.mxu1 %v5416_v59  ;;  %7678 = vst [vmem:[#allocation61_spill] sm:$0xff] %v5439_v42  ;;  %v376_v59 = vld [vmem:[#allocation2 + $0x2a0] sm:$0xff]  ;;  %v385_v58 = vld [vmem:[#allocation2 + $0x2e8] sm:$0xff]  ;;  %7680 = vst [vmem:[#allocation63_spill] sm:$0xff] %v5445_v61 }
  0xec   : > { %v384_v57 = vld [vmem:[#allocation2 + $0x2e0] sm:$0xff]  ;;  %v5454_v39 = vcombine.high %v377_v51, %v385_v58  ;;  %v5461_v50 = vcombine.low %v377_v51, %v385_v58 }
  0xed   : > { %v5451_v5 = vcombine.high %v376_v59, %v384_v57  ;;  %v5457_v26 = vcombine.low %v376_v59, %v384_v57 }
  0xee   : > { %1236 = vmatpush1.bf16.msra.mxu0 %v5421_v18  ;;  %1277 = vmatpush1.bf16.msra.mxu1 %v5425_v7  ;;  %7683 = vst [vmem:[#allocation66_spill] sm:$0xff] %v5454_v39  ;;  %v393_v7 = vld [vmem:[#allocation2 + $0x328] sm:$0xff]  ;;  %7685 = vst [vmem:[#allocation68_spill] sm:$0xff] %v5461_v50 }
  0xef   : > { %1237 = vmatprep.subr.bf16.mxu0 %v5427_v8  ;;  %1278 = vmatprep.subr.bf16.mxu1 %v5430_v23  ;;  %7682 = vst [vmem:[#allocation65_spill] sm:$0xff] %v5451_v5  ;;  %v392_v23 = vld [vmem:[#allocation2 + $0x320] sm:$0xff]  ;;  %v401_v18 = vld [vmem:[#allocation2 + $0x368] sm:$0xff]  ;;  %7684 = vst [vmem:[#allocation67_spill] sm:$0xff] %v5457_v26 }
  0xf0   : > { %v400_v8 = vld [vmem:[#allocation2 + $0x360] sm:$0xff]  ;;  %v5466_v40 = vcombine.high %v393_v7, %v401_v18  ;;  %v5473_v58 = vcombine.low %v393_v7, %v401_v18 }
  0xf1   : > { %v5463_v25 = vcombine.high %v392_v23, %v400_v8  ;;  %v5469_v57 = vcombine.low %v392_v23, %v400_v8 }
  0xf2   : > { %1238 = vmatpush1.bf16.msra.mxu0 %v5433_v12  ;;  %1279 = vmatpush1.bf16.msra.mxu1 %v5437_v0  ;;  %7687 = vst [vmem:[#allocation70_spill] sm:$0xff] %v5466_v40  ;;  %v409_v0 = vld [vmem:[#allocation2 + $0x3a8] sm:$0xff]  ;;  %7689 = vst [vmem:[#allocation72_spill] sm:$0xff] %v5473_v58 }
  0xf3   : > { %1239 = vmatprep.subr.bf16.mxu0 %v5439_v42  ;;  %1280 = vmatprep.subr.bf16.mxu1 %v5442_v3  ;;  %7686 = vst [vmem:[#allocation69_spill] sm:$0xff] %v5463_v25  ;;  %v408_v3 = vld [vmem:[#allocation2 + $0x3a0] sm:$0xff]  ;;  %v417_v12 = vld [vmem:[#allocation2 + $0x3e8] sm:$0xff]  ;;  %7688 = vst [vmem:[#allocation71_spill] sm:$0xff] %v5469_v57 }
  0xf4   : > { %v416_v42 = vld [vmem:[#allocation2 + $0x3e0] sm:$0xff]  ;;  %v5478_v59 = vcombine.high %v409_v0, %v417_v12  ;;  %v5485_v18 = vcombine.low %v409_v0, %v417_v12 }
  0xf5   : > { %v5475_v51 = vcombine.high %v408_v3, %v416_v42  ;;  %v5481_v8 = vcombine.low %v408_v3, %v416_v42 }
  0xf6   : > { %1240 = vmatpush1.bf16.msra.mxu0 %v5445_v61  ;;  %1281 = vmatpush1.bf16.msra.mxu1 %v5449_v41  ;;  %7691 = vst [vmem:[#allocation74_spill] sm:$0xff] %v5478_v59  ;;  %v299_v41 = vld [vmem:[#allocation2 + $0x38] sm:$0xff]  ;;  %7693 = vst [vmem:[#allocation76_spill] sm:$0xff] %v5485_v18 }
  0xf7   : > { %1241 = vmatprep.subr.bf16.mxu0 %v5451_v5  ;;  %1282 = vmatprep.subr.bf16.mxu1 %v5454_v39  ;;  %7690 = vst [vmem:[#allocation73_spill] sm:$0xff] %v5475_v51  ;;  %v298_v39 = vld [vmem:[#allocation2 + $0x30] sm:$0xff]  ;;  %v307_v61 = vld [vmem:[#allocation2 + $0x78] sm:$0xff]  ;;  %7692 = vst [vmem:[#allocation75_spill] sm:$0xff] %v5481_v8 }
  0xf8   : > { %v306_v5 = vld [vmem:[#allocation2 + $0x70] sm:$0xff]  ;;  %v5490_v23 = vcombine.high %v299_v41, %v307_v61  ;;  %v5497_v12 = vcombine.low %v299_v41, %v307_v61 }
  0xf9   : > { %v5487_v7 = vcombine.high %v298_v39, %v306_v5  ;;  %v5493_v42 = vcombine.low %v298_v39, %v306_v5 }
  0xfa   : > { %1242 = vmatpush1.bf16.msra.mxu0 %v5457_v26  ;;  %1283 = vmatpush1.bf16.msra.mxu1 %v5461_v50  ;;  %7695 = vst [vmem:[#allocation78_spill] sm:$0xff] %v5490_v23  ;;  %v315_v50 = vld [vmem:[#allocation2 + $0xb8] sm:$0xff]  ;;  %7697 = vst [vmem:[#allocation80_spill] sm:$0xff] %v5497_v12 }
  0xfb   : > { %1243 = vmatprep.subr.bf16.mxu0 %v5463_v25  ;;  %1284 = vmatprep.subr.bf16.mxu1 %v5466_v40  ;;  %7694 = vst [vmem:[#allocation77_spill] sm:$0xff] %v5487_v7  ;;  %v314_v40 = vld [vmem:[#allocation2 + $0xb0] sm:$0xff]  ;;  %v323_v26 = vld [vmem:[#allocation2 + $0xf8] sm:$0xff]  ;;  %7696 = vst [vmem:[#allocation79_spill] sm:$0xff] %v5493_v42 }
  0xfc   : > { %v322_v25 = vld [vmem:[#allocation2 + $0xf0] sm:$0xff]  ;;  %v5502_v3 = vcombine.high %v315_v50, %v323_v26  ;;  %v5511_v61 = vcombine.low %v315_v50, %v323_v26 }
  0xfd   : > { %v5499_v0 = vcombine.high %v314_v40, %v322_v25  ;;  %v5507_v5 = vcombine.low %v314_v40, %v322_v25 }
  0xfe   : > { %1244 = vmatpush1.bf16.msra.mxu0 %v5469_v57  ;;  %1285 = vmatpush1.bf16.msra.mxu1 %v5473_v58  ;;  %7699 = vst [vmem:[#allocation82_spill] sm:$0xff] %v5502_v3  ;;  %v331_v58 = vld [vmem:[#allocation2 + $0x138] sm:$0xff]  ;;  %7701 = vst [vmem:[#allocation84_spill] sm:$0xff] %v5511_v61 }
  0xff   : > { %1245 = vmatprep.subr.bf16.mxu0 %v5475_v51  ;;  %1286 = vmatprep.subr.bf16.mxu1 %v5478_v59  ;;  %7698 = vst [vmem:[#allocation81_spill] sm:$0xff] %v5499_v0  ;;  %v330_v59 = vld [vmem:[#allocation2 + $0x130] sm:$0xff]  ;;  %7700 = vst [vmem:[#allocation83_spill] sm:$0xff] %v5507_v5  ;;  %v371_v57 = vld [vmem:[#allocation2 + $0x278] sm:$0xff] }
 0x100   : > { %v338_v51 = vld [vmem:[#allocation2 + $0x170] sm:$0xff] }
 0x101   : > { %v5513_v41 = vcombine.high %v330_v59, %v338_v51  ;;  %v5521_v25 = vcombine.low %v330_v59, %v338_v51 }
 0x102   : > { %1246 = vmatpush1.bf16.msra.mxu0 %v5481_v8  ;;  %1287 = vmatpush1.bf16.msra.mxu1 %v5485_v18  ;;  %v339_v8 = vld [vmem:[#allocation2 + $0x178] sm:$0xff] }
 0x103   : > { %1313 = vmatprep.subr.bf16.mxu0 %v5487_v7  ;;  %1354 = vmatprep.subr.bf16.mxu1 %v5490_v23  ;;  %7702 = vst [vmem:[#allocation85_spill] sm:$0xff] %v5513_v41  ;;  %v5516_v39 = vcombine.high %v331_v58, %v339_v8  ;;  %v346_v23 = vld [vmem:[#allocation2 + $0x1b0] sm:$0xff]  ;;  %v347_v18 = vld [vmem:[#allocation2 + $0x1b8] sm:$0xff]  ;;  %7704 = vst [vmem:[#allocation87_spill] sm:$0xff] %v5521_v25  ;;  %v5525_v26 = vcombine.low %v331_v58, %v339_v8 }
 0x104   : > { %v354_v7 = vld [vmem:[#allocation2 + $0x1f0] sm:$0xff] }
 0x105   : > { %1264 = vmatmul.mubr.bf16.vlgmr.msra.gmra.mrb[8].mxu0 %v5290_v24  ;;  %1305 = vmatmul.mubr.bf16.vlgmr.msra.gmra.mrb[8].mxu1 %v5290_v24  ;;  %7703 = vst [vmem:[#allocation86_spill] sm:$0xff] %v5516_v39  ;;  %7705 = vst [vmem:[#allocation88_spill] sm:$0xff] %v5525_v26  ;;  %v5527_v50 = vcombine.high %v346_v23, %v354_v7  ;;  %v5533_v51 = vcombine.low %v346_v23, %v354_v7 }
 0x106   : > { %1314 = vmatpush1.bf16.msra.mxu0 %v5493_v42  ;;  %1355 = vmatpush1.bf16.msra.mxu1 %v5497_v12  ;;  %v355_v42 = vld [vmem:[#allocation2 + $0x1f8] sm:$0xff] }
 0x107   : > { %1315 = vmatprep.subr.bf16.mxu0 %v5499_v0  ;;  %1356 = vmatprep.subr.bf16.mxu1 %v5502_v3  ;;  %7706 = vst [vmem:[#allocation89_spill] sm:$0xff] %v5527_v50  ;;  %v5530_v40 = vcombine.high %v347_v18, %v355_v42  ;;  %v362_v3 = vld [vmem:[#allocation2 + $0x230] sm:$0xff]  ;;  %v363_v12 = vld [vmem:[#allocation2 + $0x238] sm:$0xff]  ;;  %7708 = vst [vmem:[#allocation91_spill] sm:$0xff] %v5533_v51  ;;  %v5537_v58 = vcombine.low %v347_v18, %v355_v42 }
 0x108   : > { %1345 = vmatprep.mubr.bf16.mxu0 %v7671_v60  ;;  %1386 = vmatprep.mubr.bf16.mxu1 %v7671_v60  ;;  %v370_v0 = vld [vmem:[#allocation2 + $0x270] sm:$0xff]  ;;  %v5542_v8 = vcombine.high %v363_v12, %v371_v57  ;;  %v5549_v18 = vcombine.low %v363_v12, %v371_v57 }
 0x109   : > { %7707 = vst [vmem:[#allocation90_spill] sm:$0xff] %v5530_v40  ;;  %7709 = vst [vmem:[#allocation92_spill] sm:$0xff] %v5537_v58  ;;  %v5539_v59 = vcombine.high %v362_v3, %v370_v0  ;;  %v5545_v7 = vcombine.low %v362_v3, %v370_v0 }
 0x10a   : > { %1316 = vmatpush1.bf16.msra.mxu0 %v5507_v5  ;;  %1357 = vmatpush1.bf16.msra.mxu1 %v5511_v61  ;;  %7711 = vst [vmem:[#allocation94_spill] sm:$0xff] %v5542_v8  ;;  %v379_v61 = vld [vmem:[#allocation2 + $0x2b8] sm:$0xff] }
 0x10b   : > { %1317 = vmatprep.subr.bf16.mxu0 %v5513_v41  ;;  %1358 = vmatprep.subr.bf16.mxu1 %v5516_v39  ;;  %7710 = vst [vmem:[#allocation93_spill] sm:$0xff] %v5539_v59  ;;  %v378_v39 = vld [vmem:[#allocation2 + $0x2b0] sm:$0xff]  ;;  %v387_v5 = vld [vmem:[#allocation2 + $0x2f8] sm:$0xff] }
 0x10c   : > { %v386_v41 = vld [vmem:[#allocation2 + $0x2f0] sm:$0xff]  ;;  %v5554_v42 = vcombine.high %v379_v61, %v387_v5  ;;  %v5561_v57 = vcombine.low %v379_v61, %v387_v5 }
 0x10d   : > { %v5551_v23 = vcombine.high %v378_v39, %v386_v41  ;;  %v5557_v0 = vcombine.low %v378_v39, %v386_v41 }
 0x10e   : > { %1318 = vmatpush1.bf16.msra.mxu0 %v5521_v25  ;;  %1359 = vmatpush1.bf16.msra.mxu1 %v5525_v26  ;;  %7712 = vst [vmem:[#allocation95_spill] sm:$0xff] %v5554_v42  ;;  %v395_v26 = vld [vmem:[#allocation2 + $0x338] sm:$0xff] }
 0x10f   : > { %1319 = vmatprep.subr.bf16.mxu0 %v5527_v50  ;;  %1360 = vmatprep.subr.bf16.mxu1 %v5530_v40  ;;  %v394_v40 = vld [vmem:[#allocation2 + $0x330] sm:$0xff]  ;;  %v403_v25 = vld [vmem:[#allocation2 + $0x378] sm:$0xff] }
 0x110   : > { %v402_v50 = vld [vmem:[#allocation2 + $0x370] sm:$0xff]  ;;  %v5566_v3 = vcombine.high %v395_v26, %v403_v25  ;;  %v5573_v5 = vcombine.low %v395_v26, %v403_v25  ;;  %v7713_v25 = vld [vmem:[#allocation22_spill] sm:$0xff] }
 0x111   : > { %v5563_v12 = vcombine.high %v394_v40, %v402_v50  ;;  %v5569_v41 = vcombine.low %v394_v40, %v402_v50  ;;  %v7714_v26 = vld [vmem:[#allocation23_spill] sm:$0xff]  ;;  %v7715_v40 = vld [vmem:[#allocation24_spill] sm:$0xff] }
 0x112   : > { %1320 = vmatpush1.bf16.msra.mxu0 %v5533_v51  ;;  %1361 = vmatpush1.bf16.msra.mxu1 %v5537_v58  ;;  %v411_v58 = vld [vmem:[#allocation2 + $0x3b8] sm:$0xff] }
 0x113   : > { %1321 = vmatprep.subr.bf16.mxu0 %v5539_v59  ;;  %1362 = vmatprep.subr.bf16.mxu1 %v5542_v8  ;;  %v410_v8 = vld [vmem:[#allocation2 + $0x3b0] sm:$0xff]  ;;  %v419_v51 = vld [vmem:[#allocation2 + $0x3f8] sm:$0xff] }
 0x114   : > { %v418_v59 = vld [vmem:[#allocation2 + $0x3f0] sm:$0xff]  ;;  %v5578_v39 = vcombine.high %v411_v58, %v419_v51  ;;  %v5585_v50 = vcombine.low %v411_v58, %v419_v51  ;;  %v7716_v51 = vld [vmem:[#allocation25_spill] sm:$0xff]  ;;  %v7717_v58 = vld [vmem:[#allocation26_spill] sm:$0xff] }
 0x115   : > { %v5575_v61 = vcombine.high %v410_v8, %v418_v59 }
 0x116   : > { %1322 = vmatpush1.bf16.msra.mxu0 %v5545_v7  ;;  %1363 = vmatpush1.bf16.msra.mxu1 %v5549_v18 }
 0x117   : > { %1323 = vmatprep.subr.bf16.mxu0 %v5551_v23  ;;  %1364 = vmatprep.subr.bf16.mxu1 %v5554_v42  ;;  %v5581_v42 = vcombine.low %v410_v8, %v418_v59  ;;  %v7718_v59 = vld [vmem:[#allocation27_spill] sm:$0xff]  ;;  %v7719_v8 = vld [vmem:[#allocation28_spill] sm:$0xff] }
 0x11a   : > { %1324 = vmatpush1.bf16.msra.mxu0 %v5557_v0  ;;  %1365 = vmatpush1.bf16.msra.mxu1 %v5561_v57 }
 0x11b   : > { %1325 = vmatprep.subr.bf16.mxu0 %v5563_v12  ;;  %1366 = vmatprep.subr.bf16.mxu1 %v5566_v3 }
 0x11e   : > { %1326 = vmatpush1.bf16.msra.mxu0 %v5569_v41  ;;  %1367 = vmatpush1.bf16.msra.mxu1 %v5573_v5 }
 0x11f   : > { %1327 = vmatprep.subr.bf16.mxu0 %v5575_v61  ;;  %1368 = vmatprep.subr.bf16.mxu1 %v5578_v39 }
 0x122   : > { %1328 = vmatpush1.bf16.msra.mxu0 %v5581_v42  ;;  %1369 = vmatpush1.bf16.msra.mxu1 %v5585_v50 }
 0x123   : > { %1395 = vmatprep.subr.bf16.mxu0 %v5184_v4  ;;  %1436 = vmatprep.subr.bf16.mxu1 %v5188_v9 }
 0x125   : > { %1346 = vmatmul.mubr.bf16.vlgmr.msra.gmra.mrb[12].mxu0 %v5290_v24  ;;  %1387 = vmatmul.mubr.bf16.vlgmr.msra.gmra.mrb[12].mxu1 %v5290_v24 }
 0x126   : > { %1396 = vmatpush1.bf16.msra.mxu0 %v5186_v6  ;;  %1437 = vmatpush1.bf16.msra.mxu1 %v5190_v10 }
 0x127   : > { %1397 = vmatprep.subr.bf16.mxu0 %v5192_v11  ;;  %1438 = vmatprep.subr.bf16.mxu1 %v5195_v15 }
 0x128   : > { %1427 = vmatprep.mubr.bf16.mxu0 %v7671_v60  ;;  %1468 = vmatprep.mubr.bf16.mxu1 %v7671_v60 }
 0x12a   : > { %1398 = vmatpush1.bf16.msra.mxu0 %v5199_v19  ;;  %1439 = vmatpush1.bf16.msra.mxu1 %v5203_v20 }
 0x12b   : > { %1399 = vmatprep.subr.bf16.mxu0 %v5205_v21  ;;  %1440 = vmatprep.subr.bf16.mxu1 %v5208_v22 }
 0x12e   : > { %1400 = vmatpush1.bf16.msra.mxu0 %v5211_v27  ;;  %1441 = vmatpush1.bf16.msra.mxu1 %v5215_v28 }
 0x12f   : > { %1401 = vmatprep.subr.bf16.mxu0 %v5217_v29  ;;  %1442 = vmatprep.subr.bf16.mxu1 %v5220_v30 }
 0x132   : > { %1402 = vmatpush1.bf16.msra.mxu0 %v5223_v35  ;;  %1443 = vmatpush1.bf16.msra.mxu1 %v5227_v36 }
 0x133   : > { %1403 = vmatprep.subr.bf16.mxu0 %v5229_v37  ;;  %1444 = vmatprep.subr.bf16.mxu1 %v5232_v38 }
 0x136   : > { %1404 = vmatpush1.bf16.msra.mxu0 %v5235_v43  ;;  %1445 = vmatpush1.bf16.msra.mxu1 %v5240_v45 }
 0x137   : > { %1405 = vmatprep.subr.bf16.mxu0 %v5242_v46  ;;  %1446 = vmatprep.subr.bf16.mxu1 %v5245_v47 }
 0x13a   : > { %1406 = vmatpush1.bf16.msra.mxu0 %v5250_v53  ;;  %1447 = vmatpush1.bf16.msra.mxu1 %v5254_v54 }
 0x13b   : > { %1407 = vmatprep.subr.bf16.mxu0 %v5256_v55  ;;  %1448 = vmatprep.subr.bf16.mxu1 %v5259_v56 }
 0x13e   : > { %1408 = vmatpush1.bf16.msra.mxu0 %v5263_v62  ;;  %1449 = vmatpush1.bf16.msra.mxu1 %v5267_v63 }
 0x13f   : > { %1409 = vmatprep.subr.bf16.mxu0 %v5269_v1  ;;  %1450 = vmatprep.subr.bf16.mxu1 %v5272_v2 }
 0x142   : > { %1410 = vmatpush1.bf16.msra.mxu0 %v5277_v13  ;;  %1451 = vmatpush1.bf16.msra.mxu1 %v5281_v14 }
 0x143   : > { %1477 = vmatprep.subr.bf16.mxu0 %v5283_v16  ;;  %1518 = vmatprep.subr.bf16.mxu1 %v5286_v17 }
 0x145   : > { %1428 = vmatmul.mubr.bf16.vlgmr.msra.gmra.mrb[0].mxu0 %v5247_v52  ;;  %1469 = vmatmul.mubr.bf16.vlgmr.msra.gmra.mrb[0].mxu1 %v5247_v52 }
 0x146   : > { %1478 = vmatpush1.bf16.msra.mxu0 %v5293_v31  ;;  %1519 = vmatpush1.bf16.msra.mxu1 %v5297_v32 }
 0x147   : > { %1479 = vmatprep.subr.bf16.mxu0 %v5299_v33  ;;  %1520 = vmatprep.subr.bf16.mxu1 %v5302_v34  ;;  %v7720_v34 = vld [vmem:[#allocation29_spill] sm:$0xff] }
 0x148   : > { %1509 = vmatprep.mubr.bf16.mxu0 %v7671_v60  ;;  %1550 = vmatprep.mubr.bf16.mxu1 %v7671_v60 }
 0x14a   : > { %1480 = vmatpush1.bf16.msra.mxu0 %v5307_v44  ;;  %1521 = vmatpush1.bf16.msra.mxu1 %v5311_v48  ;;  %v7721_v44 = vld [vmem:[#allocation30_spill] sm:$0xff]  ;;  %v7722_v48 = vld [vmem:[#allocation31_spill] sm:$0xff] }
 0x14b   : > { %1481 = vmatprep.subr.bf16.mxu0 %v5313_v49  ;;  %1522 = vmatprep.subr.bf16.mxu1 %v7713_v25  ;;  %v7723_v49 = vld [vmem:[#allocation32_spill] sm:$0xff]  ;;  %v7724_v25 = vld [vmem:[#allocation33_spill] sm:$0xff] }
 0x14e   : > { %1482 = vmatpush1.bf16.msra.mxu0 %v7714_v26  ;;  %1523 = vmatpush1.bf16.msra.mxu1 %v7715_v40  ;;  %v7725_v26 = vld [vmem:[#allocation34_spill] sm:$0xff]  ;;  %v7726_v40 = vld [vmem:[#allocation35_spill] sm:$0xff] }
 0x14f   : > { %1483 = vmatprep.subr.bf16.mxu0 %v7716_v51  ;;  %1524 = vmatprep.subr.bf16.mxu1 %v7717_v58  ;;  %v7727_v51 = vld [vmem:[#allocation36_spill] sm:$0xff]  ;;  %v7728_v58 = vld [vmem:[#allocation37_spill] sm:$0xff] }
 0x152   : > { %1484 = vmatpush1.bf16.msra.mxu0 %v7718_v59  ;;  %1525 = vmatpush1.bf16.msra.mxu1 %v7719_v8  ;;  %v7729_v59 = vld [vmem:[#allocation38_spill] sm:$0xff]  ;;  %v7730_v8 = vld [vmem:[#allocation39_spill] sm:$0xff] }
 0x153   : > { %1485 = vmatprep.subr.bf16.mxu0 %v7720_v34  ;;  %1526 = vmatprep.subr.bf16.mxu1 %v7721_v44  ;;  %v7731_v34 = vld [vmem:[#allocation40_spill] sm:$0xff]  ;;  %v7732_v44 = vld [vmem:[#allocation41_spill] sm:$0xff] }
 0x156   : > { %1486 = vmatpush1.bf16.msra.mxu0 %v7722_v48  ;;  %1527 = vmatpush1.bf16.msra.mxu1 %v7723_v49  ;;  %v7733_v48 = vld [vmem:[#allocation42_spill] sm:$0xff]  ;;  %v7734_v49 = vld [vmem:[#allocation43_spill] sm:$0xff] }
 0x157   : > { %1487 = vmatprep.subr.bf16.mxu0 %v7724_v25  ;;  %1528 = vmatprep.subr.bf16.mxu1 %v7725_v26  ;;  %v7735_v25 = vld [vmem:[#allocation44_spill] sm:$0xff]  ;;  %v7736_v26 = vld [vmem:[#allocation45_spill] sm:$0xff] }
 0x15a   : > { %1488 = vmatpush1.bf16.msra.mxu0 %v7726_v40  ;;  %1529 = vmatpush1.bf16.msra.mxu1 %v7727_v51  ;;  %v7737_v40 = vld [vmem:[#allocation46_spill] sm:$0xff]  ;;  %v7752_v51 = vld [vmem:[#allocation61_spill] sm:$0xff] }
 0x15b   : > { %1489 = vmatprep.subr.bf16.mxu0 %v7728_v58  ;;  %1530 = vmatprep.subr.bf16.mxu1 %v7729_v59  ;;  %v7738_v59 = vld [vmem:[#allocation47_spill] sm:$0xff]  ;;  %v7751_v58 = vld [vmem:[#allocation60_spill] sm:$0xff] }
 0x15e   : > { %1490 = vmatpush1.bf16.msra.mxu0 %v7730_v8  ;;  %1531 = vmatpush1.bf16.msra.mxu1 %v7731_v34  ;;  %v7739_v8 = vld [vmem:[#allocation48_spill] sm:$0xff]  ;;  %v7740_v34 = vld [vmem:[#allocation49_spill] sm:$0xff] }
 0x15f   : > { %1491 = vmatprep.subr.bf16.mxu0 %v7732_v44  ;;  %1532 = vmatprep.subr.bf16.mxu1 %v7733_v48  ;;  %v7741_v44 = vld [vmem:[#allocation50_spill] sm:$0xff]  ;;  %v7746_v48 = vld [vmem:[#allocation55_spill] sm:$0xff] }
 0x162   : > { %1492 = vmatpush1.bf16.msra.mxu0 %v7734_v49  ;;  %1533 = vmatpush1.bf16.msra.mxu1 %v7735_v25  ;;  %v7742_v25 = vld [vmem:[#allocation51_spill] sm:$0xff]  ;;  %v7745_v49 = vld [vmem:[#allocation54_spill] sm:$0xff] }
 0x163   : > { %1559 = vmatprep.subr.bf16.mxu0 %v7736_v26  ;;  %1600 = vmatprep.subr.bf16.mxu1 %v7737_v40  ;;  %v7743_v26 = vld [vmem:[#allocation52_spill] sm:$0xff]  ;;  %v7744_v40 = vld [vmem:[#allocation53_spill] sm:$0xff] }
 0x165   : > { %1510 = vmatmul.mubr.bf16.vlgmr.msra.gmra.mrb[4].mxu0 %v5247_v52  ;;  %1551 = vmatmul.mubr.bf16.vlgmr.msra.gmra.mrb[4].mxu1 %v5247_v52 }
 0x166   : > { %1560 = vmatpush1.bf16.msra.mxu0 %v7738_v59  ;;  %1601 = vmatpush1.bf16.msra.mxu1 %v7739_v8  ;;  %v7747_v59 = vld [vmem:[#allocation56_spill] sm:$0xff]  ;;  %v7748_v8 = vld [vmem:[#allocation57_spill] sm:$0xff] }
 0x167   : > { %1561 = vmatprep.subr.bf16.mxu0 %v7740_v34  ;;  %1602 = vmatprep.subr.bf16.mxu1 %v7741_v44  ;;  %v7749_v34 = vld [vmem:[#allocation58_spill] sm:$0xff]  ;;  %v7750_v44 = vld [vmem:[#allocation59_spill] sm:$0xff] }
 0x168   : > { %1591 = vmatprep.mubr.bf16.mxu0 %v7671_v60  ;;  %1632 = vmatprep.mubr.bf16.mxu1 %v7671_v60 }
 0x16a   : > { %1562 = vmatpush1.bf16.msra.mxu0 %v7742_v25  ;;  %1603 = vmatpush1.bf16.msra.mxu1 %v7743_v26  ;;  %v7753_v25 = vld [vmem:[#allocation62_spill] sm:$0xff]  ;;  %v7754_v26 = vld [vmem:[#allocation63_spill] sm:$0xff] }
 0x16b   : > { %1563 = vmatprep.subr.bf16.mxu0 %v7744_v40  ;;  %1604 = vmatprep.subr.bf16.mxu1 %v7745_v49  ;;  %v7755_v40 = vld [vmem:[#allocation64_spill] sm:$0xff]  ;;  %v7756_v49 = vld [vmem:[#allocation65_spill] sm:$0xff] }
 0x16e   : > { %1564 = vmatpush1.bf16.msra.mxu0 %v7746_v48  ;;  %1605 = vmatpush1.bf16.msra.mxu1 %v7747_v59  ;;  %v7757_v48 = vld [vmem:[#allocation66_spill] sm:$0xff]  ;;  %v7758_v59 = vld [vmem:[#allocation67_spill] sm:$0xff] }
 0x16f   : > { %1565 = vmatprep.subr.bf16.mxu0 %v7748_v8  ;;  %1606 = vmatprep.subr.bf16.mxu1 %v7749_v34  ;;  %v7759_v8 = vld [vmem:[#allocation68_spill] sm:$0xff]  ;;  %v7760_v34 = vld [vmem:[#allocation69_spill] sm:$0xff] }
 0x172   : > { %1566 = vmatpush1.bf16.msra.mxu0 %v7750_v44  ;;  %1607 = vmatpush1.bf16.msra.mxu1 %v7751_v58  ;;  %v7761_v44 = vld [vmem:[#allocation70_spill] sm:$0xff]  ;;  %v7762_v58 = vld [vmem:[#allocation71_spill] sm:$0xff] }
 0x173   : > { %1567 = vmatprep.subr.bf16.mxu0 %v7752_v51  ;;  %1608 = vmatprep.subr.bf16.mxu1 %v7753_v25  ;;  %v7763_v51 = vld [vmem:[#allocation72_spill] sm:$0xff]  ;;  %v7764_v25 = vld [vmem:[#allocation73_spill] sm:$0xff] }
 0x176   : > { %1568 = vmatpush1.bf16.msra.mxu0 %v7754_v26  ;;  %1609 = vmatpush1.bf16.msra.mxu1 %v7755_v40  ;;  %v7765_v26 = vld [vmem:[#allocation74_spill] sm:$0xff]  ;;  %v7766_v40 = vld [vmem:[#allocation75_spill] sm:$0xff] }
 0x177   : > { %1569 = vmatprep.subr.bf16.mxu0 %v7756_v49  ;;  %1610 = vmatprep.subr.bf16.mxu1 %v7757_v48  ;;  %v7767_v49 = vld [vmem:[#allocation76_spill] sm:$0xff]  ;;  %v7768_v48 = vld [vmem:[#allocation77_spill] sm:$0xff] }
 0x17a   : > { %1570 = vmatpush1.bf16.msra.mxu0 %v7758_v59  ;;  %1611 = vmatpush1.bf16.msra.mxu1 %v7759_v8  ;;  %v7769_v59 = vld [vmem:[#allocation78_spill] sm:$0xff]  ;;  %v7784_v8 = vld [vmem:[#allocation93_spill] sm:$0xff] }
 0x17b   : > { %1571 = vmatprep.subr.bf16.mxu0 %v7760_v34  ;;  %1612 = vmatprep.subr.bf16.mxu1 %v7761_v44  ;;  %v7770_v44 = vld [vmem:[#allocation79_spill] sm:$0xff]  ;;  %v7783_v34 = vld [vmem:[#allocation92_spill] sm:$0xff] }
 0x17e   : > { %1572 = vmatpush1.bf16.msra.mxu0 %v7762_v58  ;;  %1613 = vmatpush1.bf16.msra.mxu1 %v7763_v51  ;;  %v7771_v58 = vld [vmem:[#allocation80_spill] sm:$0xff]  ;;  %v7772_v51 = vld [vmem:[#allocation81_spill] sm:$0xff] }
 0x17f   : > { %1573 = vmatprep.subr.bf16.mxu0 %v7764_v25  ;;  %1614 = vmatprep.subr.bf16.mxu1 %v7765_v26  ;;  %v7773_v25 = vld [vmem:[#allocation82_spill] sm:$0xff]  ;;  %v7778_v26 = vld [vmem:[#allocation87_spill] sm:$0xff] }
 0x182   : > { %1574 = vmatpush1.bf16.msra.mxu0 %v7766_v40  ;;  %1615 = vmatpush1.bf16.msra.mxu1 %v7767_v49  ;;  %v7774_v49 = vld [vmem:[#allocation83_spill] sm:$0xff]  ;;  %v7777_v40 = vld [vmem:[#allocation86_spill] sm:$0xff] }
 0x183   : > { %1641 = vmatprep.subr.bf16.mxu0 %v7768_v48  ;;  %1682 = vmatprep.subr.bf16.mxu1 %v7769_v59  ;;  %v7775_v48 = vld [vmem:[#allocation84_spill] sm:$0xff]  ;;  %v7776_v59 = vld [vmem:[#allocation85_spill] sm:$0xff] }
 0x185   : > { %1592 = vmatmul.mubr.bf16.vlgmr.msra.gmra.mrb[8].mxu0 %v5247_v52  ;;  %1633 = vmatmul.mubr.bf16.vlgmr.msra.gmra.mrb[8].mxu1 %v5247_v52 }
 0x186   : > { %1642 = vmatpush1.bf16.msra.mxu0 %v7770_v44  ;;  %1683 = vmatpush1.bf16.msra.mxu1 %v7771_v58  ;;  %v7779_v44 = vld [vmem:[#allocation88_spill] sm:$0xff]  ;;  %v7780_v58 = vld [vmem:[#allocation89_spill] sm:$0xff] }
 0x187   : > { %1643 = vmatprep.subr.bf16.mxu0 %v7772_v51  ;;  %1684 = vmatprep.subr.bf16.mxu1 %v7773_v25  ;;  %v7781_v51 = vld [vmem:[#allocation90_spill] sm:$0xff]  ;;  %v7782_v25 = vld [vmem:[#allocation91_spill] sm:$0xff] }
 0x188   : > { %1673 = vmatprep.mubr.bf16.mxu0 %v7671_v60  ;;  %1714 = vmatprep.mubr.bf16.mxu1 %v7671_v60 }
 0x18a   : > { %1644 = vmatpush1.bf16.msra.mxu0 %v7774_v49  ;;  %1685 = vmatpush1.bf16.msra.mxu1 %v7775_v48  ;;  %v7785_v49 = vld [vmem:[#allocation94_spill] sm:$0xff] }
 0x18b   : > { %1645 = vmatprep.subr.bf16.mxu0 %v7776_v59  ;;  %1686 = vmatprep.subr.bf16.mxu1 %v7777_v40 }
 0x18e   : > { %1646 = vmatpush1.bf16.msra.mxu0 %v7778_v26  ;;  %1687 = vmatpush1.bf16.msra.mxu1 %v7779_v44  ;;  %v7786_v26 = vld [vmem:[#allocation95_spill] sm:$0xff] }
 0x18f   : > { %1647 = vmatprep.subr.bf16.mxu0 %v7780_v58  ;;  %1688 = vmatprep.subr.bf16.mxu1 %v7781_v51 }
 0x192   : > { %1648 = vmatpush1.bf16.msra.mxu0 %v7782_v25  ;;  %1689 = vmatpush1.bf16.msra.mxu1 %v7783_v34 }
 0x193   : > { %1649 = vmatprep.subr.bf16.mxu0 %v7784_v8  ;;  %1690 = vmatprep.subr.bf16.mxu1 %v7785_v49 }
 0x196   : > { %1650 = vmatpush1.bf16.msra.mxu0 %v5545_v7  ;;  %1691 = vmatpush1.bf16.msra.mxu1 %v5549_v18 }
 0x197   : > { %1651 = vmatprep.subr.bf16.mxu0 %v5551_v23  ;;  %1692 = vmatprep.subr.bf16.mxu1 %v7786_v26 }
 0x19a   : > { %1652 = vmatpush1.bf16.msra.mxu0 %v5557_v0  ;;  %1693 = vmatpush1.bf16.msra.mxu1 %v5561_v57 }
 0x19b   : > { %1653 = vmatprep.subr.bf16.mxu0 %v5563_v12  ;;  %1694 = vmatprep.subr.bf16.mxu1 %v5566_v3 }
 0x19e   : > { %1654 = vmatpush1.bf16.msra.mxu0 %v5569_v41  ;;  %1695 = vmatpush1.bf16.msra.mxu1 %v5573_v5 }
 0x19f   : > { %1655 = vmatprep.subr.bf16.mxu0 %v5575_v61  ;;  %1696 = vmatprep.subr.bf16.mxu1 %v5578_v39 }
 0x1a2   : > { %1656 = vmatpush1.bf16.msra.mxu0 %v5581_v42  ;;  %1697 = vmatpush1.bf16.msra.mxu1 %v5585_v50 }
 0x1a3   : > { %1723 = vmatprep.subr.bf16.mxu0 %v5184_v4  ;;  %1764 = vmatprep.subr.bf16.mxu1 %v5188_v9  ;;  %v424_v4 = vunpack.c.l.bf16 %v5290_v24  ;;  %v7819_v24 = vld [vmem:[#allocation49_spill] sm:$0xff] }
 0x1a5   : > { %1674 = vmatmul.mubr.bf16.vlgmr.msra.gmra.mrb[12].mxu0 %v5247_v52  ;;  %1715 = vmatmul.mubr.bf16.vlgmr.msra.gmra.mrb[12].mxu1 %v5247_v52  ;;  %v7806_v52 = vld [vmem:[#allocation36_spill] sm:$0xff] }
 0x1a6   : > { %1724 = vmatpush1.bf16.msra.mxu0 %v5186_v6  ;;  %1765 = vmatpush1.bf16.msra.mxu1 %v5190_v10  ;;  %v7787_v6 = vld [vmem:[#allocation17_spill] sm:$0xff] }
 0x1a7   : > { %1725 = vmatprep.subr.bf16.mxu0 %v5192_v11  ;;  %1766 = vmatprep.subr.bf16.mxu1 %v5195_v15  ;;  %v425_v9 = vsub.f32 %v7787_v6, %v424_v4  ;;  %v7788_v11 = vld [vmem:[#allocation18_spill] sm:$0xff]  ;;  %v7789_v15 = vld [vmem:[#allocation19_spill] sm:$0xff]  ;;  %v7823_v4 = vld [vmem:[#allocation53_spill] sm:$0xff] }
 0x1a8   : > { %1755 = vmatprep.mubr.bf16.mxu0 %v7671_v60  ;;  %1796 = vmatprep.mubr.bf16.mxu1 %v7671_v60  ;;  %v7824_v6 = vld [vmem:[#allocation54_spill] sm:$0xff] }
 0x1a9   : > { %v5770_v10 = vpack.c.bf16 %v425_v9, %v425_v9  ;;  %v7825_v9 = vld [vmem:[#allocation55_spill] sm:$0xff] }
 0x1aa   : > { %1726 = vmatpush1.bf16.msra.mxu0 %v5199_v19  ;;  %1767 = vmatpush1.bf16.msra.mxu1 %v5203_v20  ;;  %v7790_v19 = vld [vmem:[#allocation20_spill] sm:$0xff]  ;;  %v7791_v20 = vld [vmem:[#allocation21_spill] sm:$0xff] }
 0x1ab   : > { %1727 = vmatprep.subr.bf16.mxu0 %v5205_v21  ;;  %1768 = vmatprep.subr.bf16.mxu1 %v5208_v22  ;;  %v7792_v21 = vld [vmem:[#allocation22_spill] sm:$0xff]  ;;  %v7793_v22 = vld [vmem:[#allocation23_spill] sm:$0xff] }
 0x1ae   : > { %1728 = vmatpush1.bf16.msra.mxu0 %v5211_v27  ;;  %1769 = vmatpush1.bf16.msra.mxu1 %v5215_v28  ;;  %v7794_v27 = vld [vmem:[#allocation24_spill] sm:$0xff]  ;;  %v7795_v28 = vld [vmem:[#allocation25_spill] sm:$0xff] }
 0x1af   : > { %1729 = vmatprep.subr.bf16.mxu0 %v5217_v29  ;;  %1770 = vmatprep.subr.bf16.mxu1 %v5220_v30  ;;  %v7796_v29 = vld [vmem:[#allocation26_spill] sm:$0xff]  ;;  %v7797_v30 = vld [vmem:[#allocation27_spill] sm:$0xff] }
 0x1b2   : > { %1730 = vmatpush1.bf16.msra.mxu0 %v5223_v35  ;;  %1771 = vmatpush1.bf16.msra.mxu1 %v5227_v36  ;;  %v7798_v35 = vld [vmem:[#allocation28_spill] sm:$0xff]  ;;  %v7799_v36 = vld [vmem:[#allocation29_spill] sm:$0xff] }
 0x1b3   : > { %1731 = vmatprep.subr.bf16.mxu0 %v5229_v37  ;;  %1772 = vmatprep.subr.bf16.mxu1 %v5232_v38  ;;  %v7800_v37 = vld [vmem:[#allocation30_spill] sm:$0xff]  ;;  %v7801_v38 = vld [vmem:[#allocation31_spill] sm:$0xff] }
 0x1b6   : > { %1732 = vmatpush1.bf16.msra.mxu0 %v5235_v43  ;;  %1773 = vmatpush1.bf16.msra.mxu1 %v5240_v45  ;;  %v7802_v43 = vld [vmem:[#allocation32_spill] sm:$0xff]  ;;  %v7803_v45 = vld [vmem:[#allocation33_spill] sm:$0xff] }
 0x1b7   : > { %1733 = vmatprep.subr.bf16.mxu0 %v5242_v46  ;;  %1774 = vmatprep.subr.bf16.mxu1 %v5245_v47  ;;  %v7804_v46 = vld [vmem:[#allocation34_spill] sm:$0xff]  ;;  %v7805_v47 = vld [vmem:[#allocation35_spill] sm:$0xff] }
 0x1ba   : > { %1734 = vmatpush1.bf16.msra.mxu0 %v5250_v53  ;;  %1775 = vmatpush1.bf16.msra.mxu1 %v5254_v54  ;;  %v7807_v53 = vld [vmem:[#allocation37_spill] sm:$0xff]  ;;  %v7808_v54 = vld [vmem:[#allocation38_spill] sm:$0xff] }
 0x1bb   : > { %1735 = vmatprep.subr.bf16.mxu0 %v5256_v55  ;;  %1776 = vmatprep.subr.bf16.mxu1 %v5259_v56  ;;  %v7809_v55 = vld [vmem:[#allocation39_spill] sm:$0xff]  ;;  %v7810_v56 = vld [vmem:[#allocation40_spill] sm:$0xff] }
 0x1be   : > { %1736 = vmatpush1.bf16.msra.mxu0 %v5263_v62  ;;  %1777 = vmatpush1.bf16.msra.mxu1 %v5267_v63  ;;  %v7811_v62 = vld [vmem:[#allocation41_spill] sm:$0xff]  ;;  %v7812_v63 = vld [vmem:[#allocation42_spill] sm:$0xff] }
 0x1bf   : > { %1737 = vmatprep.subr.bf16.mxu0 %v5269_v1  ;;  %1778 = vmatprep.subr.bf16.mxu1 %v5272_v2  ;;  %v7813_v1 = vld [vmem:[#allocation43_spill] sm:$0xff]  ;;  %v7814_v2 = vld [vmem:[#allocation44_spill] sm:$0xff] }
 0x1c2   : > { %1738 = vmatpush1.bf16.msra.mxu0 %v5277_v13  ;;  %1779 = vmatpush1.bf16.msra.mxu1 %v5281_v14  ;;  %v7815_v13 = vld [vmem:[#allocation45_spill] sm:$0xff]  ;;  %v7816_v14 = vld [vmem:[#allocation46_spill] sm:$0xff] }
 0x1c3   : > { %1805 = vmatprep.subr.bf16.mxu0 %v5283_v16  ;;  %1846 = vmatprep.subr.bf16.mxu1 %v5286_v17  ;;  %v7817_v16 = vld [vmem:[#allocation47_spill] sm:$0xff]  ;;  %v7818_v17 = vld [vmem:[#allocation48_spill] sm:$0xff] }
 0x1c5   : > { %1756 = vmatmul.mubr.bf16.vlgmr.msra.gmra.mrb[0].mxu0 %v5770_v10  ;;  %1797 = vmatmul.mubr.bf16.vlgmr.msra.gmra.mrb[0].mxu1 %v5770_v10 }
 0x1c6   : > { %1806 = vmatpush1.bf16.msra.mxu0 %v5293_v31  ;;  %1847 = vmatpush1.bf16.msra.mxu1 %v5297_v32  ;;  %v7820_v31 = vld [vmem:[#allocation50_spill] sm:$0xff]  ;;  %v7821_v32 = vld [vmem:[#allocation51_spill] sm:$0xff] }
 0x1c7   : > { %1807 = vmatprep.subr.bf16.mxu0 %v5299_v33  ;;  %1848 = vmatprep.subr.bf16.mxu1 %v7788_v11  ;;  %v7822_v33 = vld [vmem:[#allocation52_spill] sm:$0xff] }
 0x1c8   : > { %1837 = vmatprep.mubr.bf16.mxu0 %v7671_v60  ;;  %1878 = vmatprep.mubr.bf16.mxu1 %v7671_v60  ;;  %v7826_v11 = vld [vmem:[#allocation56_spill] sm:$0xff] }
 0x1ca   : > { %1808 = vmatpush1.bf16.msra.mxu0 %v7789_v15  ;;  %1849 = vmatpush1.bf16.msra.mxu1 %v7790_v19  ;;  %v7827_v15 = vld [vmem:[#allocation57_spill] sm:$0xff]  ;;  %v7828_v19 = vld [vmem:[#allocation58_spill] sm:$0xff] }
 0x1cb   : > { %1809 = vmatprep.subr.bf16.mxu0 %v7791_v20  ;;  %1850 = vmatprep.subr.bf16.mxu1 %v7792_v21  ;;  %v7829_v20 = vld [vmem:[#allocation59_spill] sm:$0xff]  ;;  %v7830_v21 = vld [vmem:[#allocation60_spill] sm:$0xff] }
 0x1ce   : > { %1810 = vmatpush1.bf16.msra.mxu0 %v7793_v22  ;;  %1851 = vmatpush1.bf16.msra.mxu1 %v7794_v27  ;;  %v7831_v22 = vld [vmem:[#allocation61_spill] sm:$0xff]  ;;  %v7832_v27 = vld [vmem:[#allocation62_spill] sm:$0xff] }
 0x1cf   : > { %1811 = vmatprep.subr.bf16.mxu0 %v7795_v28  ;;  %1852 = vmatprep.subr.bf16.mxu1 %v7796_v29  ;;  %v7833_v28 = vld [vmem:[#allocation63_spill] sm:$0xff]  ;;  %v7834_v29 = vld [vmem:[#allocation64_spill] sm:$0xff] }
 0x1d2   : > { %1812 = vmatpush1.bf16.msra.mxu0 %v7797_v30  ;;  %1853 = vmatpush1.bf16.msra.mxu1 %v7798_v35  ;;  %v7835_v30 = vld [vmem:[#allocation65_spill] sm:$0xff]  ;;  %v7836_v35 = vld [vmem:[#allocation66_spill] sm:$0xff] }
 0x1d3   : > { %1813 = vmatprep.subr.bf16.mxu0 %v7799_v36  ;;  %1854 = vmatprep.subr.bf16.mxu1 %v7800_v37  ;;  %v7837_v36 = vld [vmem:[#allocation67_spill] sm:$0xff]  ;;  %v7838_v37 = vld [vmem:[#allocation68_spill] sm:$0xff] }
 0x1d6   : > { %1814 = vmatpush1.bf16.msra.mxu0 %v7801_v38  ;;  %1855 = vmatpush1.bf16.msra.mxu1 %v7802_v43  ;;  %v7839_v38 = vld [vmem:[#allocation69_spill] sm:$0xff]  ;;  %v7840_v43 = vld [vmem:[#allocation70_spill] sm:$0xff] }
 0x1d7   : > { %1815 = vmatprep.subr.bf16.mxu0 %v7803_v45  ;;  %1856 = vmatprep.subr.bf16.mxu1 %v7804_v46  ;;  %v7841_v45 = vld [vmem:[#allocation71_spill] sm:$0xff]  ;;  %v7842_v46 = vld [vmem:[#allocation72_spill] sm:$0xff] }
 0x1da   : > { %1816 = vmatpush1.bf16.msra.mxu0 %v7805_v47  ;;  %1857 = vmatpush1.bf16.msra.mxu1 %v7806_v52  ;;  %v7843_v47 = vld [vmem:[#allocation73_spill] sm:$0xff]  ;;  %v7844_v52 = vld [vmem:[#allocation74_spill] sm:$0xff] }
 0x1db   : > { %1817 = vmatprep.subr.bf16.mxu0 %v7807_v53  ;;  %1858 = vmatprep.subr.bf16.mxu1 %v7808_v54  ;;  %v7845_v53 = vld [vmem:[#allocation75_spill] sm:$0xff]  ;;  %v7846_v54 = vld [vmem:[#allocation76_spill] sm:$0xff] }
 0x1de   : > { %1818 = vmatpush1.bf16.msra.mxu0 %v7809_v55  ;;  %1859 = vmatpush1.bf16.msra.mxu1 %v7810_v56  ;;  %v7847_v55 = vld [vmem:[#allocation77_spill] sm:$0xff]  ;;  %v7848_v56 = vld [vmem:[#allocation78_spill] sm:$0xff] }
 0x1df   : > { %1819 = vmatprep.subr.bf16.mxu0 %v7811_v62  ;;  %1860 = vmatprep.subr.bf16.mxu1 %v7812_v63  ;;  %v7849_v62 = vld [vmem:[#allocation79_spill] sm:$0xff]  ;;  %v7850_v63 = vld [vmem:[#allocation80_spill] sm:$0xff] }
 0x1e2   : > { %1820 = vmatpush1.bf16.msra.mxu0 %v7813_v1  ;;  %1861 = vmatpush1.bf16.msra.mxu1 %v7814_v2  ;;  %v7851_v1 = vld [vmem:[#allocation81_spill] sm:$0xff]  ;;  %v7852_v2 = vld [vmem:[#allocation82_spill] sm:$0xff] }
 0x1e3   : > { %1887 = vmatprep.subr.bf16.mxu0 %v7815_v13  ;;  %1928 = vmatprep.subr.bf16.mxu1 %v7816_v14  ;;  %v7853_v13 = vld [vmem:[#allocation83_spill] sm:$0xff] }
 0x1e4   : > { %v7854_v14 = vld [vmem:[#allocation87_spill] sm:$0xff] }
 0x1e5   : > { %1838 = vmatmul.mubr.bf16.vlgmr.msra.gmra.mrb[4].mxu0 %v5770_v10  ;;  %1879 = vmatmul.mubr.bf16.vlgmr.msra.gmra.mrb[4].mxu1 %v5770_v10 }
 0x1e6   : > { %1888 = vmatpush1.bf16.msra.mxu0 %v7817_v16  ;;  %1929 = vmatpush1.bf16.msra.mxu1 %v7818_v17 }
 0x1e7   : > { %1889 = vmatprep.subr.bf16.mxu0 %v7819_v24  ;;  %1930 = vmatprep.subr.bf16.mxu1 %v7820_v31 }
 0x1e8   : > { %1919 = vmatprep.mubr.bf16.mxu0 %v7671_v60  ;;  %1960 = vmatprep.mubr.bf16.mxu1 %v7671_v60 }
 0x1ea   : > { %1890 = vmatpush1.bf16.msra.mxu0 %v7821_v32  ;;  %1931 = vmatpush1.bf16.msra.mxu1 %v7822_v33 }
 0x1eb   : > { %1891 = vmatprep.subr.bf16.mxu0 %v7823_v4  ;;  %1932 = vmatprep.subr.bf16.mxu1 %v7824_v6 }
 0x1ee   : > { %1892 = vmatpush1.bf16.msra.mxu0 %v7825_v9  ;;  %1933 = vmatpush1.bf16.msra.mxu1 %v7826_v11 }
 0x1ef   : > { %1893 = vmatprep.subr.bf16.mxu0 %v7827_v15  ;;  %1934 = vmatprep.subr.bf16.mxu1 %v7828_v19 }
 0x1f2   : > { %1894 = vmatpush1.bf16.msra.mxu0 %v7829_v20  ;;  %1935 = vmatpush1.bf16.msra.mxu1 %v7830_v21 }
 0x1f3   : > { %1895 = vmatprep.subr.bf16.mxu0 %v7831_v22  ;;  %1936 = vmatprep.subr.bf16.mxu1 %v7832_v27 }
 0x1f6   : > { %1896 = vmatpush1.bf16.msra.mxu0 %v7833_v28  ;;  %1937 = vmatpush1.bf16.msra.mxu1 %v7834_v29 }
 0x1f7   : > { %1897 = vmatprep.subr.bf16.mxu0 %v7835_v30  ;;  %1938 = vmatprep.subr.bf16.mxu1 %v7836_v35 }
 0x1fa   : > { %1898 = vmatpush1.bf16.msra.mxu0 %v7837_v36  ;;  %1939 = vmatpush1.bf16.msra.mxu1 %v7838_v37 }
 0x1fb   : > { %1899 = vmatprep.subr.bf16.mxu0 %v7839_v38  ;;  %1940 = vmatprep.subr.bf16.mxu1 %v7840_v43 }
 0x1fe   : > { %1900 = vmatpush1.bf16.msra.mxu0 %v7841_v45  ;;  %1941 = vmatpush1.bf16.msra.mxu1 %v7842_v46 }
 0x1ff   : > { %1901 = vmatprep.subr.bf16.mxu0 %v7843_v47  ;;  %1942 = vmatprep.subr.bf16.mxu1 %v7844_v52 }
 0x202   : > { %1902 = vmatpush1.bf16.msra.mxu0 %v7845_v53  ;;  %1943 = vmatpush1.bf16.msra.mxu1 %v7846_v54 }
 0x203   : > { %1969 = vmatprep.subr.bf16.mxu0 %v7847_v55  ;;  %2010 = vmatprep.subr.bf16.mxu1 %v7848_v56 }
 0x205   : > { %1920 = vmatmul.mubr.bf16.vlgmr.msra.gmra.mrb[8].mxu0 %v5770_v10  ;;  %1961 = vmatmul.mubr.bf16.vlgmr.msra.gmra.mrb[8].mxu1 %v5770_v10 }
 0x206   : > { %1970 = vmatpush1.bf16.msra.mxu0 %v7849_v62  ;;  %2011 = vmatpush1.bf16.msra.mxu1 %v7850_v63  ;;  %v4908_v63 = vmov 683565275  }
 0x207   : > { %1971 = vmatprep.subr.bf16.mxu0 %v7851_v1  ;;  %2012 = vmatprep.subr.bf16.mxu1 %v7852_v2 }
 0x208   : > { %2001 = vmatprep.mubr.bf16.mxu0 %v7671_v60  ;;  %2042 = vmatprep.mubr.bf16.mxu1 %v7671_v60 }
 0x20a   : > { %1972 = vmatpush1.bf16.msra.mxu0 %v7853_v13  ;;  %2013 = vmatpush1.bf16.msra.mxu1 %v7775_v48 }
 0x20b   : > { %1973 = vmatprep.subr.bf16.mxu0 %v7776_v59  ;;  %2014 = vmatprep.subr.bf16.mxu1 %v7777_v40 }
 0x20e   : > { %1974 = vmatpush1.bf16.msra.mxu0 %v7854_v14  ;;  %2015 = vmatpush1.bf16.msra.mxu1 %v7779_v44  ;;  %v4909_v14 = vmov 2475754826  }
 0x20f   : > { %1975 = vmatprep.subr.bf16.mxu0 %v7780_v58  ;;  %2016 = vmatprep.subr.bf16.mxu1 %v7781_v51 }
 0x212   : > { %1976 = vmatpush1.bf16.msra.mxu0 %v7782_v25  ;;  %2017 = vmatpush1.bf16.msra.mxu1 %v7783_v34  ;;  %v2071_v34 = vlaneseq }
 0x213   : > { %1977 = vmatprep.subr.bf16.mxu0 %v7784_v8  ;;  %2018 = vmatprep.subr.bf16.mxu1 %v7785_v49  ;;  %v5889_v49 = vld [vmem:[#allocation5] sm:$0xff] }
 0x214   : > { %v5884_v44 = vshrl.u32 %v2071_v34, 7 }
 0x216   : > { %1978 = vmatpush1.bf16.msra.mxu0 %v5545_v7  ;;  %2019 = vmatpush1.bf16.msra.mxu1 %v5549_v18  ;;  %v5887_v48 = vsub.s32 0, %v5884_v44  ;;  %v5892_v60 = vsub.s32 2, %v5884_v44  ;;  %v5895_v7 = vsub.s32 1, %v5884_v44  ;;  %v5897_v18 = vld [vmem:[#allocation7] sm:$0xff]  ;;  %v5914_v58 = vsub.s32 3, %v5884_v44 }
 0x217   : > { %1979 = vmatprep.subr.bf16.mxu0 %v5551_v23  ;;  %2020 = vmatprep.subr.bf16.mxu1 %v7786_v26 }
 0x218   : > { %v2074_v23 = vrot.slane %v5889_v49, %v5887_v48  ;;  %v2086_v9 = vrot.slane %v5889_v49, %v5914_v58  ;;  %v2188_v30 = vrot.slane %v5897_v18, %v5914_v58 }
 0x21a   : > { %1980 = vmatpush1.bf16.msra.mxu0 %v5557_v0  ;;  %2021 = vmatpush1.bf16.msra.mxu1 %v5561_v57  ;;  %v2078_v0 = vrot.slane %v5889_v49, %v5895_v7  ;;  %v2176_v57 = vrot.slane %v5897_v18, %v5887_v48 }
 0x21b   : > { %1981 = vmatprep.subr.bf16.mxu0 %v5563_v12  ;;  %2022 = vmatprep.subr.bf16.mxu1 %v5566_v3  ;;  %v2184_v3 = vrot.slane %v5897_v18, %v5892_v60 }
 0x21e   : > { %1982 = vmatpush1.bf16.msra.mxu0 %v5569_v41  ;;  %2023 = vmatpush1.bf16.msra.mxu1 %v5573_v5  ;;  %v2180_v41 = vrot.slane %v5897_v18, %v5895_v7 }
 0x21f   : > { %1983 = vmatprep.subr.bf16.mxu0 %v5575_v61  ;;  %2024 = vmatprep.subr.bf16.mxu1 %v5578_v39 }
 0x222   : > { %1984 = vmatpush1.bf16.msra.mxu0 %v5581_v42  ;;  %2025 = vmatpush1.bf16.msra.mxu1 %v5585_v50  ;;  %v2082_v42 = vrot.slane %v5889_v49, %v5892_v60 }
 0x225   : > { %2002 = vmatmul.mubr.bf16.vlgmr.msra.gmra.mrb[12].mxu0 %v5770_v10  ;;  %2043 = vmatmul.mubr.bf16.vlgmr.msra.gmra.mrb[12].mxu1 %v5770_v10 }
 0x298   : > { %v1757_v12 = vpop.f32.mrb[0].mxu0  ;;  %v1798_v61 = vpop.f32.mrb[0].mxu1 }
 0x299   : > { %v2151_v5 = vmul.f32 %v2074_v23, %v1757_v12  ;;  %v1759_v39 = vpop.f32.mrb[1].mxu0  ;;  %v2153_v50 = vmul.f32 %v2082_v42, %v1798_v61  ;;  %v1800_v26 = vpop.f32.mrb[1].mxu1  ;;  %v4910_v23 = vmov 2131351028   ;;  %v4912_v12 = vmov 920167782  }
 0x29a   : > { %v2152_v25 = vmul.f32 %v2078_v0, %v1759_v39  ;;  %v1761_v40 = vpop.f32.mrb[2].mxu0  ;;  %v1802_v59 = vpop.f32.mrb[2].mxu1  ;;  %v2154_v29 = vmul.f32 %v2086_v9, %v1800_v26  ;;  %v4911_v0 = vmov 2102212464  }
 0x29b   : > { %v5911_v51 = vadd.f32 %v2176_v57, %v2151_v5  ;;  %v1762_v8 = vpop.f32.mrb[3].mxu0  ;;  %v5916_v10 = vadd.f32 %v2184_v3, %v2153_v50  ;;  %v1803_v17 = vpop.f32.mrb[3].mxu1 }
 0x29c   : > { %v5918_v16 = vadd.f32 %v2180_v41, %v2152_v25  ;;  %v5934_v52 = vadd.f32 %v2188_v30, %v2154_v29  ;;  %v4913_v25 = vmov 1326507024  }
 0x29d   : > { %v2269_v24 = vand.u32 2147483647, %v5911_v51  ;;  %v2272_v31 = vand.u32 2139095040, %v5911_v51  ;;  %v2477_v32 = vand.u32 2147483647, %v5916_v10  ;;  %v2480_v33 = vand.u32 2139095040, %v5916_v10 }
 0x29e   : > { %v2376_v19 = vand.u32 2139095040, %v5918_v16  ;;  %v2373_v37 = vand.u32 2147483647, %v5918_v16  ;;  %vm2271_vm13 = vcmp.lt.s32.totalorder %v5911_v51, 0  ;;  %vm2479_vm14 = vcmp.lt.s32.totalorder %v5916_v10, 0 }
 0x29f   : > { %v2273_v4 = vshrl.u32 %v2272_v31, 23  ;;  %v2276_v6 = vand.u32 8388607, %v2269_v24  ;;  %v2481_v11 = vshrl.u32 %v2480_v33, 23  ;;  %v2484_v15 = vand.u32 8388607, %v2477_v32 }
 0x2a0   : > { %v2377_v22 = vshrl.u32 %v2376_v19, 23  ;;  %v5942_v55 = vand.u32 8388607, %v2373_v37 }
 0x2a1   : > { %v4314_v20 = vadd.s32 4294967169, %v2273_v4  ;;  %v4322_v21 = vadd.s32 4294967169, %v2481_v11  ;;  %v2277_v27 = vor.u32 8388608, %v2276_v6  ;;  %v2485_v35 = vor.u32 8388608, %v2484_v15 }
 0x2a2   : > { %v4318_v38 = vadd.s32 4294967169, %v2377_v22 }
 0x2a3   : > { %v2279_v28 = vadd.s32 1, %v4314_v20  ;;  %v2487_v36 = vadd.s32 1, %v4322_v21  ;;  %v5936_v53 = vshll.u32 %v2277_v27, 8  ;;  %v5938_v54 = vshll.u32 %v2485_v35, 8 }
 0x2a4   : > { %v5944_v56 = vadd.s32 1, %v4318_v38 }
 0x2a5   : > { %vm2280_vm0 = vcmp.gt.s32.totalorder %v2279_v28, 0  ;;  %vm2488_vm1 = vcmp.gt.s32.totalorder %v2487_v36, 0 }
 0x2a6   : > { %v2281_v43 = vsel %vm2280_vm0, %v2279_v28, 0  ;;  %v2489_v47 = vsel %vm2488_vm1, %v2487_v36, 0  ;;  %vm2384_vm6 = vcmp.gt.s32.totalorder %v5944_v56, 0  ;;  %vm6092_vm1 = vcmp.le.f32.partialorder %v2269_v24, 0.7853982 }
 0x2a7   : > { %v2282_v45 = vshrl.u32 %v2281_v43, 5  ;;  %v2283_v46 = vand.u32 31, %v2281_v43  ;;  %v5947_v2 = vshrl.u32 %v2489_v47, 5  ;;  %v2491_v13 = vand.u32 31, %v2489_v47 }
 0x2a9   : > { %v2284_v62 = vsub.s32 32, %v2283_v46  ;;  %v2286_v1 = vshll.u32 %v4908_v63, %v2283_v46  ;;  %v2289_v34 = vshll.u32 %v4909_v14, %v2283_v46  ;;  %v2292_v42 = vshll.u32 %v4910_v23, %v2283_v46 }
 0x2aa   : > { %v2295_v57 = vshll.u32 %v4911_v0, %v2283_v46  ;;  %v2298_v3 = vshll.u32 %v4912_v12, %v2283_v46  ;;  %vm2301_vm2 = vcmp.lt.s32.totalorder %v2282_v45, 1  ;;  %vm2302_vm3 = vcmp.lt.s32.totalorder %v2282_v45, 2 }
 0x2ab   : > { %v2287_v41 = vshrl.u32 %v4909_v14, %v2284_v62  ;;  %v2290_v5 = vshrl.u32 %v4910_v23, %v2284_v62  ;;  %v2293_v61 = vshrl.u32 %v4911_v0, %v2284_v62  ;;  %v2285_v39 = vshrl.u32 %v4908_v63, %v2284_v62 }
 0x2ac   : > { %v2296_v50 = vshrl.u32 %v4912_v12, %v2284_v62  ;;  %v2299_v26 = vshrl.u32 %v4913_v25, %v2284_v62  ;;  %v2492_v17 = vsub.s32 32, %v2491_v13  ;;  %vm2303_vm4 = vcmp.lt.s32.totalorder %v2282_v45, 3 }
 0x2ad   : > { %v2288_v40 = vor.u32 %v2287_v41, %v2286_v1  ;;  %v2291_v59 = vor.u32 %v2290_v5, %v2289_v34  ;;  %v2294_v8 = vor.u32 %v2293_v61, %v2292_v42  ;;  %vm2304_vm5 = vcmp.lt.s32.totalorder %v2282_v45, 4 }
 0x2ae   : > { %v2297_v31 = vor.u32 %v2296_v50, %v2295_v57  ;;  %v2300_v33 = vor.u32 %v2299_v26, %v2298_v3  ;;  %v2494_v21 = vshll.u32 %v4908_v63, %v2491_v13  ;;  %v2495_v28 = vshrl.u32 %v4909_v14, %v2492_v17 }
 0x2af   : > { %v2305_v4 = vsel %vm2301_vm2, %v2285_v39, %v2288_v40  ;;  %v2306_v6 = vsel %vm2304_vm5, %v2294_v8, 2102212464  ;;  %v2309_v9 = vsel %vm2301_vm2, %v2288_v40, %v2291_v59  ;;  %v2313_v11 = vsel %vm2301_vm2, %v2291_v59, %v2294_v8 }
 0x2b0   : > { %v2307_v15 = vsel %vm2303_vm4, %v2291_v59, %v2306_v6  ;;  %v2310_v19 = vsel %vm2304_vm5, %v2297_v31, 920167782  ;;  %v2314_v20 = vsel %vm2304_vm5, %v2300_v33, 1326507024  ;;  %v2497_v29 = vshll.u32 %v4909_v14, %v2491_v13 }
 0x2b1   : > { %v2311_v22 = vsel %vm2303_vm4, %v2294_v8, %v2310_v19  ;;  %v2315_v27 = vsel %vm2303_vm4, %v2297_v31, %v2314_v20  ;;  %v2308_v30 = vsel %vm2302_vm3, %v2305_v4, %v2307_v15  ;;  %v2498_v38 = vshrl.u32 %v4910_v23, %v2492_v17 }
 0x2b2   : > { %v2312_v35 = vsel %vm2302_vm3, %v2309_v9, %v2311_v22  ;;  %v2316_v36 = vsel %vm2302_vm3, %v2313_v11, %v2315_v27  ;;  %v2496_v1 = vor.u32 %v2495_v28, %v2494_v21  ;;  %v2500_v42 = vshll.u32 %v4910_v23, %v2491_v13 }
 0x2b3   : > { %v5971_v43 = vmul.u32.u64.low %v5936_v53, %v2316_v36  ;;  %v5972_v46 = vmul.u32.u64.high %v5936_v53, %v2316_v36, %v5971_v43  ;;  %v5975_v47 = vmul.u32.u64.low %v5936_v53, %v2312_v35  ;;  %v5976_v62 = vmul.u32.u64.high %v5936_v53, %v2312_v35, %v5975_v47  ;;  %v6020_v36 = vld [vmem:[#allocation8] sm:$0xff] }
 0x2b4   : > { %v2499_v34 = vor.u32 %v2498_v38, %v2497_v29  ;;  %v2501_v57 = vshrl.u32 %v4911_v0, %v2492_v17  ;;  %v2493_v45 = vshrl.u32 %v4908_v63, %v2492_v17  ;;  %v2503_v3 = vshll.u32 %v4911_v0, %v2491_v13 }
 0x2b5   : > { %v2504_v41 = vshrl.u32 %v4912_v12, %v2492_v17  ;;  %v2507_v5 = vshrl.u32 %v4913_v25, %v2492_v17  ;;  %v2324_v61 = vmul.u32 %v5936_v53, %v2308_v30  ;;  %v2506_v50 = vshll.u32 %v4912_v12, %v2491_v13 }
 0x2b6   : > { %v2502_v39 = vor.u32 %v2501_v57, %v2500_v42  ;;  %vm2509_vm7 = vcmp.lt.s32.totalorder %v5947_v2, 1  ;;  %vm2326_vm8 = vc.u32 %v5972_v46, %v5975_v47  ;;  %v2327_v26 = vadd.s32 1, %v5976_v62 }
 0x2b7   : > { %v2505_v40 = vor.u32 %v2504_v41, %v2503_v3  ;;  %vm2510_vm9 = vcmp.lt.s32.totalorder %v5947_v2, 2  ;;  %v2508_v59 = vor.u32 %v2507_v5, %v2506_v50  ;;  %vm2511_vm10 = vcmp.lt.s32.totalorder %v5947_v2, 3 }
 0x2b8   : > { %vm2512_vm11 = vcmp.lt.s32.totalorder %v5947_v2, 4  ;;  %v2517_v53 = vsel %vm2509_vm7, %v2496_v1, %v2499_v34  ;;  %v5996_v8 = vpop.f32.mrb[4].mxu0  ;;  %v2328_v13 = vsel %vm2326_vm8, %v2327_v26, %v5976_v62  ;;  %v2521_v33 = vsel %vm2509_vm7, %v2499_v34, %v2502_v39  ;;  %v6001_v4 = vpop.f32.mrb[4].mxu1 }
 0x2b9   : > { %v2514_v17 = vsel %vm2512_vm11, %v2502_v39, 2102212464  ;;  %v2518_v31 = vsel %vm2512_vm11, %v2505_v40, 920167782  ;;  %v6003_v6 = vpop.f32.mrb[5].mxu0  ;;  %v2329_v9 = vadd.s32 %v2328_v13, %v2324_v61  ;;  %v2513_v11 = vsel %vm2509_vm7, %v2493_v45, %v2496_v1  ;;  %v6009_v20 = vpop.f32.mrb[5].mxu1 }
 0x2ba   : > { %v2519_v15 = vsel %vm2511_vm10, %v2502_v39, %v2518_v31  ;;  %v2522_v19 = vsel %vm2512_vm11, %v2508_v59, 1326507024  ;;  %v1843_v21 = vpop.f32.mrb[6].mxu0  ;;  %v2515_v22 = vsel %vm2511_vm10, %v2499_v34, %v2514_v17  ;;  %v2385_v29 = vsel %vm2384_vm6, %v5944_v56, 0  ;;  %v1884_v30 = vpop.f32.mrb[6].mxu1 }
 0x2bb   : > { %v2520_v27 = vsel %vm2510_vm9, %v2517_v53, %v2519_v15  ;;  %v2523_v28 = vsel %vm2511_vm10, %v2505_v40, %v2522_v19  ;;  %v1844_v35 = vpop.f32.mrb[7].mxu0  ;;  %v2330_v38 = vadd.s32 536870912, %v2329_v9  ;;  %v1885_v34 = vpop.f32.mrb[7].mxu1  ;;  %v6034_v56 = vsub.s32 4, %v5884_v44 }
 0x2bc   : > { %v2524_v43 = vsel %vm2510_vm9, %v2521_v33, %v2523_v28  ;;  %v6025_v62 = vmul.u32.u64.low %v5938_v54, %v2520_v27  ;;  %v6026_v1 = vmul.u32.u64.high %v5938_v54, %v2520_v27, %v6025_v62  ;;  %v6037_v45 = vsub.s32 6, %v5884_v44 }
 0x2bd   : > { %v6030_v42 = vmul.u32.u64.low %v5938_v54, %v2524_v43  ;;  %v6031_v57 = vmul.u32.u64.high %v5938_v54, %v2524_v43, %v6030_v42  ;;  %v2331_v3 = vshrl.u32 %v2330_v38, 30  ;;  %v2516_v41 = vsel %vm2510_vm9, %v2513_v11, %v2515_v22 }
 0x2be   : > { %v2387_v5 = vand.u32 31, %v2385_v29  ;;  %v2381_v39 = vor.u32 8388608, %v5942_v55  ;;  %v2535_v26 = vadd.s32 1, %v6026_v1  ;;  %v2584_v59 = vand.u32 2139095040, %v5934_v52 }
 0x2bf   : > { %v2332_v50 = vshll.u32 %v2331_v3, 30  ;;  %v2532_v53 = vmul.u32 %v5938_v54, %v2516_v41  ;;  %vm2534_vm12 = vc.u32 %v6031_v57, %v6025_v62  ;;  %v2090_v2 = vrot.slane %v5889_v49, %v6034_v56 }
 0x2c0   : > { %v6045_v40 = vsub.s32 32, %v2387_v5  ;;  %v2536_v55 = vsel %vm2534_vm12, %v2535_v26, %v6026_v1  ;;  %v2192_v31 = vrot.slane %v5897_v18, %v6034_v56  ;;  %v6065_v15 = vshll.u32 %v2381_v39, 8 }
 0x2c1   : > { %v6055_v17 = vsub.s32 %v2329_v9, %v2332_v50  ;;  %v2537_v54 = vadd.s32 %v2536_v55, %v2532_v53  ;;  %v2581_v19 = vand.u32 2147483647, %v5934_v52  ;;  %v2585_v27 = vshrl.u32 %v2584_v59, 23 }
 0x2c2   : > { %v2391_v11 = vshrl.u32 %v4909_v14, %v6045_v40  ;;  %v2394_v21 = vshrl.u32 %v4910_v23, %v6045_v40  ;;  %v2397_v22 = vshrl.u32 %v4911_v0, %v6045_v40  ;;  %v2355_v28 = vsub.s32 4, %v2331_v3 }
 0x2c3   : > { %v2335_v9 = vsub.s32 0, %v6055_v17  ;;  %v2538_v30 = vadd.s32 536870912, %v2537_v54  ;;  %v6073_v35 = vshrl.u32 %v2385_v29, 5  ;;  %v2390_v38 = vshll.u32 %v4908_v63, %v2387_v5 }
 0x2c4   : > { %v2393_v1 = vshll.u32 %v4909_v14, %v2387_v5  ;;  %v2396_v34 = vshll.u32 %v4910_v23, %v2387_v5  ;;  %v2400_v42 = vshrl.u32 %v4912_v12, %v6045_v40  ;;  %v2399_v50 = vshll.u32 %v4911_v0, %v2387_v5 }
 0x2c5   : > { %v4315_v43 = vmin.u32 %v2335_v9, %v6055_v17  ;;  %v2539_v41 = vshrl.u32 %v2538_v30, 30  ;;  %v2392_v39 = vor.u32 %v2391_v11, %v2390_v38  ;;  %v2403_v26 = vshrl.u32 %v4913_v25, %v6045_v40 }
 0x2c6   : > { %v2395_v59 = vor.u32 %v2394_v21, %v2393_v1  ;;  %v2398_v53 = vor.u32 %v2397_v22, %v2396_v34  ;;  %v2402_v55 = vshll.u32 %v4912_v12, %v2387_v5  ;;  %v2325_v9 = vadd.s32 %v5975_v47, %v5972_v46 }
 0x2c7   : > { %v2337_v29 = vclz %v4315_v43  ;;  %v2540_v33 = vshll.u32 %v2539_v41, 30  ;;  %v2401_v13 = vor.u32 %v2400_v42, %v2399_v50  ;;  %v4326_v61 = vadd.s32 4294967169, %v2585_v27 }
 0x2c8   : > { %v2404_v11 = vor.u32 %v2403_v26, %v2402_v55  ;;  %vm2405_vm15 = vcmp.lt.s32.totalorder %v6073_v35, 1  ;;  %vm2408_vm0 = vcmp.lt.s32.totalorder %v6073_v35, 4  ;;  %vm2406_vm2 = vcmp.lt.s32.totalorder %v6073_v35, 2 }
 0x2c9   : > { %v4316_v30 = vadd.s32 4294967294, %v2337_v29  ;;  %v6096_v21 = vsub.s32 %v2537_v54, %v2540_v33  ;;  %vm2407_vm3 = vcmp.lt.s32.totalorder %v6073_v35, 3  ;;  %v2414_v46 = vsel %vm2408_vm0, %v2401_v13, 920167782 }
 0x2ca   : > { %v2356_v47 = vsel %vm2271_vm13, %v2355_v28, %v2331_v3  ;;  %vm6106_vm5 = vcmp.le.f32.partialorder %v2477_v32, 0.7853982  ;;  %v2413_v5 = vsel %vm2405_vm15, %v2392_v39, %v2395_v59  ;;  %v2415_v33 = vsel %vm2407_vm3, %v2398_v53, %v2414_v46 }
 0x2cb   : > { %vm4317_vm4 = vcmp.lt.s32.totalorder %v4316_v30, 0  ;;  %v2543_v22 = vsub.s32 0, %v6096_v21  ;;  %v2563_v27 = vsub.s32 4, %v2539_v41  ;;  %v2417_v43 = vsel %vm2405_vm15, %v2395_v59, %v2398_v53 }
 0x2cc   : > { %v2340_v54 = vsel %vm4317_vm4, 0, %v4316_v30  ;;  %v2410_v32 = vsel %vm2408_vm0, %v2398_v53, 2102212464  ;;  %v2418_v1 = vsel %vm2408_vm0, %v2404_v11, 1326507024  ;;  %v2389_v42 = vshrl.u32 %v4908_v63, %v6045_v40 }
 0x2cd   : > { %v2341_v3 = vsub.s32 32, %v2340_v54  ;;  %v2345_v28 = vsub.s32 4294967266, %v2340_v54  ;;  %v4323_v34 = vmin.u32 %v2543_v22, %v6096_v21  ;;  %v2416_v50 = vsel %vm2406_vm2, %v2413_v5, %v2415_v33 }
 0x2ce   : > { %v2419_v26 = vsel %vm2407_vm3, %v2401_v13, %v2418_v1  ;;  %v2342_v29 = vshll.u32 %v6055_v17, %v2340_v54  ;;  %v2564_v11 = vsel %vm2479_vm14, %v2563_v27, %v2539_v41  ;;  %v2409_v40 = vsel %vm2405_vm15, %v2389_v42, %v2392_v39 }
 0x2cf   : > { %v2343_v55 = vshrl.u32 %v2325_v9, %v2341_v3  ;;  %v2346_v30 = vadd.s32 127, %v2345_v28  ;;  %v2420_v53 = vsel %vm2406_vm2, %v2417_v43, %v2419_v26  ;;  %v2545_v46 = vclz %v4323_v34 }
 0x2d0   : > { %v2411_v5 = vsel %vm2407_vm3, %v2395_v59, %v2410_v32  ;;  %v6138_v13 = vmul.u32.u64.low %v6065_v15, %v2420_v53  ;;  %v6139_v17 = vmul.u32.u64.high %v6065_v15, %v2420_v53, %v6138_v13  ;;  %v2591_v3 = vadd.s32 1, %v4326_v61 }
 0x2d1   : > { %v2344_v33 = vor.u32 %v2343_v55, %v2342_v29  ;;  %v2347_v22 = vshll.u32 %v2346_v30, 23  ;;  %v4324_v9 = vadd.s32 4294967294, %v2545_v46  ;;  %v2358_v39 = vsel %vm6092_vm1, 0, %v2356_v47 }
 0x2d2   : > { %v6142_v54 = vmul.u32.u64.low %v6065_v15, %v2416_v50  ;;  %v6143_v43 = vmul.u32.u64.high %v6065_v15, %v2416_v50, %v6142_v54  ;;  %v2533_v59 = vadd.s32 %v6025_v62, %v6031_v57  ;;  %v2588_v27 = vand.u32 8388607, %v2581_v19 }
 0x2d3   : > { %v2348_v41 = vor.u32 4788187, %v2347_v22  ;;  %vm4325_vm6 = vcmp.lt.s32.totalorder %v4324_v9, 0  ;;  %v2566_v28 = vsel %vm6106_vm5, 0, %v2564_v11  ;;  %v2412_v32 = vsel %vm2406_vm2, %v2409_v40, %v2411_v5 }
 0x2d4   : > { %vm2592_vm7 = vcmp.gt.s32.totalorder %v2591_v3, 0  ;;  %v2351_v61 = vcvt.s32.f32 %v2344_v33  ;;  %v2548_v34 = vsel %vm4325_vm6, 0, %v4324_v9  ;;  %vm2430_vm8 = vc.u32 %v6139_v17, %v6142_v54 }
 0x2d5   : > { %v2349_v1 = vand.u32 2147483647, %v2348_v41  ;;  %v2362_v47 = vadd.s32 3, %v2358_v39  ;;  %v2549_v42 = vsub.s32 32, %v2548_v34  ;;  %v2553_v62 = vsub.s32 4294967266, %v2548_v34 }
 0x2d6   : > { %v2431_v57 = vadd.s32 1, %v6143_v43  ;;  %v2570_v26 = vadd.s32 3, %v2566_v28  ;;  %v2428_v29 = vmul.u32 %v6065_v15, %v2412_v32  ;;  %v2593_v55 = vsel %vm2592_vm7, %v2591_v3, 0 }
 0x2d7   : > { %v2352_v50 = vmul.f32 %v2351_v61, %v2349_v1  ;;  %v2550_v35 = vshll.u32 %v6096_v21, %v2548_v34  ;;  %v2551_v30 = vshrl.u32 %v2533_v59, %v2549_v42  ;;  %v2554_v53 = vadd.s32 127, %v2553_v62 }
 0x2d8   : > { %v2432_v46 = vsel %vm2430_vm8, %v2431_v57, %v6143_v43  ;;  %v3946_v40 = vrot.slane %v6020_v36, %v5892_v60  ;;  %v2595_v33 = vand.u32 31, %v2593_v55  ;;  %v6164_v22 = vand.u32 3, %v2362_v47  ;;  %v6180_v1 = vpop.f32.mrb[8].mxu0  ;;  %v6182_v61 = vpop.f32.mrb[8].mxu1 }
 0x2d9   : > { %v2353_v11 = vxor.u32 2147483648, %v2352_v50  ;;  %v2433_v5 = vadd.s32 %v2432_v46, %v2428_v29  ;;  %v2552_v13 = vor.u32 %v2551_v30, %v2550_v35  ;;  %v2555_v9 = vshll.u32 %v2554_v53, 23 }
 0x2da   : > { %v6167_v41 = vsub.s32 5, %v5884_v44  ;;  %v6171_v21 = vand.u32 3, %v2570_v26  ;;  %v2596_v43 = vsub.s32 32, %v2595_v33  ;;  %v2589_v28 = vor.u32 8388608, %v2588_v27 }
 0x2db   : > { %v2354_v15 = vsel %vm2271_vm13, %v2353_v11, %v2352_v50  ;;  %v2434_v3 = vadd.s32 536870912, %v2433_v5  ;;  %v2556_v59 = vor.u32 4788187, %v2555_v9  ;;  %v2155_v32 = vmul.f32 %v2090_v2, %v5996_v8 }
 0x2dc   : > { %v2357_v39 = vsel %vm6092_vm1, %v5911_v51, %v2354_v15  ;;  %v6186_v47 = vshrl.u32 %v2593_v55, 5  ;;  %v2599_v42 = vshrl.u32 %v4909_v14, %v2596_v43  ;;  %v2559_v62 = vcvt.s32.f32 %v2552_v13 }
 0x2dd   : > { %4608 = vcosq.f32 %v2357_v39  ;;  %v6184_v34 = vshrl.u32 %v2434_v3, 30  ;;  %v2557_v38 = vand.u32 2147483647, %v2556_v59  ;;  %v2602_v27 = vshrl.u32 %v4910_v23, %v2596_v43 }
 0x2de   : > { %4610 = vsinq.f32 %v2357_v39  ;;  %v2598_v8 = vshll.u32 %v4908_v63, %v2595_v33  ;;  %v2604_v2 = vshll.u32 %v4910_v23, %v2595_v33  ;;  %v2605_v50 = vshrl.u32 %v4911_v0, %v2596_v43 }
 0x2df   : > { %v2436_v57 = vshll.u32 %v6184_v34, 30  ;;  %v2560_v26 = vmul.f32 %v2559_v62, %v2557_v38  ;;  %v2601_v29 = vshll.u32 %v4909_v14, %v2595_v33  ;;  %v2607_v55 = vshll.u32 %v4911_v0, %v2595_v33 }
 0x2e0   : > { %v2608_v35 = vshrl.u32 %v4912_v12, %v2596_v43  ;;  %vm2368_vm9 = vcmp.eq.s32.totalorder %v6164_v22, 2  ;;  %v2600_v53 = vor.u32 %v2599_v42, %v2598_v8  ;;  %v2606_v46 = vor.u32 %v2605_v50, %v2604_v2 }
 0x2e1   : > { %v6198_v30 = vsub.s32 %v2433_v5, %v2436_v57  ;;  %v6200_v11 = vshll.u32 %v2589_v28, 8  ;;  %vm2365_vm10 = vcmp.eq.s32.totalorder %v6164_v22, 0  ;;  %v2561_v13 = vxor.u32 2147483648, %v2560_v26 }
 0x2e2   : > { %v2603_v9 = vor.u32 %v2602_v27, %v2601_v29  ;;  %v2609_v15 = vor.u32 %v2608_v35, %v2607_v55  ;;  %v2611_v3 = vshrl.u32 %v4913_v25, %v2596_v43  ;;  %vm2364_vm11 = vcmp.lt.s32.totalorder %v6164_v22, 2 }
 0x2e3   : > { %v2429_v39 = vadd.s32 %v6142_v54, %v6139_v17  ;;  %v2439_v59 = vsub.s32 0, %v6198_v30  ;;  %v2610_v5 = vshll.u32 %v4912_v12, %v2595_v33  ;;  %v6212_v28 = vadd.f32 %v2192_v31, %v2155_v32 }
 0x2e4   : > { %vm2361_vm12 = vweird.f32 %v5911_v51  ;;  %v2562_v42 = vsel %vm2479_vm14, %v2561_v13, %v2560_v26  ;;  %v2597_v38 = vshrl.u32 %v4908_v63, %v2596_v43  ;;  %vm2613_vm13 = vcmp.lt.s32.totalorder %v6186_v47, 1 }
 0x2e5   : > { %vm2616_vm15 = vcmp.lt.s32.totalorder %v6186_v47, 4  ;;  %v2565_v17 = vsel %vm6106_vm5, %v5916_v10, %v2562_v42  ;;  %v4319_v54 = vmin.u32 %v2439_v59, %v6198_v30  ;;  %v2612_v33 = vor.u32 %v2611_v3, %v2610_v5 }
 0x2e6   : > { %v2618_v31 = vsel %vm2616_vm15, %v2606_v46, 2102212464  ;;  %4612 = vcosq.f32 %v2565_v17  ;;  %vm2614_vm0 = vcmp.lt.s32.totalorder %v6186_v47, 2  ;;  %v2621_v43 = vsel %vm2613_vm13, %v2600_v53, %v2603_v9 }
 0x2e7   : > { %v2622_v32 = vsel %vm2616_vm15, %v2609_v15, 920167782  ;;  %v4609_v62 = vpop.eup %4608  ;;  %4614 = vsinq.f32 %v2565_v17  ;;  %vm2375_vm14 = vcmp.lt.s32.totalorder %v5918_v16, 0  ;;  %v2441_v24 = vclz %v4319_v54 }
 0x2e8   : > { %vm2615_vm1 = vcmp.lt.s32.totalorder %v6186_v47, 3  ;;  %v2617_v27 = vsel %vm2613_vm13, %v2597_v38, %v2600_v53  ;;  %v4611_v57 = vpop.eup %4610  ;;  %v2369_v8 = vxor.u32 2147483648, %v4609_v62  ;;  %v2625_v26 = vsel %vm2613_vm13, %v2603_v9, %v2606_v46 }
 0x2e9   : > { %v2619_v2 = vsel %vm2615_vm1, %v2603_v9, %v2618_v31  ;;  %v2623_v50 = vsel %vm2615_vm1, %v2606_v46, %v2622_v32  ;;  %v2366_v29 = vxor.u32 2147483648, %v4611_v57  ;;  %v4320_v55 = vadd.s32 4294967294, %v2441_v24 }
 0x2ea   : > { %v2624_v35 = vsel %vm2614_vm0, %v2621_v43, %v2623_v50  ;;  %v2626_v13 = vsel %vm2616_vm15, %v2612_v33, 1326507024  ;;  %v2370_v3 = vsel %vm2368_vm9, %v2369_v8, %v4611_v57  ;;  %vm6246_vm2 = vcmp.le.f32.partialorder %v2373_v37, 0.7853982  ;;  %v6277_v8 = vpop.f32.mrb[9].mxu0 }
 0x2eb   : > { %v2627_v59 = vsel %vm2615_vm1, %v2609_v15, %v2626_v13  ;;  %v6251_v46 = vmul.u32.u64.low %v6200_v11, %v2624_v35  ;;  %v6252_v9 = vmul.u32.u64.high %v6200_v11, %v2624_v35, %v6251_v46  ;;  %v2367_v5 = vsel %vm2365_vm10, %v4609_v62, %v2366_v29  ;;  %v1925_v47 = vpop.f32.mrb[10].mxu0 }
 0x2ec   : > { %vm4321_vm3 = vcmp.lt.s32.totalorder %v4320_v55, 0  ;;  %v2459_v42 = vsub.s32 4, %v6184_v34  ;;  %v2628_v38 = vsel %vm2614_vm0, %v2625_v26, %v2627_v59  ;;  %v2371_v37 = vsel %vm2364_vm11, %v2367_v5, %v2370_v3  ;;  %v1926_v35 = vpop.f32.mrb[11].mxu0 }
 0x2ed   : > { %v2444_v17 = vsel %vm4321_vm3, 0, %v4320_v55  ;;  %v6263_v15 = vmul.u32.u64.low %v6200_v11, %v2628_v38  ;;  %v6264_v54 = vmul.u32.u64.high %v6200_v11, %v2628_v38, %v6263_v15  ;;  %v2372_v33 = vsel %vm2361_vm12, nan, %v2371_v37 }
 0x2ee   : > { %vm2569_vm4 = vweird.f32 %v5916_v10  ;;  %v2445_v31 = vsub.s32 32, %v2444_v17  ;;  %v2449_v43 = vsub.s32 4294967266, %v2444_v17  ;;  %v2620_v32 = vsel %vm2614_vm0, %v2617_v27, %v2619_v2 }
 0x2ef   : > { %v7861_v62 = vrot.slane %v6020_v36, %v5887_v48  ;;  %vm2572_vm5 = vcmp.lt.s32.totalorder %v6171_v21, 2  ;;  %v2639_v24 = vadd.s32 1, %v6252_v9  ;;  %v2685_v57 = vand.u32 2147483647, %v6212_v28 }
 0x2f0   : > { %v2446_v51 = vshll.u32 %v6198_v30, %v2444_v17  ;;  %v2447_v50 = vshrl.u32 %v2429_v39, %v2445_v31  ;;  %v2450_v26 = vadd.s32 127, %v2449_v43  ;;  %v2688_v29 = vand.u32 2139095040, %v6212_v28  ;;  %v4613_v27 = vpop.eup %4612 }
 0x2f1   : > { %v4015_v22 = vmul.f32 %v7861_v62, %v2372_v33  ;;  %v2460_v2 = vsel %vm2375_vm14, %v2459_v42, %v6184_v34  ;;  %v2636_v55 = vmul.u32 %v6200_v11, %v2620_v32  ;;  %vm2638_vm6 = vc.u32 %v6264_v54, %v6251_v46  ;;  %v4615_v13 = vpop.eup %4614 }
 0x2f2   : > { %v7862_v30 = vrot.slane %v5889_v49, %v6037_v45  ;;  %v2577_v3 = vxor.u32 2147483648, %v4613_v27  ;;  %v2448_v59 = vor.u32 %v2447_v50, %v2446_v51  ;;  %v2451_v5 = vshll.u32 %v2450_v26, 23 }
 0x2f3   : > { %4031 = vst [vmem:[%s6281_s28] sm:$0xff] %v4015_v22  ;;  %v2640_v38 = vsel %vm2638_vm6, %v2639_v24, %v6252_v9  ;;  %v2574_v37 = vxor.u32 2147483648, %v4615_v13  ;;  %vm2576_vm7 = vcmp.eq.s32.totalorder %v6171_v21, 2  ;;  %v2689_v11 = vshrl.u32 %v2688_v29, 23 }
 0x2f4   : > { %v2157_v39 = vmul.f32 %v7862_v30, %v6001_v4  ;;  %v2641_v34 = vadd.s32 %v2640_v38, %v2636_v55  ;;  %vm2573_vm8 = vcmp.eq.s32.totalorder %v6171_v21, 0  ;;  %v2578_v42 = vsel %vm2576_vm7, %v2577_v3, %v4615_v13 }
 0x2f5   : > { %v2452_v17 = vor.u32 4788187, %v2451_v5  ;;  %v2462_v15 = vsel %vm6246_vm2, 0, %v2460_v2  ;;  %v2575_v4 = vsel %vm2573_vm8, %v4613_v27, %v2574_v37  ;;  %v4330_v31 = vadd.s32 4294967169, %v2689_v11 }
 0x2f6   : > { %v2642_v33 = vadd.s32 536870912, %v2641_v34  ;;  %v2692_v43 = vand.u32 8388607, %v2685_v57  ;;  %v2579_v9 = vsel %vm2572_vm5, %v2575_v4, %v2578_v42  ;;  %v2455_v62 = vcvt.s32.f32 %v2448_v59 }
 0x2f7   : > { %v2453_v32 = vand.u32 2147483647, %v2452_v17  ;;  %v7863_v22 = vrot.slane %v5897_v18, %v6037_v45  ;;  %v2580_v51 = vsel %vm2569_vm4, nan, %v2579_v9  ;;  %v2695_v26 = vadd.s32 1, %v4330_v31 }
 0x2f8   : > { %v2643_v50 = vshrl.u32 %v2642_v33, 30  ;;  %v4017_v29 = vmul.f32 %v3946_v40, %v2580_v51  ;;  %v2466_v27 = vadd.s32 3, %v2462_v15  ;;  %v2094_v2 = vrot.slane %v5889_v49, %v6167_v41 }
 0x2f9   : > { %v6306_v24 = vadd.f32 %v7863_v22, %v2157_v39  ;;  %v2456_v47 = vmul.f32 %v2455_v62, %v2453_v32  ;;  %vm2696_vm9 = vcmp.gt.s32.totalorder %v2695_v26, 0  ;;  %v2693_v30 = vor.u32 8388608, %v2692_v43 }
 0x2fa   : > { %v2644_v21 = vshll.u32 %v2643_v50, 30  ;;  %4033 = vst [vmem:[%s6281_s28 + $0x10] sm:$0xff] %v4017_v29  ;;  %v2697_v39 = vsel %vm2696_vm9, %v2695_v26, 0  ;;  %v3942_v35 = vrot.slane %v6020_v36, %v5895_v7  ;;  %v2196_v40 = vrot.slane %v5897_v18, %v6167_v41 }
 0x2fb   : > { %v2457_v55 = vxor.u32 2147483648, %v2456_v47  ;;  %v2896_v10 = vand.u32 2139095040, %v6306_v24  ;;  %v2699_v3 = vand.u32 31, %v2697_v39  ;;  %v6325_v5 = vand.u32 3, %v2466_v27 }
 0x2fc   : > { %v6319_v13 = vsub.s32 %v2641_v34, %v2644_v21  ;;  %vm2583_vm10 = vcmp.lt.s32.totalorder %v5934_v52, 0  ;;  %v2637_v38 = vadd.s32 %v6251_v46, %v6264_v54  ;;  %v2667_v11 = vsub.s32 4, %v2643_v50 }
 0x2fd   : > { %v2458_v59 = vsel %vm2375_vm14, %v2457_v55, %v2456_v47  ;;  %v2700_v42 = vsub.s32 32, %v2699_v3  ;;  %v6334_v17 = vshrl.u32 %v2697_v39, 5  ;;  %v6336_v15 = vshll.u32 %v2693_v30, 8 }
 0x2fe   : > { %v2461_v37 = vsel %vm6246_vm2, %v5918_v16, %v2458_v59  ;;  %v2647_v34 = vsub.s32 0, %v6319_v13  ;;  %v2897_v4 = vshrl.u32 %v2896_v10, 23  ;;  %v2702_v31 = vshll.u32 %v4908_v63, %v2699_v3 }
 0x2ff   : > { %4616 = vcosq.f32 %v2461_v37  ;;  %v2705_v46 = vshll.u32 %v4909_v14, %v2699_v3  ;;  %v2703_v53 = vshrl.u32 %v4909_v14, %v2700_v42  ;;  %v2706_v54 = vshrl.u32 %v4910_v23, %v2700_v42 }
 0x300   : > { %4618 = vsinq.f32 %v2461_v37  ;;  %v4327_v33 = vmin.u32 %v2647_v34, %v6319_v13  ;;  %v2708_v43 = vshll.u32 %v4910_v23, %v2699_v3  ;;  %v2709_v9 = vshrl.u32 %v4911_v0, %v2700_v42 }
 0x301   : > { %v6347_v62 = vsel %vm2583_vm10, %v2667_v11, %v2643_v50  ;;  %v2711_v22 = vshll.u32 %v4911_v0, %v2699_v3  ;;  %v2893_v51 = vand.u32 2147483647, %v6306_v24  ;;  %vm2472_vm11 = vcmp.eq.s32.totalorder %v6325_v5, 2 }
 0x302   : > { %v2649_v32 = vclz %v4327_v33  ;;  %v2704_v26 = vor.u32 %v2703_v53, %v2702_v31  ;;  %v2707_v29 = vor.u32 %v2706_v54, %v2705_v46  ;;  %v2710_v47 = vor.u32 %v2709_v9, %v2708_v43 }
 0x303   : > { %v2712_v27 = vshrl.u32 %v4912_v12, %v2700_v42  ;;  %vm2469_vm12 = vcmp.eq.s32.totalorder %v6325_v5, 0  ;;  %v2714_v55 = vshll.u32 %v4912_v12, %v2699_v3  ;;  %v2715_v30 = vshrl.u32 %v4913_v25, %v2700_v42 }
 0x304   : > { %v4328_v21 = vadd.s32 4294967294, %v2649_v32  ;;  %v4338_v50 = vadd.s32 4294967169, %v2897_v4  ;;  %vm2468_vm13 = vcmp.lt.s32.totalorder %v6325_v5, 2  ;;  %v2701_v39 = vshrl.u32 %v4908_v63, %v2700_v42  ;;  %v6417_v5 = vpop.f32.mrb[9].mxu1 }
 0x305   : > { %v2713_v10 = vor.u32 %v2712_v27, %v2711_v22  ;;  %vm2717_vm15 = vcmp.lt.s32.totalorder %v6334_v17, 1  ;;  %vm2720_vm0 = vcmp.lt.s32.totalorder %v6334_v17, 4  ;;  %vm2465_vm14 = vweird.f32 %v5918_v16 }
 0x306   : > { %vm6363_vm1 = vcmp.le.f32.partialorder %v2581_v19, 0.7853982  ;;  %vm4329_vm2 = vcmp.lt.s32.totalorder %v4328_v21, 0  ;;  %v2716_v3 = vor.u32 %v2715_v30, %v2714_v55  ;;  %vm2718_vm3 = vcmp.lt.s32.totalorder %v6334_v17, 2 }
 0x307   : > { %v2722_v37 = vsel %vm2720_vm0, %v2710_v47, 2102212464  ;;  %v2652_v34 = vsel %vm4329_vm2, 0, %v4328_v21  ;;  %vm2719_vm4 = vcmp.lt.s32.totalorder %v6334_v17, 3  ;;  %v2725_v11 = vsel %vm2717_vm15, %v2704_v26, %v2707_v29 }
 0x308   : > { %v2726_v42 = vsel %vm2720_vm0, %v2713_v10, 920167782  ;;  %v2653_v19 = vsub.s32 32, %v2652_v34  ;;  %v2657_v4 = vsub.s32 4294967266, %v2652_v34  ;;  %v2721_v33 = vsel %vm2717_vm15, %v2701_v39, %v2704_v26 }
 0x309   : > { %v2723_v31 = vsel %vm2719_vm4, %v2707_v29, %v2722_v37  ;;  %v4617_v46 = vpop.eup %4616  ;;  %v2654_v53 = vshll.u32 %v6319_v13, %v2652_v34  ;;  %v2727_v54 = vsel %vm2719_vm4, %v2710_v47, %v2726_v42  ;;  %v2729_v43 = vsel %vm2717_vm15, %v2707_v29, %v2710_v47 }
 0x30a   : > { %v2730_v9 = vsel %vm2720_vm0, %v2716_v3, 1326507024  ;;  %v4619_v32 = vpop.eup %4618  ;;  %v2473_v22 = vxor.u32 2147483648, %v4617_v46  ;;  %v2655_v27 = vshrl.u32 %v2637_v38, %v2653_v19  ;;  %v2658_v21 = vadd.s32 127, %v2657_v4 }
 0x30b   : > { %v2728_v26 = vsel %vm2718_vm3, %v2725_v11, %v2727_v54  ;;  %v2470_v55 = vxor.u32 2147483648, %v4619_v32  ;;  %v2731_v13 = vsel %vm2719_vm4, %v2713_v10, %v2730_v9  ;;  %v2903_v10 = vadd.s32 1, %v4338_v50  ;;  %v1966_v9 = vpop.f32.mrb[10].mxu1 }
 0x30c   : > { %v6391_v30 = vmul.u32.u64.low %v6336_v15, %v2728_v26  ;;  %v6392_v39 = vmul.u32.u64.high %v6336_v15, %v2728_v26, %v6391_v30  ;;  %v2474_v29 = vsel %vm2472_vm11, %v2473_v22, %v4619_v32  ;;  %v2656_v47 = vor.u32 %v2655_v27, %v2654_v53  ;;  %v1967_v22 = vpop.f32.mrb[11].mxu1 }
 0x30d   : > { %v2659_v3 = vshll.u32 %v2658_v21, 23  ;;  %v2732_v38 = vsel %vm2718_vm3, %v2729_v43, %v2731_v13  ;;  %v2471_v37 = vsel %vm2469_vm12, %v4617_v46, %v2470_v55  ;;  %v2724_v4 = vsel %vm2718_vm3, %v2721_v33, %v2723_v31 }
 0x30e   : > { %v6402_v34 = vmul.u32.u64.low %v6336_v15, %v2732_v38  ;;  %v6403_v11 = vmul.u32.u64.high %v6336_v15, %v2732_v38, %v6402_v34  ;;  %v2475_v42 = vsel %vm2468_vm13, %v2471_v37, %v2474_v29  ;;  %v2900_v53 = vand.u32 8388607, %v2893_v51 }
 0x30f   : > { %v2660_v19 = vor.u32 4788187, %v2659_v3  ;;  %v2476_v54 = vsel %vm2465_vm14, nan, %v2475_v42  ;;  %v2670_v46 = vsel %vm6363_vm1, 0, %v6347_v62  ;;  %v2743_v50 = vadd.s32 1, %v6392_v39 }
 0x310   : > { %vm2904_vm5 = vcmp.gt.s32.totalorder %v2903_v10, 0  ;;  %v4016_v17 = vmul.f32 %v3942_v35, %v2476_v54  ;;  %v2663_v31 = vcvt.s32.f32 %v2656_v47  ;;  %v3950_v16 = vrot.slane %v6020_v36, %v5914_v58 }
 0x311   : > { %v2661_v33 = vand.u32 2147483647, %v2660_v19  ;;  %v2905_v43 = vsel %vm2904_vm5, %v2903_v10, 0  ;;  %v2740_v32 = vmul.u32 %v6336_v15, %v2724_v4  ;;  %vm2742_vm6 = vc.u32 %v6403_v11, %v6391_v30 }
 0x312   : > { %v2907_v62 = vand.u32 31, %v2905_v43  ;;  %4032 = vst [vmem:[%s6281_s28 + $0x8] sm:$0xff] %v4016_v17  ;;  %v2674_v21 = vadd.s32 3, %v2670_v46  ;;  %v2744_v26 = vsel %vm2742_vm6, %v2743_v50, %v6392_v39  ;;  %v2901_v35 = vor.u32 8388608, %v2900_v53 }
 0x313   : > { %v2664_v27 = vmul.f32 %v2663_v31, %v2661_v33  ;;  %v2745_v55 = vadd.s32 %v2744_v26, %v2740_v32  ;;  %v6429_v13 = vshrl.u32 %v2905_v43, 5  ;;  %v2156_v15 = vmul.f32 %v2094_v2, %v6003_v6 }
 0x314   : > { %v2908_v29 = vsub.s32 32, %v2907_v62  ;;  %v2910_v3 = vshll.u32 %v4908_v63, %v2907_v62  ;;  %v2913_v38 = vshll.u32 %v4909_v14, %v2907_v62  ;;  %v2916_v37 = vshll.u32 %v4910_v23, %v2907_v62 }
 0x315   : > { %v2665_v47 = vxor.u32 2147483648, %v2664_v27  ;;  %v2746_v34 = vadd.s32 536870912, %v2745_v55  ;;  %v2919_v42 = vshll.u32 %v4911_v0, %v2907_v62  ;;  %v2922_v33 = vshll.u32 %v4912_v12, %v2907_v62 }
 0x316   : > { %v2911_v39 = vshrl.u32 %v4909_v14, %v2908_v29  ;;  %v2914_v10 = vshrl.u32 %v4910_v23, %v2908_v29  ;;  %v2917_v49 = vshrl.u32 %v4911_v0, %v2908_v29  ;;  %v2920_v6 = vshrl.u32 %v4912_v12, %v2908_v29 }
 0x317   : > { %v2666_v19 = vsel %vm2583_vm10, %v2665_v47, %v2664_v27  ;;  %v2923_v2 = vshrl.u32 %v4913_v25, %v2908_v29  ;;  %v2747_v53 = vshrl.u32 %v2746_v34, 30  ;;  %vm2687_vm7 = vcmp.lt.s32.totalorder %v6212_v28, 0 }
 0x318   : > { %v2669_v4 = vsel %vm6363_vm1, %v5934_v52, %v2666_v19  ;;  %v2912_v54 = vor.u32 %v2911_v39, %v2910_v3  ;;  %v2915_v46 = vor.u32 %v2914_v10, %v2913_v38  ;;  %v2918_v50 = vor.u32 %v2917_v49, %v2916_v37 }
 0x319   : > { %4620 = vcosq.f32 %v2669_v4  ;;  %v2921_v17 = vor.u32 %v2920_v6, %v2919_v42  ;;  %v2748_v31 = vshll.u32 %v2747_v53, 30  ;;  %v6451_v43 = vshll.u32 %v2901_v35, 8 }
 0x31a   : > { %4622 = vsinq.f32 %v2669_v4  ;;  %v2675_v9 = vand.u32 3, %v2674_v21  ;;  %v2924_v32 = vor.u32 %v2923_v2, %v2922_v33  ;;  %vm2925_vm8 = vcmp.lt.s32.totalorder %v6429_v13, 1 }
 0x31b   : > { %v6457_v59 = vadd.f32 %v2196_v40, %v2156_v15  ;;  %vm6461_vm9 = vcmp.le.f32.partialorder %v2685_v57, 0.7853982  ;;  %v6465_v62 = vsub.s32 %v2745_v55, %v2748_v31  ;;  %v2909_v27 = vshrl.u32 %v4908_v63, %v2908_v29 }
 0x31c   : > { %vm2928_vm10 = vcmp.lt.s32.totalorder %v6429_v13, 4  ;;  %v2933_v21 = vsel %vm2925_vm8, %v2912_v54, %v2915_v46  ;;  %v2771_v26 = vsub.s32 4, %v2747_v53  ;;  %vm2927_vm11 = vcmp.lt.s32.totalorder %v6429_v13, 3 }
 0x31d   : > { %v2930_v18 = vsel %vm2928_vm10, %v2918_v50, 2102212464  ;;  %v2934_v40 = vsel %vm2928_vm10, %v2921_v17, 920167782  ;;  %v2751_v35 = vsub.s32 0, %v6465_v62  ;;  %vm2926_vm12 = vcmp.lt.s32.totalorder %v6429_v13, 2 }
 0x31e   : > { %v2935_v57 = vsel %vm2927_vm11, %v2918_v50, %v2934_v40  ;;  %v2937_v55 = vsel %vm2925_vm8, %v2915_v46, %v2918_v50  ;;  %vm2676_vm13 = vcmp.lt.s32.totalorder %v2675_v9, 2  ;;  %v2938_v15 = vsel %vm2928_vm10, %v2924_v32, 1326507024  ;;  %v4672_v32 = vld [vmem:[#allocation5] sm:$0xff] }
 0x31f   : > { %v2936_v29 = vsel %vm2926_vm12, %v2933_v21, %v2935_v57  ;;  %v6479_v47 = vsub.s32 7, %v5884_v44  ;;  %vm2673_vm15 = vweird.f32 %v5934_v52  ;;  %v4331_v3 = vmin.u32 %v2751_v35, %v6465_v62 }
 0x320   : > { %v2929_v38 = vsel %vm2925_vm8, %v2909_v27, %v2912_v54  ;;  %v2931_v37 = vsel %vm2927_vm11, %v2915_v46, %v2930_v18  ;;  %v2939_v34 = vsel %vm2927_vm11, %v2921_v17, %v2938_v15  ;;  %vm2677_vm0 = vcmp.eq.s32.totalorder %v2675_v9, 0 }
 0x321   : > { %v2940_v39 = vsel %vm2926_vm12, %v2937_v55, %v2939_v34  ;;  %v6488_v10 = vmul.u32.u64.low %v6451_v43, %v2936_v29  ;;  %v6489_v42 = vmul.u32.u64.high %v6451_v43, %v2936_v29, %v6488_v10  ;;  %vm2680_vm14 = vcmp.eq.s32.totalorder %v2675_v9, 2 }
 0x322   : > { %v2753_v44 = vclz %v4331_v3  ;;  %v2772_v19 = vsel %vm2687_vm7, %v2771_v26, %v2747_v53  ;;  %v2789_v49 = vand.u32 2147483647, %v6457_v59  ;;  %v2932_v2 = vsel %vm2926_vm12, %v2929_v38, %v2931_v37  ;;  %v4673_v3 = vld [vmem:[#allocation7] sm:$0xff] }
 0x323   : > { %v4621_v6 = vpop.eup %4620  ;;  %v6497_v4 = vmul.u32.u64.low %v6451_v43, %v2940_v39  ;;  %v6498_v54 = vmul.u32.u64.high %v6451_v43, %v2940_v39, %v6497_v4  ;;  %v2792_v46 = vand.u32 2139095040, %v6457_v59  ;;  %v2741_v33 = vadd.s32 %v6391_v30, %v6403_v11 }
 0x324   : > { %v4623_v50 = vpop.eup %4622  ;;  %v2681_v17 = vxor.u32 2147483648, %v4621_v6  ;;  %v4332_v31 = vadd.s32 4294967294, %v2753_v44  ;;  %v2102_v53 = vrot.slane %v4672_v32, %v6479_v47  ;;  %v2774_v13 = vsel %vm6461_vm9, 0, %v2772_v19 }
 0x325   : > { %v2678_v27 = vxor.u32 2147483648, %v4623_v50  ;;  %v2951_v21 = vadd.s32 1, %v6489_v42  ;;  %v2793_v26 = vshrl.u32 %v2792_v46, 23  ;;  %v2948_v40 = vmul.u32 %v6451_v43, %v2932_v2 }
 0x326   : > { %v2682_v18 = vsel %vm2680_vm14, %v2681_v17, %v4623_v50  ;;  %vm4333_vm1 = vcmp.lt.s32.totalorder %v4332_v31, 0  ;;  %v2796_v35 = vand.u32 8388607, %v2789_v49  ;;  %vm2950_vm2 = vc.u32 %v6498_v54, %v6488_v10 }
 0x327   : > { %v2679_v30 = vsel %vm2677_vm0, %v4621_v6, %v2678_v27  ;;  %v2756_v11 = vsel %vm4333_vm1, 0, %v4332_v31  ;;  %v2158_v57 = vmul.f32 %v2102_v53, %v6009_v20  ;;  %v2204_v38 = vrot.slane %v4673_v3, %v6479_v47 }
 0x328   : > { %v2683_v55 = vsel %vm2676_vm13, %v2679_v30, %v2682_v18  ;;  %v2757_v29 = vsub.s32 32, %v2756_v11  ;;  %v2761_v15 = vsub.s32 4294967266, %v2756_v11  ;;  %v2758_v37 = vshll.u32 %v6465_v62, %v2756_v11 }
 0x329   : > { %v2684_v43 = vsel %vm2673_vm15, nan, %v2683_v55  ;;  %v2952_v34 = vsel %vm2950_vm2, %v2951_v21, %v6489_v42  ;;  %v4334_v39 = vadd.s32 4294967169, %v2793_v26  ;;  %v2778_v50 = vadd.s32 3, %v2774_v13 }
 0x32a   : > { %v4018_v44 = vmul.f32 %v3950_v16, %v2684_v43  ;;  %v2759_v20 = vshrl.u32 %v2741_v33, %v2757_v29  ;;  %v2762_v9 = vadd.s32 127, %v2761_v15  ;;  %v2953_v19 = vadd.s32 %v2952_v34, %v2948_v40 }
 0x32b   : > { %v2799_v6 = vadd.s32 1, %v4334_v39  ;;  %v2797_v52 = vor.u32 8388608, %v2796_v35  ;;  %v6524_v42 = vadd.f32 %v2204_v38, %v2158_v57  ;;  %v3954_v32 = vrot.slane %v6020_v36, %v6034_v56 }
 0x32c   : > { %4034 = vst [vmem:[%s6281_s28 + $0x18] sm:$0xff] %v4018_v44  ;;  %v2760_v2 = vor.u32 %v2759_v20, %v2758_v37  ;;  %v2763_v4 = vshll.u32 %v2762_v9, 23  ;;  %v2954_v46 = vadd.s32 536870912, %v2953_v19  ;;  %vm2895_vm4 = vcmp.lt.s32.totalorder %v6306_v24, 0 }
 0x32d   : > { %vm2800_vm3 = vcmp.gt.s32.totalorder %v2799_v6, 0  ;;  %v3962_v21 = vrot.slane %v6020_v36, %v6037_v45  ;;  %v6531_v13 = vand.u32 3, %v2778_v50  ;;  %v2949_v26 = vadd.s32 %v6488_v10, %v6498_v54 }
 0x32e   : > { %v2764_v17 = vor.u32 4788187, %v2763_v4  ;;  %v2955_v62 = vshrl.u32 %v2954_v46, 30  ;;  %v2801_v31 = vsel %vm2800_vm3, %v2799_v6, 0  ;;  %v2767_v53 = vcvt.s32.f32 %v2760_v2 }
 0x32f   : > { %v2803_v16 = vand.u32 31, %v2801_v31  ;;  %v6534_v40 = vshll.u32 %v2797_v52, 8  ;;  %v6538_v11 = vshrl.u32 %v2801_v31, 5  ;;  %v3000_v57 = vand.u32 2139095040, %v6524_v42 }
 0x330   : > { %v2765_v33 = vand.u32 2147483647, %v2764_v17  ;;  %v2956_v27 = vshll.u32 %v2955_v62, 30  ;;  %v2979_v55 = vsub.s32 4, %v2955_v62  ;;  %v2997_v17 = vand.u32 2147483647, %v6524_v42 }
 0x331   : > { %v2804_v18 = vsub.s32 32, %v2803_v16  ;;  %v2806_v29 = vshll.u32 %v4908_v63, %v2803_v16  ;;  %v2809_v54 = vshll.u32 %v4909_v14, %v2803_v16  ;;  %v2812_v34 = vshll.u32 %v4910_v23, %v2803_v16 }
 0x332   : > { %v2768_v35 = vmul.f32 %v2767_v53, %v2765_v33  ;;  %v6536_v30 = vsub.s32 %v2953_v19, %v2956_v27  ;;  %v2815_v39 = vshll.u32 %v4911_v0, %v2803_v16  ;;  %v2818_v6 = vshll.u32 %v4912_v12, %v2803_v16 }
 0x333   : > { %v2807_v15 = vshrl.u32 %v4909_v14, %v2804_v18  ;;  %v2810_v3 = vshrl.u32 %v4910_v23, %v2804_v18  ;;  %v2813_v43 = vshrl.u32 %v4911_v0, %v2804_v18  ;;  %v2816_v44 = vshrl.u32 %v4912_v12, %v2804_v18 }
 0x334   : > { %v2769_v38 = vxor.u32 2147483648, %v2768_v35  ;;  %v2959_v10 = vsub.s32 0, %v6536_v30  ;;  %v2819_v50 = vshrl.u32 %v4913_v25, %v2804_v18  ;;  %v3001_v31 = vshrl.u32 %v3000_v57, 23 }
 0x335   : > { %v2808_v37 = vor.u32 %v2807_v15, %v2806_v29  ;;  %v2811_v19 = vor.u32 %v2810_v3, %v2809_v54  ;;  %v2814_v4 = vor.u32 %v2813_v43, %v2812_v34  ;;  %v2817_v46 = vor.u32 %v2816_v44, %v2815_v39 }
 0x336   : > { %v2770_v20 = vsel %vm2687_vm7, %v2769_v38, %v2768_v35  ;;  %v4339_v9 = vmin.u32 %v2959_v10, %v6536_v30  ;;  %v6561_v33 = vsel %vm2895_vm4, %v2979_v55, %v2955_v62  ;;  %v2805_v16 = vshrl.u32 %v4908_v63, %v2804_v18 }
 0x337   : > { %v2773_v2 = vsel %vm6461_vm9, %v6212_v28, %v2770_v20  ;;  %v2820_v53 = vor.u32 %v2819_v50, %v2818_v6  ;;  %vm6566_vm5 = vcmp.le.f32.partialorder %v2893_v51, 0.7853982  ;;  %vm2821_vm6 = vcmp.lt.s32.totalorder %v6538_v11, 1 }
 0x338   : > { %4624 = vcosq.f32 %v2773_v2  ;;  %v2961_v52 = vclz %v4339_v9  ;;  %vm2823_vm7 = vcmp.lt.s32.totalorder %v6538_v11, 3  ;;  %vm2824_vm8 = vcmp.lt.s32.totalorder %v6538_v11, 4 }
 0x339   : > { %4626 = vsinq.f32 %v2773_v2  ;;  %v2826_v35 = vsel %vm2824_vm8, %v2814_v4, 2102212464  ;;  %v2829_v57 = vsel %vm2821_vm6, %v2808_v37, %v2811_v19  ;;  %v2830_v62 = vsel %vm2824_vm8, %v2817_v46, 920167782 }
 0x33a   : > { %v4340_v27 = vadd.s32 4294967294, %v2961_v52  ;;  %v2833_v55 = vsel %vm2821_vm6, %v2811_v19, %v2814_v4  ;;  %vm2822_vm10 = vcmp.lt.s32.totalorder %v6538_v11, 2  ;;  %v2831_v51 = vsel %vm2823_vm7, %v2814_v4, %v2830_v62 }
 0x33b   : > { %v2834_v18 = vsel %vm2824_vm8, %v2820_v53, 1326507024  ;;  %v2825_v15 = vsel %vm2821_vm6, %v2805_v16, %v2808_v37  ;;  %v2832_v3 = vsel %vm2822_vm10, %v2829_v57, %v2831_v51  ;;  %v2827_v43 = vsel %vm2823_vm7, %v2811_v19, %v2826_v35 }
 0x33c   : > { %vm4341_vm9 = vcmp.lt.s32.totalorder %v4340_v27, 0  ;;  %v2835_v38 = vsel %vm2823_vm7, %v2817_v46, %v2834_v18  ;;  %vm2777_vm11 = vweird.f32 %v6212_v28  ;;  %v4342_v4 = vadd.s32 4294967169, %v3001_v31 }
 0x33d   : > { %v2964_v29 = vsel %vm4341_vm9, 0, %v4340_v27  ;;  %v2836_v34 = vsel %vm2822_vm10, %v2833_v55, %v2835_v38  ;;  %v6590_v37 = vmul.u32.u64.low %v6534_v40, %v2832_v3  ;;  %v6591_v20 = vmul.u32.u64.high %v6534_v40, %v2832_v3, %v6590_v37  ;;  %v6613_v55 = vld [vmem:[#allocation7 + $0x8] sm:$0xff] }
 0x33e   : > { %v2965_v10 = vsub.s32 32, %v2964_v29  ;;  %v2969_v54 = vsub.s32 4294967266, %v2964_v29  ;;  %v6586_v39 = vmul.u32.u64.low %v6534_v40, %v2836_v34  ;;  %v6587_v44 = vmul.u32.u64.high %v6534_v40, %v2836_v34, %v6586_v39 }
 0x33f   : > { %v2966_v9 = vshll.u32 %v6536_v30, %v2964_v29  ;;  %vm2780_vm12 = vcmp.lt.s32.totalorder %v6531_v13, 2  ;;  %vm2781_vm13 = vcmp.eq.s32.totalorder %v6531_v13, 0  ;;  %vm2784_vm15 = vcmp.eq.s32.totalorder %v6531_v13, 2 }
 0x340   : > { %v2967_v6 = vshrl.u32 %v2949_v26, %v2965_v10  ;;  %v2970_v2 = vadd.s32 127, %v2969_v54  ;;  %v2828_v19 = vsel %vm2822_vm10, %v2825_v15, %v2827_v43  ;;  %v6602_v16 = vand.u32 8388607, %v2997_v17  ;;  %v6604_v26 = vld [vmem:[#allocation5 + $0x8] sm:$0xff] }
 0x341   : > { %v3007_v30 = vadd.s32 1, %v4342_v4  ;;  %v2982_v27 = vsel %vm6566_vm5, 0, %v6561_v33  ;;  %vm2846_vm0 = vc.u32 %v6587_v44, %v6590_v37  ;;  %v2847_v11 = vadd.s32 1, %v6591_v20  ;;  %v6631_v4 = vpop.f32.mrb[12].mxu1 }
 0x342   : > { %v4625_v46 = vpop.eup %4624  ;;  %v2968_v50 = vor.u32 %v2967_v6, %v2966_v9  ;;  %v2971_v52 = vshll.u32 %v2970_v2, 23  ;;  %v2844_v62 = vmul.u32 %v6534_v40, %v2828_v19  ;;  %v2106_v33 = vrot.slane %v6604_v26, %v5887_v48  ;;  %v6629_v2 = vpop.f32.mrb[12].mxu0 }
 0x343   : > { %v4627_v31 = vpop.eup %4626  ;;  %v2785_v53 = vxor.u32 2147483648, %v4625_v46  ;;  %vm3008_vm14 = vcmp.gt.s32.totalorder %v3007_v30, 0  ;;  %v2848_v18 = vsel %vm2846_vm0, %v2847_v11, %v6591_v20  ;;  %v2986_v54 = vadd.s32 3, %v2982_v27 }
 0x344   : > { %v2782_v35 = vxor.u32 2147483648, %v4627_v31  ;;  %v2972_v57 = vor.u32 4788187, %v2971_v52  ;;  %v3009_v29 = vsel %vm3008_vm14, %v3007_v30, 0  ;;  %v2975_v38 = vcvt.s32.f32 %v2968_v50 }
 0x345   : > { %v2786_v51 = vsel %vm2784_vm15, %v2785_v53, %v4627_v31  ;;  %v2849_v10 = vadd.s32 %v2848_v18, %v2844_v62  ;;  %v3011_v43 = vand.u32 31, %v3009_v29  ;;  %v2208_v34 = vrot.slane %v6613_v55, %v5887_v48 }
 0x346   : > { %v2783_v15 = vsel %vm2781_vm13, %v4625_v46, %v2782_v35  ;;  %v2973_v3 = vand.u32 2147483647, %v2972_v57  ;;  %v3005_v6 = vor.u32 8388608, %v6602_v16  ;;  %v3010_v19 = vshrl.u32 %v3009_v29, 5 }
 0x347   : > { %v2787_v40 = vsel %vm2780_vm12, %v2783_v15, %v2786_v51  ;;  %v2850_v9 = vadd.s32 536870912, %v2849_v10  ;;  %v3012_v46 = vsub.s32 32, %v3011_v43  ;;  %v2159_v50 = vmul.f32 %v2106_v33, %v6180_v1 }
 0x348   : > { %v2788_v39 = vsel %vm2777_vm11, nan, %v2787_v40  ;;  %v2976_v20 = vmul.f32 %v2975_v38, %v2973_v3  ;;  %v3014_v28 = vshll.u32 %v4908_v63, %v3011_v43  ;;  %v3017_v31 = vshll.u32 %v4909_v14, %v3011_v43 }
 0x349   : > { %v4019_v13 = vmul.f32 %v3954_v32, %v2788_v39  ;;  %v2851_v30 = vshrl.u32 %v2850_v9, 30  ;;  %v3015_v16 = vshrl.u32 %v4909_v14, %v3012_v46  ;;  %v3018_v53 = vshrl.u32 %v4910_v23, %v3012_v46 }
 0x34a   : > { %v2977_v52 = vxor.u32 2147483648, %v2976_v20  ;;  %v3020_v27 = vshll.u32 %v4910_v23, %v3011_v43  ;;  %v3021_v11 = vshrl.u32 %v4911_v0, %v3012_v46  ;;  %v3023_v1 = vshll.u32 %v4911_v0, %v3011_v43 }
 0x34b   : > { %4035 = vst [vmem:[%s6281_s28 + $0x20] sm:$0xff] %v4019_v13  ;;  %v2852_v35 = vshll.u32 %v2851_v30, 30  ;;  %v3024_v57 = vshrl.u32 %v4912_v12, %v3012_v46  ;;  %v6651_v51 = vand.u32 3, %v2986_v54  ;;  %v3016_v18 = vor.u32 %v3015_v16, %v3014_v28 }
 0x34c   : > { %v2978_v32 = vsel %vm2895_vm4, %v2977_v52, %v2976_v20  ;;  %v3019_v29 = vor.u32 %v3018_v53, %v3017_v31  ;;  %v3022_v15 = vor.u32 %v3021_v11, %v3020_v27  ;;  %vm2791_vm1 = vcmp.lt.s32.totalorder %v6457_v59, 0 }
 0x34d   : > { %v2981_v62 = vsel %vm6566_vm5, %v6306_v24, %v2978_v32  ;;  %v6653_v33 = vsub.s32 %v2849_v10, %v2852_v35  ;;  %v3025_v3 = vor.u32 %v3024_v57, %v3023_v1  ;;  %v3026_v38 = vshll.u32 %v4912_v12, %v3011_v43 }
 0x34e   : > { %4628 = vcosq.f32 %v2981_v62  ;;  %v3027_v40 = vshrl.u32 %v4913_v25, %v3012_v46  ;;  %v2114_v22 = vrot.slane %v6604_v26, %v5892_v60  ;;  %vm3029_vm2 = vcmp.lt.s32.totalorder %v3010_v19, 1 }
 0x34f   : > { %4630 = vsinq.f32 %v2981_v62  ;;  %v2855_v54 = vsub.s32 0, %v6653_v33  ;;  %v6661_v39 = vshll.u32 %v3005_v6, 8  ;;  %v6663_v20 = vadd.f32 %v2208_v34, %v2159_v50 }
 0x350   : > { %v3013_v10 = vshrl.u32 %v4908_v63, %v3012_v46  ;;  %v3028_v9 = vor.u32 %v3027_v40, %v3026_v38  ;;  %vm3031_vm3 = vcmp.lt.s32.totalorder %v3010_v19, 3  ;;  %vm3032_vm4 = vcmp.lt.s32.totalorder %v3010_v19, 4 }
 0x351   : > { %v4335_v13 = vmin.u32 %v2855_v54, %v6653_v33  ;;  %v3034_v43 = vsel %vm3032_vm4, %v3022_v15, 2102212464  ;;  %v3037_v52 = vsel %vm3029_vm2, %v3016_v18, %v3019_v29  ;;  %v3038_v28 = vsel %vm3032_vm4, %v3025_v3, 920167782 }
 0x352   : > { %v2875_v31 = vsub.s32 4, %v2851_v30  ;;  %v3039_v16 = vsel %vm3031_vm3, %v3022_v15, %v3038_v28  ;;  %v3041_v53 = vsel %vm3029_vm2, %v3019_v29, %v3022_v15  ;;  %v3042_v6 = vsel %vm3032_vm4, %v3028_v9, 1326507024 }
 0x353   : > { %vm2988_vm5 = vcmp.lt.s32.totalorder %v6651_v51, 2  ;;  %vm6673_vm6 = vcmp.le.f32.partialorder %v2789_v49, 0.7853982  ;;  %v2857_v46 = vclz %v4335_v13  ;;  %vm3030_vm7 = vcmp.lt.s32.totalorder %v3010_v19, 2 }
 0x354   : > { %v3033_v50 = vsel %vm3029_vm2, %v3013_v10, %v3016_v18  ;;  %v3035_v27 = vsel %vm3031_vm3, %v3019_v29, %v3034_v43  ;;  %vm2985_vm8 = vweird.f32 %v6306_v24  ;;  %vm2989_vm9 = vcmp.eq.s32.totalorder %v6651_v51, 0 }
 0x355   : > { %vm2992_vm10 = vcmp.eq.s32.totalorder %v6651_v51, 2  ;;  %v3040_v11 = vsel %vm3030_vm7, %v3037_v52, %v3039_v16  ;;  %v3043_v32 = vsel %vm3031_vm3, %v3025_v3, %v3042_v6  ;;  %v4336_v35 = vadd.s32 4294967294, %v2857_v46  ;;  %v6702_v16 = vpop.f32.mrb[13].mxu0 }
 0x356   : > { %v3044_v49 = vsel %vm3030_vm7, %v3041_v53, %v3043_v32  ;;  %v6684_v1 = vmul.u32.u64.low %v6661_v39, %v3040_v11  ;;  %v6685_v57 = vmul.u32.u64.high %v6661_v39, %v3040_v11, %v6684_v1  ;;  %v2845_v62 = vadd.s32 %v6590_v37, %v6587_v44 }
 0x357   : > { %v3036_v18 = vsel %vm3030_vm7, %v3033_v50, %v3035_v27  ;;  %v6691_v29 = vmul.u32.u64.low %v6661_v39, %v3044_v49  ;;  %v6692_v15 = vmul.u32.u64.high %v6661_v39, %v3044_v49, %v6691_v29  ;;  %vm4337_vm11 = vcmp.lt.s32.totalorder %v4336_v35, 0 }
 0x358   : > { %v4629_v38 = vpop.eup %4628  ;;  %v2876_v19 = vsel %vm2791_vm1, %v2875_v31, %v2851_v30  ;;  %v3104_v3 = vand.u32 2139095040, %v6663_v20  ;;  %v2161_v40 = vmul.f32 %v2114_v22, %v6182_v61  ;;  %v2860_v9 = vsel %vm4337_vm11, 0, %v4336_v35  ;;  %v2007_v31 = vpop.f32.mrb[14].mxu0 }
 0x359   : > { %v4631_v54 = vpop.eup %4630  ;;  %v2993_v10 = vxor.u32 2147483648, %v4629_v38  ;;  %v3101_v13 = vand.u32 2147483647, %v6663_v20  ;;  %v2216_v44 = vrot.slane %v6613_v55, %v5892_v60  ;;  %v2861_v43 = vsub.s32 32, %v2860_v9 }
 0x35a   : > { %v2990_v37 = vxor.u32 2147483648, %v4631_v54  ;;  %v2865_v52 = vsub.s32 4294967266, %v2860_v9  ;;  %v3052_v28 = vmul.u32 %v6661_v39, %v3036_v18  ;;  %v2862_v61 = vshll.u32 %v6653_v33, %v2860_v9  ;;  %v2008_v39 = vpop.f32.mrb[15].mxu0 }
 0x35b   : > { %v2994_v30 = vsel %vm2992_vm10, %v2993_v10, %v4631_v54  ;;  %vm3054_vm12 = vc.u32 %v6692_v15, %v6684_v1  ;;  %v3055_v22 = vadd.s32 1, %v6685_v57  ;;  %v2863_v6 = vshrl.u32 %v2845_v62, %v2861_v43 }
 0x35c   : > { %v2991_v53 = vsel %vm2989_vm9, %v4629_v38, %v2990_v37  ;;  %v2866_v46 = vadd.s32 127, %v2865_v52  ;;  %v3105_v50 = vshrl.u32 %v3104_v3, 23  ;;  %v2878_v33 = vsel %vm6673_vm6, 0, %v2876_v19 }
 0x35d   : > { %v2995_v27 = vsel %vm2988_vm5, %v2991_v53, %v2994_v30  ;;  %v3056_v11 = vsel %vm3054_vm12, %v3055_v22, %v6685_v57  ;;  %v6717_v32 = vadd.f32 %v2216_v44, %v2161_v40  ;;  %v2864_v49 = vor.u32 %v2863_v6, %v2862_v61 }
 0x35e   : > { %v2996_v35 = vsel %vm2985_vm8, nan, %v2995_v27  ;;  %v2867_v18 = vshll.u32 %v2866_v46, 23  ;;  %v3057_v62 = vadd.s32 %v3056_v11, %v3052_v28  ;;  %v4346_v38 = vadd.s32 4294967169, %v3105_v50  ;;  %v6733_v28 = vld [vmem:[#allocation8] sm:$0xff] }
 0x35f   : > { %v4021_v29 = vmul.f32 %v3962_v21, %v2996_v35  ;;  %v3108_v51 = vand.u32 8388607, %v3101_v13  ;;  %v3309_v19 = vand.u32 2147483647, %v6717_v32  ;;  %v2871_v24 = vcvt.s32.f32 %v2864_v49 }
 0x360   : > { %v2868_v3 = vor.u32 4788187, %v2867_v18  ;;  %v3058_v57 = vadd.s32 536870912, %v3057_v62  ;;  %v3111_v40 = vadd.s32 1, %v4346_v38  ;;  %v2882_v10 = vadd.s32 3, %v2878_v33 }
 0x361   : > { %4037 = vst [vmem:[%s6281_s28 + $0x30] sm:$0xff] %v4021_v29  ;;  %v3109_v44 = vor.u32 8388608, %v3108_v51  ;;  %v3312_v37 = vand.u32 2139095040, %v6717_v32  ;;  %v6731_v36 = vand.u32 8388607, %v3309_v19  ;;  %v3958_v30 = vrot.slane %v6733_v28, %v6167_v41 }
 0x362   : > { %v2869_v54 = vand.u32 2147483647, %v2868_v3  ;;  %v3059_v9 = vshrl.u32 %v3058_v57, 30  ;;  %vm3112_vm13 = vcmp.gt.s32.totalorder %v3111_v40, 0  ;;  %vm2999_vm15 = vcmp.lt.s32.totalorder %v6524_v42, 0 }
 0x363   : > { %v3113_v52 = vsel %vm3112_vm13, %v3111_v40, 0  ;;  %v6738_v31 = vand.u32 3, %v2882_v10  ;;  %v3053_v53 = vadd.s32 %v6684_v1, %v6692_v15  ;;  %v6744_v50 = vshll.u32 %v3109_v44, 8 }
 0x364   : > { %v2872_v21 = vmul.f32 %v2871_v24, %v2869_v54  ;;  %v3060_v43 = vshll.u32 %v3059_v9, 30  ;;  %v3115_v61 = vand.u32 31, %v3113_v52  ;;  %v3313_v39 = vshrl.u32 %v3312_v37, 23 }
 0x365   : > { %v3317_v27 = vor.u32 8388608, %v6731_v36  ;;  %v3083_v35 = vsub.s32 4, %v3059_v9  ;;  %v3114_v49 = vshrl.u32 %v3113_v52, 5  ;;  %vm2888_vm0 = vcmp.eq.s32.totalorder %v6738_v31, 2 }
 0x366   : > { %v2873_v22 = vxor.u32 2147483648, %v2872_v21  ;;  %v6742_v6 = vsub.s32 %v3057_v62, %v3060_v43  ;;  %v3116_v46 = vsub.s32 32, %v3115_v61  ;;  %v3118_v1 = vshll.u32 %v4908_v63, %v3115_v61 }
 0x367   : > { %v3121_v38 = vshll.u32 %v4909_v14, %v3115_v61  ;;  %v3124_v57 = vshll.u32 %v4910_v23, %v3115_v61  ;;  %v4354_v40 = vadd.s32 4294967169, %v3313_v39  ;;  %v3127_v10 = vshll.u32 %v4911_v0, %v3115_v61 }
 0x368   : > { %v2874_v33 = vsel %vm2791_vm1, %v2873_v22, %v2872_v21  ;;  %v3063_v11 = vsub.s32 0, %v6742_v6  ;;  %v3119_v15 = vshrl.u32 %v4909_v14, %v3116_v46  ;;  %v3122_v62 = vshrl.u32 %v4910_v23, %v3116_v46 }
 0x369   : > { %v2877_v18 = vsel %vm6673_vm6, %v6457_v59, %v2874_v33  ;;  %v3125_v51 = vshrl.u32 %v4911_v0, %v3116_v46  ;;  %v3117_v54 = vshrl.u32 %v4908_v63, %v3116_v46  ;;  %v3128_v37 = vshrl.u32 %v4912_v12, %v3116_v46 }
 0x36a   : > { %4632 = vcosq.f32 %v2877_v18  ;;  %v4343_v29 = vmin.u32 %v3063_v11, %v6742_v6  ;;  %v3120_v3 = vor.u32 %v3119_v15, %v3118_v1  ;;  %v3123_v24 = vor.u32 %v3122_v62, %v3121_v38 }
 0x36b   : > { %4634 = vsinq.f32 %v2877_v18  ;;  %v3126_v44 = vor.u32 %v3125_v51, %v3124_v57  ;;  %v3130_v21 = vshll.u32 %v4912_v12, %v3115_v61  ;;  %v3131_v43 = vshrl.u32 %v4913_v25, %v3116_v46 }
 0x36c   : > { %v3065_v34 = vclz %v4343_v29  ;;  %v6768_v22 = vsel %vm2999_vm15, %v3083_v35, %v3059_v9  ;;  %vm3133_vm14 = vcmp.lt.s32.totalorder %v3114_v49, 1  ;;  %vm3135_vm1 = vcmp.lt.s32.totalorder %v3114_v49, 3 }
 0x36d   : > { %vm2885_vm2 = vcmp.eq.s32.totalorder %v6738_v31, 0  ;;  %vm6773_vm3 = vcmp.le.f32.partialorder %v2997_v17, 0.7853982  ;;  %v3129_v61 = vor.u32 %v3128_v37, %v3127_v10  ;;  %v3132_v33 = vor.u32 %v3131_v43, %v3130_v21 }
 0x36e   : > { %v4344_v52 = vadd.s32 4294967294, %v3065_v34  ;;  %vm3136_vm4 = vcmp.lt.s32.totalorder %v3114_v49, 4  ;;  %v3137_v46 = vsel %vm3133_vm14, %v3117_v54, %v3120_v3  ;;  %vm2884_vm5 = vcmp.lt.s32.totalorder %v6738_v31, 2 }
 0x36f   : > { %v3138_v11 = vsel %vm3136_vm4, %v3126_v44, 2102212464  ;;  %v3141_v9 = vsel %vm3133_vm14, %v3120_v3, %v3123_v24  ;;  %v3145_v35 = vsel %vm3133_vm14, %v3123_v24, %v3126_v44  ;;  %vm2881_vm7 = vweird.f32 %v6457_v59 }
 0x370   : > { %vm4345_vm6 = vcmp.lt.s32.totalorder %v4344_v52, 0  ;;  %v3139_v1 = vsel %vm3135_vm1, %v3123_v24, %v3138_v11  ;;  %v3142_v15 = vsel %vm3136_vm4, %v3129_v61, 920167782  ;;  %v3146_v17 = vsel %vm3136_vm4, %v3132_v33, 1326507024 }
 0x371   : > { %v3068_v18 = vsel %vm4345_vm6, 0, %v4344_v52  ;;  %vm3134_vm8 = vcmp.lt.s32.totalorder %v3114_v49, 2  ;;  %v3143_v57 = vsel %vm3135_vm1, %v3126_v44, %v3142_v15  ;;  %v3147_v34 = vsel %vm3135_vm1, %v3129_v61, %v3146_v17 }
 0x372   : > { %v3069_v62 = vsub.s32 32, %v3068_v18  ;;  %v3070_v29 = vshll.u32 %v6742_v6, %v3068_v18  ;;  %v3073_v38 = vsub.s32 4294967266, %v3068_v18  ;;  %v3140_v51 = vsel %vm3134_vm8, %v3137_v46, %v3139_v1 }
 0x373   : > { %v3319_v54 = vadd.s32 1, %v4354_v40  ;;  %v3144_v21 = vsel %vm3134_vm8, %v3141_v9, %v3143_v57  ;;  %v3148_v43 = vsel %vm3134_vm8, %v3145_v35, %v3147_v34  ;;  %v2110_v44 = vrot.slane %v6604_v26, %v5895_v7  ;;  %v6806_v57 = vpop.f32.mrb[13].mxu1 }
 0x374   : > { %v4633_v3 = vpop.eup %4632  ;;  %v3071_v10 = vshrl.u32 %v3053_v53, %v3069_v62  ;;  %v3074_v37 = vadd.s32 127, %v3073_v38  ;;  %v6784_v33 = vmul.u32.u64.low %v6744_v50, %v3148_v43  ;;  %v6785_v11 = vmul.u32.u64.high %v6744_v50, %v3148_v43, %v6784_v33 }
 0x375   : > { %v4635_v52 = vpop.eup %4634  ;;  %v2889_v24 = vxor.u32 2147483648, %v4633_v3  ;;  %vm3320_vm9 = vcmp.gt.s32.totalorder %v3319_v54, 0  ;;  %v6790_v40 = vmul.u32.u64.low %v6744_v50, %v3144_v21  ;;  %v6791_v53 = vmul.u32.u64.high %v6744_v50, %v3144_v21, %v6790_v40 }
 0x376   : > { %v2886_v6 = vxor.u32 2147483648, %v4635_v52  ;;  %v3072_v18 = vor.u32 %v3071_v10, %v3070_v29  ;;  %v3075_v46 = vshll.u32 %v3074_v37, 23  ;;  %v3321_v1 = vsel %vm3320_vm9, %v3319_v54, 0 }
 0x377   : > { %v2890_v49 = vsel %vm2888_vm0, %v2889_v24, %v4635_v52  ;;  %v3086_v35 = vsel %vm6773_vm3, 0, %v6768_v22  ;;  %v3323_v15 = vand.u32 31, %v3321_v1  ;;  %v3156_v29 = vmul.u32 %v6744_v50, %v3140_v51 }
 0x378   : > { %v2887_v61 = vsel %vm2885_vm2, %v4633_v3, %v2886_v6  ;;  %v3076_v9 = vor.u32 4788187, %v3075_v46  ;;  %v3079_v62 = vcvt.s32.f32 %v3072_v18  ;;  %v6804_v38 = vshrl.u32 %v3321_v1, 5  ;;  %v2048_v3 = vpop.f32.mrb[14].mxu1 }
 0x379   : > { %v2891_v17 = vsel %vm2884_vm5, %v2887_v61, %v2890_v49  ;;  %vm3158_vm10 = vc.u32 %v6785_v11, %v6790_v40  ;;  %v3324_v22 = vsub.s32 32, %v3323_v15  ;;  %v3159_v50 = vadd.s32 1, %v6791_v53  ;;  %v2049_v37 = vpop.f32.mrb[15].mxu1 }
 0x37a   : > { %v2892_v34 = vsel %vm2881_vm7, nan, %v2891_v17  ;;  %v3077_v54 = vand.u32 2147483647, %v3076_v9  ;;  %v3326_v51 = vshll.u32 %v4908_v63, %v3323_v15  ;;  %v3329_v10 = vshll.u32 %v4909_v14, %v3323_v15 }
 0x37b   : > { %v4020_v31 = vmul.f32 %v3958_v30, %v2892_v34  ;;  %v3327_v59 = vshrl.u32 %v4909_v14, %v3324_v22  ;;  %v3330_v43 = vshrl.u32 %v4910_v23, %v3324_v22  ;;  %v3332_v52 = vshll.u32 %v4910_v23, %v3323_v15 }
 0x37c   : > { %v3080_v21 = vmul.f32 %v3079_v62, %v3077_v54  ;;  %v3160_v24 = vsel %vm3158_vm10, %v3159_v50, %v6791_v53  ;;  %v3333_v33 = vshrl.u32 %v4911_v0, %v3324_v22  ;;  %v3335_v30 = vshll.u32 %v4911_v0, %v3323_v15 }
 0x37d   : > { %4036 = vst [vmem:[%s6281_s28 + $0x28] sm:$0xff] %v4020_v31  ;;  %v3336_v6 = vshrl.u32 %v4912_v12, %v3324_v22  ;;  %v3161_v46 = vadd.s32 %v3160_v24, %v3156_v29  ;;  %v3328_v1 = vor.u32 %v3327_v59, %v3326_v51  ;;  %v3331_v49 = vor.u32 %v3330_v43, %v3329_v10 }
 0x37e   : > { %v3081_v18 = vxor.u32 2147483648, %v3080_v21  ;;  %v3334_v61 = vor.u32 %v3333_v33, %v3332_v52  ;;  %v3338_v17 = vshll.u32 %v4912_v12, %v3323_v15  ;;  %v3339_v62 = vshrl.u32 %v4913_v25, %v3324_v22 }
 0x37f   : > { %v3337_v9 = vor.u32 %v3336_v6, %v3335_v30  ;;  %v3090_v53 = vadd.s32 3, %v3086_v35  ;;  %v3162_v54 = vadd.s32 536870912, %v3161_v46  ;;  %v3357_v3 = vshll.u32 %v3317_v27, 8 }
 0x380   : > { %v3082_v34 = vsel %vm2999_vm15, %v3081_v18, %v3080_v21  ;;  %v3325_v31 = vshrl.u32 %v4908_v63, %v3324_v22  ;;  %v3340_v50 = vor.u32 %v3339_v62, %v3338_v17  ;;  %vm3341_vm11 = vcmp.lt.s32.totalorder %v6804_v38, 1 }
 0x381   : > { %v3085_v29 = vsel %vm6773_vm3, %v6524_v42, %v3082_v34  ;;  %v3163_v15 = vshrl.u32 %v3162_v54, 30  ;;  %vm3344_vm12 = vcmp.lt.s32.totalorder %v6804_v38, 4  ;;  %v3349_v35 = vsel %vm3341_vm11, %v3328_v1, %v3331_v49 }
 0x382   : > { %4636 = vcosq.f32 %v3085_v29  ;;  %vm3343_vm13 = vcmp.lt.s32.totalorder %v6804_v38, 3  ;;  %v3346_v36 = vsel %vm3344_vm12, %v3334_v61, 2102212464  ;;  %v3350_v27 = vsel %vm3344_vm12, %v3337_v9, 920167782 }
 0x383   : > { %4638 = vsinq.f32 %v3085_v29  ;;  %v3164_v51 = vshll.u32 %v3163_v15, 30  ;;  %vm3342_vm15 = vcmp.lt.s32.totalorder %v6804_v38, 2  ;;  %v3351_v39 = vsel %vm3343_vm13, %v3334_v61, %v3350_v27 }
 0x384   : > { %v3353_v22 = vsel %vm3341_vm11, %v3331_v49, %v3334_v61  ;;  %v3352_v10 = vsel %vm3342_vm15, %v3349_v35, %v3351_v39  ;;  %v3354_v37 = vsel %vm3344_vm12, %v3340_v50, 1326507024  ;;  %v2160_v21 = vmul.f32 %v2110_v44, %v6277_v8 }
 0x385   : > { %v2212_v59 = vrot.slane %v6613_v55, %v5895_v7  ;;  %v6849_v43 = vsub.s32 %v3161_v46, %v3164_v51  ;;  %v3345_v52 = vsel %vm3341_vm11, %v3325_v31, %v3328_v1  ;;  %v3347_v24 = vsel %vm3343_vm13, %v3331_v49, %v3346_v36 }
 0x386   : > { %v3355_v33 = vsel %vm3343_vm13, %v3337_v9, %v3354_v37  ;;  %v6855_v6 = vmul.u32.u64.low %v3357_v3, %v3352_v10  ;;  %v6856_v18 = vmul.u32.u64.high %v3357_v3, %v3352_v10, %v6855_v6  ;;  %v3091_v61 = vand.u32 3, %v3090_v53 }
 0x387   : > { %v3356_v30 = vsel %vm3342_vm15, %v3353_v22, %v3355_v33  ;;  %v3167_v8 = vsub.s32 0, %v6849_v43  ;;  %v3187_v46 = vsub.s32 4, %v3163_v15  ;;  %v3348_v62 = vsel %vm3342_vm15, %v3345_v52, %v3347_v24 }
 0x388   : > { %v6860_v44 = vmul.u32.u64.low %v3357_v3, %v3356_v30  ;;  %v6861_v17 = vmul.u32.u64.high %v3357_v3, %v3356_v30, %v6860_v44  ;;  %v6865_v1 = vadd.f32 %v2212_v59, %v2160_v21  ;;  %v3966_v49 = vrot.slane %v6733_v28, %v6479_v47 }
 0x389   : > { %v4347_v9 = vmin.u32 %v3167_v8, %v6849_v43  ;;  %vm3089_vm0 = vweird.f32 %v6524_v42  ;;  %vm6873_vm14 = vcmp.le.f32.partialorder %v3101_v13, 0.7853982  ;;  %v3367_v53 = vadd.s32 1, %v6856_v18 }
 0x38a   : > { %v3208_v38 = vand.u32 2139095040, %v6865_v1  ;;  %vm3096_vm1 = vcmp.eq.s32.totalorder %v3091_v61, 2  ;;  %vm3103_vm2 = vcmp.lt.s32.totalorder %v6663_v20, 0  ;;  %v3364_v28 = vmul.u32 %v3357_v3, %v3348_v62 }
 0x38b   : > { %v3169_v29 = vclz %v4347_v9  ;;  %v3188_v35 = vsel %vm3103_vm2, %v3187_v46, %v3163_v15  ;;  %vm3366_vm3 = vc.u32 %v6861_v17, %v6855_v6  ;;  %v3205_v13 = vand.u32 2147483647, %v6865_v1 }
 0x38c   : > { %v4637_v54 = vpop.eup %4636  ;;  %v3368_v51 = vsel %vm3366_vm3, %v3367_v53, %v6856_v18  ;;  %v3209_v39 = vshrl.u32 %v3208_v38, 23  ;;  %vm3092_vm4 = vcmp.lt.s32.totalorder %v3091_v61, 2  ;;  %vm3093_vm5 = vcmp.eq.s32.totalorder %v3091_v61, 0  ;;  %v6900_v53 = vld [vmem:[#allocation8 + $0x8] sm:$0xff] }
 0x38d   : > { %v4639_v31 = vpop.eup %4638  ;;  %v3097_v50 = vxor.u32 2147483648, %v4637_v54  ;;  %v4348_v27 = vadd.s32 4294967294, %v3169_v29  ;;  %v3369_v10 = vadd.s32 %v3368_v51, %v3364_v28  ;;  %v3157_v37 = vadd.s32 %v6790_v40, %v6785_v11 }
 0x38e   : > { %v3094_v36 = vxor.u32 2147483648, %v4639_v31  ;;  %v4350_v15 = vadd.s32 4294967169, %v3209_v39  ;;  %v3190_v52 = vsel %vm6873_vm14, 0, %v3188_v35  ;;  %v3212_v61 = vand.u32 8388607, %v3205_v13 }
 0x38f   : > { %v3098_v22 = vsel %vm3096_vm1, %v3097_v50, %v4639_v31  ;;  %vm4349_vm6 = vcmp.lt.s32.totalorder %v4348_v27, 0  ;;  %v3370_v24 = vadd.s32 536870912, %v3369_v10  ;;  %v2118_v40 = vrot.slane %v6604_v26, %v5914_v58 }
 0x390   : > { %v3095_v3 = vsel %vm3093_vm5, %v4637_v54, %v3094_v36  ;;  %v3172_v59 = vsel %vm4349_vm6, 0, %v4348_v27  ;;  %v3215_v11 = vadd.s32 1, %v4350_v15  ;;  %v3194_v42 = vadd.s32 3, %v3190_v52 }
 0x391   : > { %v3099_v21 = vsel %vm3092_vm4, %v3095_v3, %v3098_v22  ;;  %v3173_v30 = vsub.s32 32, %v3172_v59  ;;  %v3177_v18 = vsub.s32 4294967266, %v3172_v59  ;;  %v6894_v44 = vshrl.u32 %v3370_v24, 30 }
 0x392   : > { %v3100_v33 = vsel %vm3089_vm0, nan, %v3099_v21  ;;  %v3174_v46 = vshll.u32 %v6849_v43, %v3172_v59  ;;  %vm3216_vm7 = vcmp.gt.s32.totalorder %v3215_v11, 0  ;;  %v2162_v35 = vmul.f32 %v2118_v40, %v6417_v5 }
 0x393   : > { %v4022_v8 = vmul.f32 %v3966_v49, %v3100_v33  ;;  %v3175_v62 = vshrl.u32 %v3157_v37, %v3173_v30  ;;  %v3178_v9 = vadd.s32 127, %v3177_v18  ;;  %v3372_v38 = vshll.u32 %v6894_v44, 30 }
 0x394   : > { %v3213_v49 = vor.u32 8388608, %v3212_v61  ;;  %v3217_v28 = vsel %vm3216_vm7, %v3215_v11, 0  ;;  %v2220_v43 = vrot.slane %v6613_v55, %v5914_v58  ;;  %v3970_v27 = vrot.slane %v6900_v53, %v5887_v48 }
 0x395   : > { %4038 = vst [vmem:[%s6281_s28 + $0x38] sm:$0xff] %v4022_v8  ;;  %v3176_v54 = vor.u32 %v3175_v62, %v3174_v46  ;;  %v3179_v29 = vshll.u32 %v3178_v9, 23  ;;  %v6903_v31 = vsub.s32 %v3369_v10, %v3372_v38  ;;  %v3219_v50 = vand.u32 31, %v3217_v28 }
 0x396   : > { %v3978_v51 = vrot.slane %v6900_v53, %v5892_v60  ;;  %v6912_v39 = vand.u32 3, %v3194_v42  ;;  %v2122_v10 = vrot.slane %v6604_v26, %v6034_v56  ;;  %v3365_v15 = vadd.s32 %v6855_v6, %v6861_v17 }
 0x397   : > { %v3180_v36 = vor.u32 4788187, %v3179_v29  ;;  %v3375_v22 = vsub.s32 0, %v6903_v31  ;;  %v3220_v3 = vsub.s32 32, %v3219_v50  ;;  %v3183_v5 = vcvt.s32.f32 %v3176_v54 }
 0x398   : > { %v6919_v21 = vshll.u32 %v3213_v49, 8  ;;  %v3395_v52 = vsub.s32 4, %v6894_v44  ;;  %v6924_v33 = vadd.f32 %v2220_v43, %v2162_v35  ;;  %v3218_v40 = vshrl.u32 %v3217_v28, 5 }
 0x399   : > { %v3181_v37 = vand.u32 2147483647, %v3180_v36  ;;  %v4355_v59 = vmin.u32 %v3375_v22, %v6903_v31  ;;  %v3223_v24 = vshrl.u32 %v4909_v14, %v3220_v3  ;;  %v3226_v18 = vshrl.u32 %v4910_v23, %v3220_v3 }
 0x39a   : > { %v3229_v61 = vshrl.u32 %v4911_v0, %v3220_v3  ;;  %v3232_v8 = vshrl.u32 %v4912_v12, %v3220_v3  ;;  %v3222_v6 = vshll.u32 %v4908_v63, %v3219_v50  ;;  %v3228_v17 = vshll.u32 %v4910_v23, %v3219_v50 }
 0x39b   : > { %v3184_v30 = vmul.f32 %v3183_v5, %v3181_v37  ;;  %v3377_v11 = vclz %v4355_v59  ;;  %v3221_v62 = vshrl.u32 %v4908_v63, %v3220_v3  ;;  %v3225_v9 = vshll.u32 %v4909_v14, %v3219_v50 }
 0x39c   : > { %v3231_v42 = vshll.u32 %v4911_v0, %v3219_v50  ;;  %vm3311_vm8 = vcmp.lt.s32.totalorder %v6717_v32, 0  ;;  %v3224_v54 = vor.u32 %v3223_v24, %v3222_v6  ;;  %v3230_v29 = vor.u32 %v3229_v61, %v3228_v17 }
 0x39d   : > { %v3185_v46 = vxor.u32 2147483648, %v3184_v30  ;;  %v4356_v38 = vadd.s32 4294967294, %v3377_v11  ;;  %v3235_v49 = vshrl.u32 %v4913_v25, %v3220_v3  ;;  %v3227_v35 = vor.u32 %v3226_v18, %v3225_v9 }
 0x39e   : > { %v3233_v43 = vor.u32 %v3232_v8, %v3231_v42  ;;  %v3234_v36 = vshll.u32 %v4912_v12, %v3219_v50  ;;  %vm3237_vm10 = vcmp.lt.s32.totalorder %v3218_v40, 1  ;;  %vm3238_vm11 = vcmp.lt.s32.totalorder %v3218_v40, 2 }
 0x39f   : > { %v3186_v28 = vsel %vm3103_vm2, %v3185_v46, %v3184_v30  ;;  %vm4357_vm9 = vcmp.lt.s32.totalorder %v4356_v38, 0  ;;  %vm6944_vm12 = vcmp.le.f32.partialorder %v3309_v19, 0.7853982  ;;  %vm3240_vm13 = vcmp.lt.s32.totalorder %v3218_v40, 4 }
 0x3a0   : > { %v3189_v22 = vsel %vm6873_vm14, %v6663_v20, %v3186_v28  ;;  %v3380_v3 = vsel %vm4357_vm9, 0, %v4356_v38  ;;  %v3236_v5 = vor.u32 %v3235_v49, %v3234_v36  ;;  %v3242_v24 = vsel %vm3240_vm13, %v3230_v29, 2102212464 }
 0x3a1   : > { %4640 = vcosq.f32 %v3189_v22  ;;  %v3381_v59 = vsub.s32 32, %v3380_v3  ;;  %v3385_v50 = vsub.s32 4294967266, %v3380_v3  ;;  %v3382_v34 = vshll.u32 %v6903_v31, %v3380_v3 }
 0x3a2   : > { %4642 = vsinq.f32 %v3189_v22  ;;  %vm3239_vm15 = vcmp.lt.s32.totalorder %v3218_v40, 3  ;;  %v3245_v30 = vsel %vm3237_vm10, %v3224_v54, %v3227_v35  ;;  %v3246_v18 = vsel %vm3240_vm13, %v3233_v43, 920167782 }
 0x3a3   : > { %v3383_v61 = vshrl.u32 %v3365_v15, %v3381_v59  ;;  %v3386_v19 = vadd.s32 127, %v3385_v50  ;;  %v3247_v8 = vsel %vm3239_vm15, %v3230_v29, %v3246_v18  ;;  %v3249_v11 = vsel %vm3237_vm10, %v3227_v35, %v3230_v29 }
 0x3a4   : > { %v3241_v6 = vsel %vm3237_vm10, %v3221_v62, %v3224_v54  ;;  %v3243_v17 = vsel %vm3239_vm15, %v3227_v35, %v3242_v24  ;;  %v3248_v46 = vsel %vm3238_vm11, %v3245_v30, %v3247_v8  ;;  %v3250_v9 = vsel %vm3240_vm13, %v3236_v5, 1326507024 }
 0x3a5   : > { %v3384_v42 = vor.u32 %v3383_v61, %v3382_v34  ;;  %v3387_v38 = vshll.u32 %v3386_v19, 23  ;;  %v3251_v31 = vsel %vm3239_vm15, %v3233_v43, %v3250_v9  ;;  %v3416_v49 = vand.u32 2139095040, %v6924_v33 }
 0x3a6   : > { %v3396_v15 = vsel %vm3311_vm8, %v3395_v52, %v6894_v44  ;;  %v3252_v28 = vsel %vm3238_vm11, %v3249_v11, %v3251_v31  ;;  %v6962_v29 = vmul.u32.u64.low %v6919_v21, %v3248_v46  ;;  %v6963_v36 = vmul.u32.u64.high %v6919_v21, %v3248_v46, %v6962_v29 }
 0x3a7   : > { %vm3193_vm0 = vweird.f32 %v6663_v20  ;;  %v3388_v62 = vor.u32 4788187, %v3387_v38  ;;  %v6968_v54 = vmul.u32.u64.low %v6919_v21, %v3252_v28  ;;  %v6969_v35 = vmul.u32.u64.high %v6919_v21, %v3252_v28, %v6968_v54 }
 0x3a8   : > { %v2224_v43 = vrot.slane %v6613_v55, %v6034_v56  ;;  %vm3196_vm14 = vcmp.lt.s32.totalorder %v6912_v39, 2  ;;  %vm3197_vm1 = vcmp.eq.s32.totalorder %v6912_v39, 0  ;;  %v3244_v44 = vsel %vm3238_vm11, %v3241_v6, %v3243_v17 }
 0x3a9   : > { %v3417_v52 = vshrl.u32 %v3416_v49, 23  ;;  %v3389_v22 = vand.u32 2147483647, %v3388_v62  ;;  %v3391_v3 = vcvt.s32.f32 %v3384_v42  ;;  %v3398_v5 = vsel %vm6944_vm12, 0, %v3396_v15 }
 0x3aa   : > { %v3413_v59 = vand.u32 2147483647, %v6924_v33  ;;  %vm3200_vm2 = vcmp.eq.s32.totalorder %v6912_v39, 2  ;;  %v3263_v24 = vadd.s32 1, %v6963_v36  ;;  %v2163_v40 = vmul.f32 %v2122_v10, %v6629_v2 }
 0x3ab   : > { %v4641_v50 = vpop.eup %4640  ;;  %v4358_v34 = vadd.s32 4294967169, %v3417_v52  ;;  %v3392_v61 = vmul.f32 %v3391_v3, %v3389_v22  ;;  %v3260_v19 = vmul.u32 %v6919_v21, %v3244_v44  ;;  %vm3262_vm3 = vc.u32 %v6969_v35, %v6962_v29 }
 0x3ac   : > { %v4643_v30 = vpop.eup %4642  ;;  %v3201_v18 = vxor.u32 2147483648, %v4641_v50  ;;  %v3402_v11 = vadd.s32 3, %v3398_v5  ;;  %v3264_v6 = vsel %vm3262_vm3, %v3263_v24, %v6963_v36  ;;  %v3420_v38 = vand.u32 8388607, %v3413_v59 }
 0x3ad   : > { %v3198_v8 = vxor.u32 2147483648, %v4643_v30  ;;  %v3423_v17 = vadd.s32 1, %v4358_v34  ;;  %v3393_v9 = vxor.u32 2147483648, %v3392_v61  ;;  %v3265_v42 = vadd.s32 %v3264_v6, %v3260_v19 }
 0x3ae   : > { %v3202_v46 = vsel %vm3200_vm2, %v3201_v18, %v4643_v30  ;;  %v6993_v10 = vadd.f32 %v2224_v43, %v2163_v40  ;;  %v2130_v21 = vrot.slane %v6604_v26, %v6037_v45  ;;  %v7006_v54 = vand.u32 3, %v3402_v11 }
 0x3af   : > { %v3199_v2 = vsel %vm3197_vm1, %v4641_v50, %v3198_v8  ;;  %vm3424_vm4 = vcmp.gt.s32.totalorder %v3423_v17, 0  ;;  %v3394_v49 = vsel %vm3311_vm8, %v3393_v9, %v3392_v61  ;;  %v3266_v15 = vadd.s32 536870912, %v3265_v42 }
 0x3b0   : > { %v3203_v31 = vsel %vm3196_vm14, %v3199_v2, %v3202_v46  ;;  %v3425_v28 = vsel %vm3424_vm4, %v3423_v17, 0  ;;  %v3397_v62 = vsel %vm6944_vm12, %v6717_v32, %v3394_v49  ;;  %v3421_v44 = vor.u32 8388608, %v3420_v38 }
 0x3b1   : > { %v3204_v36 = vsel %vm3193_vm0, nan, %v3203_v31  ;;  %v3427_v43 = vand.u32 31, %v3425_v28  ;;  %4644 = vcosq.f32 %v3397_v62  ;;  %v7011_v39 = vshrl.u32 %v3266_v15, 30 }
 0x3b2   : > { %v4023_v26 = vmul.f32 %v3970_v27, %v3204_v36  ;;  %4646 = vsinq.f32 %v3397_v62  ;;  %v7014_v20 = vmul.f32 %v2130_v21, %v6631_v4  ;;  %v2232_v37 = vrot.slane %v6613_v55, %v6037_v45 }
 0x3b3   : > { %v3428_v52 = vsub.s32 32, %v3427_v43  ;;  %v3268_v22 = vshll.u32 %v7011_v39, 30  ;;  %v3430_v3 = vshll.u32 %v4908_v63, %v3427_v43  ;;  %v3433_v48 = vshll.u32 %v4909_v14, %v3427_v43 }
 0x3b4   : > { %4039 = vst [vmem:[%s6281_s28 + $0x40] sm:$0xff] %v4023_v26  ;;  %v3520_v27 = vand.u32 2139095040, %v6993_v10  ;;  %v3436_v24 = vshll.u32 %v4910_v23, %v3427_v43  ;;  %vm3408_vm5 = vcmp.eq.s32.totalorder %v7006_v54, 2  ;;  %v3426_v40 = vshrl.u32 %v3425_v28, 5 }
 0x3b5   : > { %v3431_v5 = vshrl.u32 %v4909_v14, %v3428_v52  ;;  %v3434_v50 = vshrl.u32 %v4910_v23, %v3428_v52  ;;  %v3437_v4 = vshrl.u32 %v4911_v0, %v3428_v52  ;;  %v7028_v34 = vsub.s32 %v3265_v42, %v3268_v22 }
 0x3b6   : > { %v3439_v30 = vshll.u32 %v4911_v0, %v3427_v43  ;;  %v3440_v18 = vshrl.u32 %v4912_v12, %v3428_v52  ;;  %vm3405_vm6 = vcmp.eq.s32.totalorder %v7006_v54, 0  ;;  %vm3207_vm7 = vcmp.lt.s32.totalorder %v6865_v1, 0 }
 0x3b7   : > { %v3432_v61 = vor.u32 %v3431_v5, %v3430_v3  ;;  %v3435_v19 = vor.u32 %v3434_v50, %v3433_v48  ;;  %v3438_v8 = vor.u32 %v3437_v4, %v3436_v24  ;;  %v7034_v11 = vshll.u32 %v3421_v44, 8 }
 0x3b8   : > { %vm3404_vm8 = vcmp.lt.s32.totalorder %v7006_v54, 2  ;;  %v3271_v6 = vsub.s32 0, %v7028_v34  ;;  %v3441_v17 = vor.u32 %v3440_v18, %v3439_v30  ;;  %v3442_v46 = vshll.u32 %v4912_v12, %v3427_v43 }
 0x3b9   : > { %v3443_v9 = vshrl.u32 %v4913_v25, %v3428_v52  ;;  %vm3401_vm9 = vweird.f32 %v6717_v32  ;;  %v3261_v42 = vadd.s32 %v6962_v29, %v6969_v35  ;;  %v3429_v38 = vshrl.u32 %v4908_v63, %v3428_v52 }
 0x3ba   : > { %v3517_v2 = vand.u32 2147483647, %v6993_v10  ;;  %v3521_v21 = vshrl.u32 %v3520_v27, 23  ;;  %v4351_v31 = vmin.u32 %v3271_v6, %v7028_v34  ;;  %vm3445_vm10 = vcmp.lt.s32.totalorder %v3426_v40, 1 }
 0x3bb   : > { %v3444_v49 = vor.u32 %v3443_v9, %v3442_v46  ;;  %vm3448_vm11 = vcmp.lt.s32.totalorder %v3426_v40, 4  ;;  %vm7048_vm12 = vcmp.le.f32.partialorder %v3205_v13, 0.7853982  ;;  %v3291_v28 = vsub.s32 4, %v7011_v39  ;;  %v4645_v62 = vpop.eup %4644 }
 0x3bc   : > { %v3450_v36 = vsel %vm3448_vm11, %v3438_v8, 2102212464  ;;  %v3453_v29 = vsel %vm3445_vm10, %v3432_v61, %v3435_v19  ;;  %v3454_v35 = vsel %vm3448_vm11, %v3441_v17, 920167782  ;;  %v3273_v43 = vclz %v4351_v31  ;;  %v4647_v44 = vpop.eup %4646 }
 0x3bd   : > { %vm3446_vm13 = vcmp.lt.s32.totalorder %v3426_v40, 2  ;;  %vm3447_vm15 = vcmp.lt.s32.totalorder %v3426_v40, 3  ;;  %v3449_v26 = vsel %vm3445_vm10, %v3429_v38, %v3432_v61  ;;  %v3409_v52 = vxor.u32 2147483648, %v4645_v62 }
 0x3be   : > { %v3455_v22 = vsel %vm3447_vm15, %v3438_v8, %v3454_v35  ;;  %v3457_v3 = vsel %vm3445_vm10, %v3435_v19, %v3438_v8  ;;  %v3458_v48 = vsel %vm3448_vm11, %v3444_v49, 1326507024  ;;  %v3406_v27 = vxor.u32 2147483648, %v4647_v44 }
 0x3bf   : > { %v4352_v13 = vadd.s32 4294967294, %v3273_v43  ;;  %v3451_v5 = vsel %vm3447_vm15, %v3435_v19, %v3450_v36  ;;  %v3456_v50 = vsel %vm3446_vm13, %v3453_v29, %v3455_v22  ;;  %v3410_v24 = vsel %vm3408_vm5, %v3409_v52, %v4647_v44 }
 0x3c0   : > { %v3459_v4 = vsel %vm3447_vm15, %v3441_v17, %v3458_v48  ;;  %v7057_v30 = vmul.u32.u64.low %v7034_v11, %v3456_v50  ;;  %v7058_v18 = vmul.u32.u64.high %v7034_v11, %v3456_v50, %v7057_v30  ;;  %v3407_v61 = vsel %vm3405_vm6, %v4645_v62, %v3406_v27 }
 0x3c1   : > { %vm4353_vm0 = vcmp.lt.s32.totalorder %v4352_v13, 0  ;;  %v3292_v8 = vsel %vm3207_vm7, %v3291_v28, %v7011_v39  ;;  %v3460_v19 = vsel %vm3446_vm13, %v3457_v3, %v3459_v4  ;;  %v3411_v6 = vsel %vm3404_vm8, %v3407_v61, %v3410_v24 }
 0x3c2   : > { %v3276_v17 = vsel %vm4353_vm0, 0, %v4352_v13  ;;  %v7070_v46 = vmul.u32.u64.low %v7034_v11, %v3460_v19  ;;  %v7071_v9 = vmul.u32.u64.high %v7034_v11, %v3460_v19, %v7070_v46  ;;  %v3412_v38 = vsel %vm3401_vm9, nan, %v3411_v6 }
 0x3c3   : > { %v3277_v31 = vsub.s32 32, %v3276_v17  ;;  %v3281_v49 = vsub.s32 4294967266, %v3276_v17  ;;  %v3452_v36 = vsel %vm3446_vm13, %v3449_v26, %v3451_v5  ;;  %v4025_v39 = vmul.f32 %v3978_v51, %v3412_v38 }
 0x3c4   : > { %v3471_v54 = vadd.s32 1, %v7058_v18  ;;  %v4362_v28 = vadd.s32 4294967169, %v3521_v21  ;;  %v3524_v29 = vand.u32 8388607, %v3517_v2  ;;  %v3278_v35 = vshll.u32 %v7028_v34, %v3276_v17 }
 0x3c5   : > { %v3279_v62 = vshrl.u32 %v3261_v42, %v3277_v31  ;;  %v3282_v43 = vadd.s32 127, %v3281_v49  ;;  %v3294_v32 = vsel %vm7048_vm12, 0, %v3292_v8  ;;  %4041 = vst [vmem:[%s6281_s28 + $0x50] sm:$0xff] %v4025_v39  ;;  %v3468_v40 = vmul.u32 %v7034_v11, %v3452_v36 }
 0x3c6   : > { %vm3470_vm14 = vc.u32 %v7071_v9, %v7057_v30  ;;  %v3527_v60 = vadd.s32 1, %v4362_v28  ;;  %v3298_v44 = vadd.s32 3, %v3294_v32  ;;  %v3525_v22 = vor.u32 8388608, %v3524_v29 }
 0x3c7   : > { %v3280_v51 = vor.u32 %v3279_v62, %v3278_v35  ;;  %v3283_v26 = vshll.u32 %v3282_v43, 23  ;;  %v3472_v21 = vsel %vm3470_vm14, %v3471_v54, %v7058_v18  ;;  %v7094_v3 = vadd.f32 %v2232_v37, %v7014_v20 }
 0x3c8   : > { %v3473_v52 = vadd.s32 %v3472_v21, %v3468_v40  ;;  %vm3528_vm1 = vcmp.gt.s32.totalorder %v3527_v60, 0  ;;  %v3974_v5 = vrot.slane %v6900_v53, %v5895_v7  ;;  %v7098_v50 = vand.u32 3, %v3298_v44 }
 0x3c9   : > { %v3284_v34 = vor.u32 4788187, %v3283_v26  ;;  %v3529_v42 = vsel %vm3528_vm1, %v3527_v60, 0  ;;  %v3287_v13 = vcvt.s32.f32 %v3280_v51  ;;  %vm3415_vm2 = vcmp.lt.s32.totalorder %v6924_v33, 0 }
 0x3ca   : > { %v3474_v11 = vadd.s32 536870912, %v3473_v52  ;;  %v3531_v48 = vand.u32 31, %v3529_v42  ;;  %v7101_v18 = vshll.u32 %v3525_v22, 8  ;;  %v3530_v8 = vshrl.u32 %v3529_v42, 5 }
 0x3cb   : > { %v3285_v27 = vand.u32 2147483647, %v3284_v34  ;;  %v3725_v55 = vand.u32 2147483647, %v7094_v3  ;;  %v3728_v20 = vand.u32 2139095040, %v7094_v3  ;;  %vm3297_vm8 = vweird.f32 %v6865_v1 }
 0x3cc   : > { %v3475_v24 = vshrl.u32 %v3474_v11, 30  ;;  %v3532_v4 = vsub.s32 32, %v3531_v48  ;;  %v3534_v19 = vshll.u32 %v4908_v63, %v3531_v48  ;;  %v3537_v17 = vshll.u32 %v4909_v14, %v3531_v48 }
 0x3cd   : > { %v3288_v61 = vmul.f32 %v3287_v13, %v3285_v27  ;;  %vm7113_vm3 = vcmp.le.f32.partialorder %v3413_v59, 0.7853982  ;;  %v3540_v54 = vshll.u32 %v4910_v23, %v3531_v48  ;;  %v3543_v28 = vshll.u32 %v4911_v0, %v3531_v48 }
 0x3ce   : > { %v3476_v37 = vshll.u32 %v3475_v24, 30  ;;  %v3535_v6 = vshrl.u32 %v4909_v14, %v3532_v4  ;;  %v3538_v38 = vshrl.u32 %v4910_v23, %v3532_v4  ;;  %v3541_v31 = vshrl.u32 %v4911_v0, %v3532_v4 }
 0x3cf   : > { %v3289_v46 = vxor.u32 2147483648, %v3288_v61  ;;  %v3544_v49 = vshrl.u32 %v4912_v12, %v3532_v4  ;;  %v3547_v29 = vshrl.u32 %v4913_v25, %v3532_v4  ;;  %v3499_v62 = vsub.s32 4, %v3475_v24 }
 0x3d0   : > { %v7117_v39 = vsub.s32 %v3473_v52, %v3476_v37  ;;  %v3536_v43 = vor.u32 %v3535_v6, %v3534_v19  ;;  %v3546_v32 = vshll.u32 %v4912_v12, %v3531_v48  ;;  %v3539_v60 = vor.u32 %v3538_v38, %v3537_v17 }
 0x3d1   : > { %v3290_v35 = vsel %vm3207_vm7, %v3289_v46, %v3288_v61  ;;  %v3542_v51 = vor.u32 %v3541_v31, %v3540_v54  ;;  %v3545_v26 = vor.u32 %v3544_v49, %v3543_v28  ;;  %v3729_v44 = vshrl.u32 %v3728_v20, 23 }
 0x3d2   : > { %v3293_v59 = vsel %vm7048_vm12, %v6865_v1, %v3290_v35  ;;  %v3479_v40 = vsub.s32 0, %v7117_v39  ;;  %v3548_v21 = vor.u32 %v3547_v29, %v3546_v32  ;;  %v3533_v22 = vshrl.u32 %v4908_v63, %v3532_v4 }
 0x3d3   : > { %4648 = vcosq.f32 %v3293_v59  ;;  %v3732_v34 = vand.u32 8388607, %v3725_v55  ;;  %v3500_v15 = vsel %vm3415_vm2, %v3499_v62, %v3475_v24  ;;  %vm3549_vm4 = vcmp.lt.s32.totalorder %v3530_v8, 1 }
 0x3d4   : > { %4650 = vsinq.f32 %v3293_v59  ;;  %v4359_v52 = vmin.u32 %v3479_v40, %v7117_v39  ;;  %vm3550_vm5 = vcmp.lt.s32.totalorder %v3530_v8, 2  ;;  %vm3551_vm6 = vcmp.lt.s32.totalorder %v3530_v8, 3 }
 0x3d5   : > { %vm3552_vm7 = vcmp.lt.s32.totalorder %v3530_v8, 4  ;;  %v3557_v11 = vsel %vm3549_vm4, %v3536_v43, %v3539_v60  ;;  %v3561_v48 = vsel %vm3549_vm4, %v3539_v60, %v3542_v51  ;;  %v3553_v27 = vsel %vm3549_vm4, %v3533_v22, %v3536_v43 }
 0x3d6   : > { %v3481_v42 = vclz %v4359_v52  ;;  %v3554_v13 = vsel %vm3552_vm7, %v3542_v51, 2102212464  ;;  %v3558_v61 = vsel %vm3552_vm7, %v3545_v26, 920167782  ;;  %v3562_v20 = vsel %vm3552_vm7, %v3548_v21, 1326507024 }
 0x3d7   : > { %v3555_v19 = vsel %vm3551_vm6, %v3539_v60, %v3554_v13  ;;  %v3559_v4 = vsel %vm3551_vm6, %v3542_v51, %v3558_v61  ;;  %v3563_v6 = vsel %vm3551_vm6, %v3545_v26, %v3562_v20  ;;  %v3502_v17 = vsel %vm7113_vm3, 0, %v3500_v15 }
 0x3d8   : > { %v4360_v37 = vadd.s32 4294967294, %v3481_v42  ;;  %v3560_v24 = vsel %vm3550_vm5, %v3557_v11, %v3559_v4  ;;  %v3564_v46 = vsel %vm3550_vm5, %v3561_v48, %v3563_v6  ;;  %v4370_v38 = vadd.s32 4294967169, %v3729_v44  ;;  %v7169_v6 = vld [vmem:[#allocation5 + $0x8] sm:$0xff] }
 0x3d9   : > { %v3556_v31 = vsel %vm3550_vm5, %v3553_v27, %v3555_v19  ;;  %v7142_v49 = vmul.u32.u64.low %v7101_v18, %v3564_v46  ;;  %v7143_v54 = vmul.u32.u64.high %v7101_v18, %v3564_v46, %v7142_v49  ;;  %vm3301_vm10 = vcmp.eq.s32.totalorder %v7098_v50, 0 }
 0x3da   : > { %vm4361_vm9 = vcmp.lt.s32.totalorder %v4360_v37, 0  ;;  %v7147_v29 = vmul.u32.u64.low %v7101_v18, %v3560_v24  ;;  %v7148_v35 = vmul.u32.u64.high %v7101_v18, %v3560_v24, %v7147_v29  ;;  %v3469_v62 = vadd.s32 %v7057_v30, %v7071_v9 }
 0x3db   : > { %v3484_v28 = vsel %vm4361_vm9, 0, %v4360_v37  ;;  %v3735_v59 = vadd.s32 1, %v4370_v38  ;;  %vm3304_vm11 = vcmp.eq.s32.totalorder %v7098_v50, 2  ;;  %v3506_v40 = vadd.s32 3, %v3502_v17 }
 0x3dc   : > { %v3485_v43 = vsub.s32 32, %v3484_v28  ;;  %v3489_v32 = vsub.s32 4294967266, %v3484_v28  ;;  %v3572_v60 = vmul.u32 %v7101_v18, %v3556_v31  ;;  %v3733_v51 = vor.u32 8388608, %v3732_v34 }
 0x3dd   : > { %v4649_v8 = vpop.eup %4648  ;;  %v3486_v44 = vshll.u32 %v7117_v39, %v3484_v28  ;;  %vm3574_vm12 = vc.u32 %v7143_v54, %v7147_v29  ;;  %v3575_v30 = vadd.s32 1, %v7148_v35  ;;  %vm3736_vm13 = vcmp.gt.s32.totalorder %v3735_v59, 0 }
 0x3de   : > { %v4651_v26 = vpop.eup %4650  ;;  %v3305_v21 = vxor.u32 2147483648, %v4649_v8  ;;  %v3487_v52 = vshrl.u32 %v3469_v62, %v3485_v43  ;;  %v3490_v22 = vadd.s32 127, %v3489_v32  ;;  %v3737_v48 = vsel %vm3736_vm13, %v3735_v59, 0 }
 0x3df   : > { %v3302_v15 = vxor.u32 2147483648, %v4651_v26  ;;  %vm3300_vm15 = vcmp.lt.s32.totalorder %v7098_v50, 2  ;;  %v3576_v39 = vsel %vm3574_vm12, %v3575_v30, %v7148_v35  ;;  %v3739_v34 = vand.u32 31, %v3737_v48 }
 0x3e0   : > { %v3306_v9 = vsel %vm3304_vm11, %v3305_v21, %v4651_v26  ;;  %v3488_v42 = vor.u32 %v3487_v52, %v3486_v44  ;;  %v3491_v11 = vshll.u32 %v3490_v22, 23  ;;  %v7163_v61 = vand.u32 3, %v3506_v40 }
 0x3e1   : > { %v3303_v18 = vsel %vm3301_vm10, %v4649_v8, %v3302_v15  ;;  %v3577_v20 = vadd.s32 %v3576_v39, %v3572_v60  ;;  %v3740_v19 = vsub.s32 32, %v3739_v34  ;;  %v7167_v4 = vshll.u32 %v3733_v51, 8 }
 0x3e2   : > { %v3307_v27 = vsel %vm3300_vm15, %v3303_v18, %v3306_v9  ;;  %v3492_v13 = vor.u32 4788187, %v3491_v11  ;;  %v2126_v50 = vrot.slane %v7169_v6, %v6167_v41  ;;  %v3495_v46 = vcvt.s32.f32 %v3488_v42  ;;  %v7193_v42 = vld [vmem:[#allocation7 + $0x8] sm:$0xff] }
 0x3e3   : > { %v3308_v37 = vsel %vm3297_vm8, nan, %v3307_v27  ;;  %v3578_v38 = vadd.s32 536870912, %v3577_v20  ;;  %v3742_v31 = vshll.u32 %v4908_v63, %v3739_v34  ;;  %v3743_v1 = vshrl.u32 %v4909_v14, %v3740_v19 }
 0x3e4   : > { %v4024_v17 = vmul.f32 %v3974_v5, %v3308_v37  ;;  %v3493_v24 = vand.u32 2147483647, %v3492_v13  ;;  %v3746_v49 = vshrl.u32 %v4910_v23, %v3740_v19  ;;  %v3749_v28 = vshrl.u32 %v4911_v0, %v3740_v19 }
 0x3e5   : > { %v3579_v62 = vshrl.u32 %v3578_v38, 30  ;;  %v3748_v43 = vshll.u32 %v4910_v23, %v3739_v34  ;;  %v3752_v32 = vshrl.u32 %v4912_v12, %v3740_v19  ;;  %v3738_v7 = vshrl.u32 %v3737_v48, 5 }
 0x3e6   : > { %4040 = vst [vmem:[%s6281_s28 + $0x48] sm:$0xff] %v4024_v17  ;;  %v3496_v35 = vmul.f32 %v3495_v46, %v3493_v24  ;;  %v3745_v5 = vshll.u32 %v4909_v14, %v3739_v34  ;;  %v3751_v59 = vshll.u32 %v4911_v0, %v3739_v34  ;;  %v2164_v8 = vmul.f32 %v2126_v50, %v6702_v16 }
 0x3e7   : > { %v3580_v60 = vshll.u32 %v3579_v62, 30  ;;  %v3744_v51 = vor.u32 %v3743_v1, %v3742_v31  ;;  %v3750_v26 = vor.u32 %v3749_v28, %v3748_v43  ;;  %v3754_v52 = vshll.u32 %v4912_v12, %v3739_v34 }
 0x3e8   : > { %v3497_v40 = vxor.u32 2147483648, %v3496_v35  ;;  %v3747_v21 = vor.u32 %v3746_v49, %v3745_v5  ;;  %v3753_v44 = vor.u32 %v3752_v32, %v3751_v59  ;;  %v3755_v22 = vshrl.u32 %v4913_v25, %v3740_v19 }
 0x3e9   : > { %v7190_v30 = vsub.s32 %v3577_v20, %v3580_v60  ;;  %v3741_v9 = vshrl.u32 %v4908_v63, %v3740_v19  ;;  %v2228_v16 = vrot.slane %v7193_v42, %v6167_v41  ;;  %v3603_v48 = vsub.s32 4, %v3579_v62 }
 0x3ea   : > { %v3498_v15 = vsel %vm3415_vm2, %v3497_v40, %v3496_v35  ;;  %v3756_v18 = vor.u32 %v3755_v22, %v3754_v52  ;;  %vm3760_vm0 = vcmp.lt.s32.totalorder %v3738_v7, 4  ;;  %vm3757_vm14 = vcmp.lt.s32.totalorder %v3738_v7, 1 }
 0x3eb   : > { %v3501_v11 = vsel %vm7113_vm3, %v6924_v33, %v3498_v15  ;;  %v3583_v39 = vsub.s32 0, %v7190_v30  ;;  %v3762_v34 = vsel %vm3760_vm0, %v3750_v26, 2102212464  ;;  %vm3759_vm1 = vcmp.lt.s32.totalorder %v3738_v7, 3 }
 0x3ec   : > { %4652 = vcosq.f32 %v3501_v11  ;;  %v3765_v27 = vsel %vm3757_vm14, %v3744_v51, %v3747_v21  ;;  %v3766_v13 = vsel %vm3760_vm0, %v3753_v44, 920167782  ;;  %vm3758_vm2 = vcmp.lt.s32.totalorder %v3738_v7, 2 }
 0x3ed   : > { %4654 = vsinq.f32 %v3501_v11  ;;  %v4363_v20 = vmin.u32 %v3583_v39, %v7190_v30  ;;  %v3761_v37 = vsel %vm3757_vm14, %v3741_v9, %v3744_v51  ;;  %v3767_v36 = vsel %vm3759_vm1, %v3750_v26, %v3766_v13 }
 0x3ee   : > { %v3763_v19 = vsel %vm3759_vm1, %v3747_v21, %v3762_v34  ;;  %v3768_v50 = vsel %vm3758_vm2, %v3765_v27, %v3767_v36  ;;  %v3769_v17 = vsel %vm3757_vm14, %v3747_v21, %v3750_v26  ;;  %v3770_v24 = vsel %vm3760_vm0, %v3756_v18, 1326507024 }
 0x3ef   : > { %v3982_v46 = vrot.slane %v6900_v53, %v5914_v58  ;;  %vm7210_vm3 = vcmp.le.f32.partialorder %v3517_v2, 0.7853982  ;;  %vm3519_vm4 = vcmp.lt.s32.totalorder %v6993_v10, 0  ;;  %v3585_v31 = vclz %v4363_v20 }
 0x3f0   : > { %v3771_v1 = vsel %vm3759_vm1, %v3753_v44, %v3770_v24  ;;  %v7216_v49 = vmul.u32.u64.low %v7167_v4, %v3768_v50  ;;  %v7217_v28 = vmul.u32.u64.high %v7167_v4, %v3768_v50, %v7216_v49  ;;  %v7220_v35 = vadd.f32 %v2228_v16, %v2164_v8 }
 0x3f1   : > { %v4364_v43 = vadd.s32 4294967294, %v3585_v31  ;;  %v3604_v58 = vsel %vm3519_vm4, %v3603_v48, %v3579_v62  ;;  %v3764_v2 = vsel %vm3758_vm2, %v3761_v37, %v3763_v19  ;;  %v3772_v32 = vsel %vm3758_vm2, %v3769_v17, %v3771_v1 }
 0x3f2   : > { %vm3508_vm5 = vcmp.lt.s32.totalorder %v7163_v61, 2  ;;  %vm3509_vm6 = vcmp.eq.s32.totalorder %v7163_v61, 0  ;;  %v7229_v5 = vmul.u32.u64.low %v7167_v4, %v3772_v32  ;;  %v7230_v59 = vmul.u32.u64.high %v7167_v4, %v3772_v32, %v7229_v5 }
 0x3f3   : > { %vm3512_vm7 = vcmp.eq.s32.totalorder %v7163_v61, 2  ;;  %v3573_v8 = vadd.s32 %v7147_v29, %v7143_v54  ;;  %vm4365_vm8 = vcmp.lt.s32.totalorder %v4364_v43, 0  ;;  %v3624_v62 = vand.u32 2139095040, %v7220_v35 }
 0x3f4   : > { %v3588_v40 = vsel %vm4365_vm8, 0, %v4364_v43  ;;  %v3606_v7 = vsel %vm7210_vm3, 0, %v3604_v58  ;;  %v3780_v60 = vmul.u32 %v7167_v4, %v3764_v2  ;;  %v3783_v51 = vadd.s32 1, %v7217_v28 }
 0x3f5   : > { %v3589_v21 = vsub.s32 32, %v3588_v40  ;;  %v3593_v44 = vsub.s32 4294967266, %v3588_v40  ;;  %v3625_v52 = vshrl.u32 %v3624_v62, 23  ;;  %v2134_v22 = vrot.slane %v7169_v6, %v6479_v47 }
 0x3f6   : > { %v4653_v26 = vpop.eup %4652  ;;  %v3590_v29 = vshll.u32 %v7190_v30, %v3588_v40  ;;  %vm3782_vm9 = vc.u32 %v7230_v59, %v7216_v49  ;;  %v2236_v9 = vrot.slane %v7193_v42, %v6479_v47  ;;  %v3621_v6 = vand.u32 2147483647, %v7220_v35 }
 0x3f7   : > { %v4655_v15 = vpop.eup %4654  ;;  %v3513_v54 = vxor.u32 2147483648, %v4653_v26  ;;  %v3591_v16 = vshrl.u32 %v3573_v8, %v3589_v21  ;;  %v3594_v11 = vadd.s32 127, %v3593_v44  ;;  %v3784_v48 = vsel %vm3782_vm9, %v3783_v51, %v7217_v28 }
 0x3f8   : > { %v3510_v4 = vxor.u32 2147483648, %v4655_v15  ;;  %v3785_v39 = vadd.s32 %v3784_v48, %v3780_v60  ;;  %v4366_v34 = vadd.s32 4294967169, %v3625_v52  ;;  %v2166_v20 = vmul.f32 %v2134_v22, %v6806_v57 }
 0x3f9   : > { %v3514_v18 = vsel %vm3512_vm7, %v3513_v54, %v4655_v15  ;;  %v3592_v27 = vor.u32 %v3591_v16, %v3590_v29  ;;  %v3595_v13 = vshll.u32 %v3594_v11, 23  ;;  %vm3505_vm10 = vweird.f32 %v6924_v33 }
 0x3fa   : > { %v3511_v30 = vsel %vm3509_vm6, %v4653_v26, %v3510_v4  ;;  %v3786_v37 = vadd.s32 536870912, %v3785_v39  ;;  %v3631_v36 = vadd.s32 1, %v4366_v34  ;;  %v3610_v17 = vadd.s32 3, %v3606_v7 }
 0x3fb   : > { %v3515_v42 = vsel %vm3508_vm5, %v3511_v30, %v3514_v18  ;;  %v3596_v50 = vor.u32 4788187, %v3595_v13  ;;  %v3628_v1 = vand.u32 8388607, %v3621_v6  ;;  %v3599_v57 = vcvt.s32.f32 %v3592_v27 }
 0x3fc   : > { %v3516_v19 = vsel %vm3505_vm10, nan, %v3515_v42  ;;  %v7257_v31 = vshrl.u32 %v3786_v37, 30  ;;  %vm3632_vm11 = vcmp.gt.s32.totalorder %v3631_v36, 0  ;;  %v7261_v58 = vadd.f32 %v2236_v9, %v2166_v20 }
 0x3fd   : > { %v4026_v24 = vmul.f32 %v3982_v46, %v3516_v19  ;;  %v3597_v28 = vand.u32 2147483647, %v3596_v50  ;;  %v3633_v43 = vsel %vm3632_vm11, %v3631_v36, 0  ;;  %v7265_v32 = vand.u32 3, %v3610_v17 }
 0x3fe   : > { %v3788_v33 = vshll.u32 %v7257_v31, 30  ;;  %v3635_v61 = vand.u32 31, %v3633_v43  ;;  %v3986_v46 = vrot.slane %v6900_v53, %v6034_v56  ;;  %v3781_v40 = vadd.s32 %v7216_v49, %v7230_v59 }
 0x3ff   : > { %4042 = vst [vmem:[%s6281_s28 + $0x58] sm:$0xff] %v4026_v24  ;;  %v3600_v2 = vmul.f32 %v3599_v57, %v3597_v28  ;;  %v3629_v7 = vor.u32 8388608, %v3628_v1  ;;  %v3832_v60 = vand.u32 2139095040, %v7261_v58  ;;  %v3634_v26 = vshrl.u32 %v3633_v43, 5 }
 0x400   : > { %v7269_v5 = vsub.s32 %v3785_v39, %v3788_v33  ;;  %v3636_v8 = vsub.s32 32, %v3635_v61  ;;  %v3638_v21 = vshll.u32 %v4908_v63, %v3635_v61  ;;  %v3641_v22 = vshll.u32 %v4909_v14, %v3635_v61 }
 0x401   : > { %v3601_v62 = vxor.u32 2147483648, %v3600_v2  ;;  %v3644_v29 = vshll.u32 %v4910_v23, %v3635_v61  ;;  %v3647_v9 = vshll.u32 %v4911_v0, %v3635_v61  ;;  %v7289_v39 = vshll.u32 %v3629_v7, 8 }
 0x402   : > { %v3791_v51 = vsub.s32 0, %v7269_v5  ;;  %v3639_v44 = vshrl.u32 %v4909_v14, %v3636_v8  ;;  %v3642_v15 = vshrl.u32 %v4910_v23, %v3636_v8  ;;  %v3645_v54 = vshrl.u32 %v4911_v0, %v3636_v8 }
 0x403   : > { %v3602_v52 = vsel %vm3519_vm4, %v3601_v62, %v3600_v2  ;;  %v3648_v11 = vshrl.u32 %v4912_v12, %v3636_v8  ;;  %v3637_v34 = vshrl.u32 %v4908_v63, %v3636_v8  ;;  %v3650_v30 = vshll.u32 %v4912_v12, %v3635_v61 }
 0x404   : > { %v3605_v49 = vsel %vm7210_vm3, %v6993_v10, %v3602_v52  ;;  %v4371_v59 = vmin.u32 %v3791_v51, %v7269_v5  ;;  %v3640_v4 = vor.u32 %v3639_v44, %v3638_v21  ;;  %v3643_v16 = vor.u32 %v3642_v15, %v3641_v22 }
 0x405   : > { %4656 = vcosq.f32 %v3605_v49  ;;  %v3646_v18 = vor.u32 %v3645_v54, %v3644_v29  ;;  %v3649_v38 = vor.u32 %v3648_v11, %v3647_v9  ;;  %v3651_v27 = vshrl.u32 %v4913_v25, %v3636_v8 }
 0x406   : > { %4658 = vsinq.f32 %v3605_v49  ;;  %v3793_v48 = vclz %v4371_v59  ;;  %vm3653_vm12 = vcmp.lt.s32.totalorder %v3634_v26, 1  ;;  %vm3655_vm13 = vcmp.lt.s32.totalorder %v3634_v26, 3 }
 0x407   : > { %v3833_v20 = vshrl.u32 %v3832_v60, 23  ;;  %v3652_v42 = vor.u32 %v3651_v27, %v3650_v30  ;;  %vm3656_vm15 = vcmp.lt.s32.totalorder %v3634_v26, 4  ;;  %v3657_v37 = vsel %vm3653_vm12, %v3637_v34, %v3640_v4 }
 0x408   : > { %v4372_v13 = vadd.s32 4294967294, %v3793_v48  ;;  %v3661_v36 = vsel %vm3653_vm12, %v3640_v4, %v3643_v16  ;;  %v3658_v19 = vsel %vm3656_vm15, %v3646_v18, 2102212464  ;;  %v3662_v50 = vsel %vm3656_vm15, %v3649_v38, 920167782 }
 0x409   : > { %v3665_v17 = vsel %vm3653_vm12, %v3643_v16, %v3646_v18  ;;  %vm3612_vm14 = vcmp.lt.s32.totalorder %v7265_v32, 2  ;;  %v3659_v1 = vsel %vm3655_vm13, %v3643_v16, %v3658_v19  ;;  %v3663_v28 = vsel %vm3655_vm13, %v3646_v18, %v3662_v50 }
 0x40a   : > { %vm4373_vm0 = vcmp.lt.s32.totalorder %v4372_v13, 0  ;;  %v3666_v57 = vsel %vm3656_vm15, %v3652_v42, 1326507024  ;;  %vm3609_vm1 = vweird.f32 %v6993_v10  ;;  %vm3654_vm2 = vcmp.lt.s32.totalorder %v3634_v26, 2 }
 0x40b   : > { %v3796_v24 = vsel %vm4373_vm0, 0, %v4372_v13  ;;  %v3829_v61 = vand.u32 2147483647, %v7261_v58  ;;  %vm3727_vm3 = vcmp.lt.s32.totalorder %v7094_v3, 0  ;;  %v3664_v8 = vsel %vm3654_vm2, %v3661_v36, %v3663_v28 }
 0x40c   : > { %v3797_v43 = vsub.s32 32, %v3796_v24  ;;  %v3801_v33 = vsub.s32 4294967266, %v3796_v24  ;;  %v3798_v2 = vshll.u32 %v7269_v5, %v3796_v24  ;;  %v3667_v62 = vsel %vm3655_vm13, %v3649_v38, %v3666_v57 }
 0x40d   : > { %v4374_v7 = vadd.s32 4294967169, %v3833_v20  ;;  %v3660_v21 = vsel %vm3654_vm2, %v3657_v37, %v3659_v1  ;;  %v3668_v44 = vsel %vm3654_vm2, %v3665_v17, %v3667_v62  ;;  %vm3613_vm4 = vcmp.eq.s32.totalorder %v7265_v32, 0 }
 0x40e   : > { %v3799_v60 = vshrl.u32 %v3781_v40, %v3797_v43  ;;  %v3802_v51 = vadd.s32 127, %v3801_v33  ;;  %v7303_v22 = vmul.u32.u64.low %v7289_v39, %v3668_v44  ;;  %v7304_v15 = vmul.u32.u64.high %v7289_v39, %v3668_v44, %v7303_v22 }
 0x40f   : > { %v4657_v52 = vpop.eup %4656  ;;  %v7307_v54 = vmul.u32.u64.low %v7289_v39, %v3664_v8  ;;  %v7308_v49 = vmul.u32.u64.high %v7289_v39, %v3664_v8, %v7307_v54  ;;  %v3839_v9 = vadd.s32 1, %v4374_v7  ;;  %vm3616_vm5 = vcmp.eq.s32.totalorder %v7265_v32, 2 }
 0x410   : > { %v4659_v59 = vpop.eup %4658  ;;  %v3617_v5 = vxor.u32 2147483648, %v4657_v52  ;;  %v3800_v29 = vor.u32 %v3799_v60, %v3798_v2  ;;  %v3803_v26 = vshll.u32 %v3802_v51, 23  ;;  %v3811_v4 = vsub.s32 4, %v7257_v31 }
 0x411   : > { %v3614_v40 = vxor.u32 2147483648, %v4659_v59  ;;  %v3836_v48 = vand.u32 8388607, %v3829_v61  ;;  %vm3840_vm6 = vcmp.gt.s32.totalorder %v3839_v9, 0  ;;  %v3676_v34 = vmul.u32 %v7289_v39, %v3660_v21 }
 0x412   : > { %v3618_v16 = vsel %vm3616_vm5, %v3617_v5, %v4659_v59  ;;  %v3804_v11 = vor.u32 4788187, %v3803_v26  ;;  %vm3678_vm7 = vc.u32 %v7304_v15, %v7307_v54  ;;  %v3679_v38 = vadd.s32 1, %v7308_v49 }
 0x413   : > { %v3615_v18 = vsel %vm3613_vm4, %v4657_v52, %v3614_v40  ;;  %v3807_v13 = vcvt.s32.f32 %v3800_v29  ;;  %v3841_v20 = vsel %vm3840_vm6, %v3839_v9, 0  ;;  %vm7326_vm8 = vcmp.le.f32.partialorder %v3725_v55, 0.7853982 }
 0x414   : > { %v3619_v30 = vsel %vm3612_vm14, %v3615_v18, %v3618_v16  ;;  %v3805_v27 = vand.u32 2147483647, %v3804_v11  ;;  %v3680_v39 = vsel %vm3678_vm7, %v3679_v38, %v7308_v49  ;;  %v3843_v36 = vand.u32 31, %v3841_v20 }
 0x415   : > { %v3620_v42 = vsel %vm3609_vm1, nan, %v3619_v30  ;;  %v3812_v50 = vsel %vm3727_vm3, %v3811_v4, %v7257_v31  ;;  %v3681_v10 = vadd.s32 %v3680_v39, %v3676_v34  ;;  %v3837_v17 = vor.u32 8388608, %v3836_v48 }
 0x416   : > { %v4027_v32 = vmul.f32 %v3986_v46, %v3620_v42  ;;  %v3808_v19 = vmul.f32 %v3807_v13, %v3805_v27  ;;  %v3842_v24 = vshrl.u32 %v3841_v20, 5  ;;  %v3844_v1 = vsub.s32 32, %v3843_v36 }
 0x417   : > { %v3846_v55 = vshll.u32 %v4908_v63, %v3843_v36  ;;  %v3682_v57 = vadd.s32 536870912, %v3681_v10  ;;  %v3849_v43 = vshll.u32 %v4909_v14, %v3843_v36  ;;  %v3852_v33 = vshll.u32 %v4910_v23, %v3843_v36 }
 0x418   : > { %4043 = vst [vmem:[%s6281_s28 + $0x60] sm:$0xff] %v4027_v32  ;;  %v3809_v28 = vxor.u32 2147483648, %v3808_v19  ;;  %v3847_v56 = vshrl.u32 %v4909_v14, %v3844_v1  ;;  %v3850_v53 = vshrl.u32 %v4910_v23, %v3844_v1  ;;  %v3853_v46 = vshrl.u32 %v4911_v0, %v3844_v1  ;;  %v7371_v32 = vld [vmem:[#allocation8 + $0x8] sm:$0xff] }
 0x419   : > { %v3855_v31 = vshll.u32 %v4911_v0, %v3843_v36  ;;  %v7347_v8 = vshrl.u32 %v3682_v57, 30  ;;  %v3856_v62 = vshrl.u32 %v4912_v12, %v3844_v1  ;;  %v3859_v7 = vshrl.u32 %v4913_v25, %v3844_v1 }
 0x41a   : > { %v3810_v2 = vsel %vm3727_vm3, %v3809_v28, %v3808_v19  ;;  %v3848_v14 = vor.u32 %v3847_v56, %v3846_v55  ;;  %v3851_v51 = vor.u32 %v3850_v53, %v3849_v43  ;;  %v3858_v23 = vshll.u32 %v4912_v12, %v3843_v36 }
 0x41b   : > { %v3813_v60 = vsel %vm7326_vm8, %v7094_v3, %v3810_v2  ;;  %v3814_v0 = vsel %vm7326_vm8, 0, %v3812_v50  ;;  %v3684_v21 = vshll.u32 %v7347_v8, 30  ;;  %v3857_v44 = vor.u32 %v3856_v62, %v3855_v31 }
 0x41c   : > { %4660 = vcosq.f32 %v3813_v60  ;;  %v3854_v52 = vor.u32 %v3853_v46, %v3852_v33  ;;  %v3860_v22 = vor.u32 %v3859_v7, %v3858_v23  ;;  %vm3861_vm9 = vcmp.lt.s32.totalorder %v3842_v24, 1 }
 0x41d   : > { %4662 = vsinq.f32 %v3813_v60  ;;  %v3685_v49 = vsub.s32 %v3681_v10, %v3684_v21  ;;  %v3818_v25 = vadd.s32 3, %v3814_v0  ;;  %vm3864_vm10 = vcmp.lt.s32.totalorder %v3842_v24, 4 }
 0x41e   : > { %v3869_v59 = vsel %vm3861_vm9, %v3848_v14, %v3851_v51  ;;  %v3877_v5 = vshll.u32 %v3837_v17, 8  ;;  %vm3862_vm11 = vcmp.lt.s32.totalorder %v3842_v24, 2  ;;  %vm3863_vm12 = vcmp.lt.s32.totalorder %v3842_v24, 3 }
 0x41f   : > { %v3687_v29 = vsub.s32 0, %v3685_v49  ;;  %v3870_v12 = vsel %vm3864_vm10, %v3857_v44, 920167782  ;;  %v3866_v26 = vsel %vm3864_vm10, %v3854_v52, 2102212464  ;;  %v3873_v40 = vsel %vm3861_vm9, %v3851_v51, %v3854_v52 }
 0x420   : > { %v3871_v9 = vsel %vm3863_vm12, %v3854_v52, %v3870_v12  ;;  %v3874_v4 = vsel %vm3864_vm10, %v3860_v22, 1326507024  ;;  %v3845_v11 = vshrl.u32 %v4908_v63, %v3844_v1  ;;  %v3819_v34 = vand.u32 3, %v3818_v25 }
 0x421   : > { %v4367_v16 = vmin.u32 %v3687_v29, %v3685_v49  ;;  %v3872_v48 = vsel %vm3862_vm11, %v3869_v59, %v3871_v9  ;;  %v3875_v18 = vsel %vm3863_vm12, %v3857_v44, %v3874_v4  ;;  %v3867_v42 = vsel %vm3863_vm12, %v3851_v51, %v3866_v26 }
 0x422   : > { %v3876_v38 = vsel %vm3862_vm11, %v3873_v40, %v3875_v18  ;;  %v7363_v30 = vmul.u32.u64.low %v3877_v5, %v3872_v48  ;;  %v7364_v27 = vmul.u32.u64.high %v3877_v5, %v3872_v48, %v7363_v30  ;;  %v3865_v20 = vsel %vm3861_vm9, %v3845_v11, %v3848_v14 }
 0x423   : > { %v3689_v13 = vclz %v4367_v16  ;;  %v7368_v37 = vmul.u32.u64.low %v3877_v5, %v3876_v38  ;;  %v7369_v39 = vmul.u32.u64.high %v3877_v5, %v3876_v38, %v7368_v37  ;;  %v3994_v63 = vrot.slane %v7371_v32, %v6037_v45 }
 0x424   : > { %vm3820_vm13 = vcmp.lt.s32.totalorder %v3819_v34, 2  ;;  %v3868_v17 = vsel %vm3862_vm11, %v3865_v20, %v3867_v42  ;;  %v3887_v1 = vadd.s32 1, %v7364_v27  ;;  %vm3821_vm15 = vcmp.eq.s32.totalorder %v3819_v34, 0 }
 0x425   : > { %v4368_v19 = vadd.s32 4294967294, %v3689_v13  ;;  %vm3824_vm0 = vcmp.eq.s32.totalorder %v3819_v34, 2  ;;  %v3677_v57 = vadd.s32 %v7307_v54, %v7304_v15  ;;  %vm3886_vm1 = vc.u32 %v7369_v39, %v7363_v30 }
 0x426   : > { %v4661_v36 = vpop.eup %4660  ;;  %v3884_v24 = vmul.u32 %v3877_v5, %v3868_v17  ;;  %vm3817_vm2 = vweird.f32 %v7094_v3  ;;  %v3888_v31 = vsel %vm3886_vm1, %v3887_v1, %v7364_v27  ;;  %v3707_v22 = vsub.s32 4, %v7347_v8 }
 0x427   : > { %v4663_v50 = vpop.eup %4662  ;;  %v3825_v10 = vxor.u32 2147483648, %v4661_v36  ;;  %vm4369_vm14 = vcmp.lt.s32.totalorder %v4368_v19, 0  ;;  %vm3623_vm3 = vcmp.lt.s32.totalorder %v7220_v35, 0  ;;  %vm3622_vm4 = vcmp.le.f32.partialorder %v3621_v6, 0.7853982 }
 0x428   : > { %v3822_v55 = vxor.u32 2147483648, %v4663_v50  ;;  %v3692_v43 = vsel %vm4369_vm14, 0, %v4368_v19  ;;  %v3889_v15 = vadd.s32 %v3888_v31, %v3884_v24  ;;  %v3708_v29 = vsel %vm3623_vm3, %v3707_v22, %v7347_v8 }
 0x429   : > { %v3826_v28 = vsel %vm3824_vm0, %v3825_v10, %v4663_v50  ;;  %v3693_v33 = vsub.s32 32, %v3692_v43  ;;  %v3697_v56 = vsub.s32 4294967266, %v3692_v43  ;;  %v3694_v46 = vshll.u32 %v3685_v49, %v3692_v43 }
 0x42a   : > { %v3823_v45 = vsel %vm3821_vm15, %v4661_v36, %v3822_v55  ;;  %v3890_v51 = vadd.s32 536870912, %v3889_v15  ;;  %v3710_v40 = vsel %vm3622_vm4, 0, %v3708_v29  ;;  %v3885_v48 = vadd.s32 %v7363_v30, %v7369_v39 }
 0x42b   : > { %v3827_v53 = vsel %vm3820_vm13, %v3823_v45, %v3826_v28  ;;  %v3695_v62 = vshrl.u32 %v3677_v57, %v3693_v33  ;;  %v3698_v7 = vadd.s32 127, %v3697_v56  ;;  %v3714_v16 = vadd.s32 3, %v3710_v40 }
 0x42c   : > { %v3828_v2 = vsel %vm3817_vm2, nan, %v3827_v53  ;;  %v3891_v0 = vshrl.u32 %v3890_v51, 30  ;;  %v3990_v30 = vrot.slane %v7371_v32, %v6167_v41  ;;  %vm3713_vm9 = vweird.f32 %v7220_v35 }
 0x42d   : > { %v4029_v54 = vmul.f32 %v3994_v63, %v3828_v2  ;;  %v3696_v60 = vor.u32 %v3695_v62, %v3694_v46  ;;  %v3699_v14 = vshll.u32 %v3698_v7, 23  ;;  %v3715_v6 = vand.u32 3, %v3714_v16 }
 0x42e   : > { %v3892_v52 = vshll.u32 %v3891_v0, 30  ;;  %v3915_v57 = vsub.s32 4, %v3891_v0  ;;  %vm3831_vm10 = vcmp.lt.s32.totalorder %v7261_v58, 0  ;;  %vm3830_vm11 = vcmp.le.f32.partialorder %v3829_v61, 0.7853982 }
 0x42f   : > { %4045 = vst [vmem:[%s6281_s28 + $0x70] sm:$0xff] %v4029_v54  ;;  %v3700_v23 = vor.u32 4788187, %v3699_v14  ;;  %v3703_v44 = vcvt.s32.f32 %v3696_v60  ;;  %vm3720_vm6 = vcmp.eq.s32.totalorder %v3715_v6, 2  ;;  %vm3717_vm7 = vcmp.eq.s32.totalorder %v3715_v6, 0 }
 0x430   : > { %v3893_v49 = vsub.s32 %v3889_v15, %v3892_v52  ;;  %vm3716_vm8 = vcmp.lt.s32.totalorder %v3715_v6, 2  ;;  %v3916_v41 = vsel %vm3831_vm10, %v3915_v57, %v3891_v0  ;;  %v3998_v7 = vrot.slane %v7371_v32, %v6479_v47 }
 0x431   : > { %v3701_v21 = vand.u32 2147483647, %v3700_v23  ;;  %vm3921_vm0 = vweird.f32 %v7261_v58 }
 0x432   : > { %v3895_v59 = vsub.s32 0, %v3893_v49 }
 0x433   : > { %v3704_v3 = vmul.f32 %v3703_v44, %v3701_v21 }
 0x434   : > { %v4375_v12 = vmin.u32 %v3895_v59, %v3893_v49 }
 0x435   : > { %v3705_v25 = vxor.u32 2147483648, %v3704_v3 }
 0x436   : > { %v3897_v9 = vclz %v4375_v12 }
 0x437   : > { %v3706_v5 = vsel %vm3623_vm3, %v3705_v25, %v3704_v3 }
 0x438   : > { %v3709_v26 = vsel %vm3622_vm4, %v7220_v35, %v3706_v5  ;;  %v4376_v4 = vadd.s32 4294967294, %v3897_v9  ;;  %v3918_v35 = vsel %vm3830_vm11, 0, %v3916_v41 }
 0x439   : > { %4664 = vcosq.f32 %v3709_v26  ;;  %v3922_v24 = vadd.s32 3, %v3918_v35 }
 0x43a   : > { %4666 = vsinq.f32 %v3709_v26  ;;  %vm4377_vm5 = vcmp.lt.s32.totalorder %v4376_v4, 0 }
 0x43b   : > { %v3900_v11 = vsel %vm4377_vm5, 0, %v4376_v4  ;;  %v3923_v53 = vand.u32 3, %v3922_v24 }
 0x43c   : > { %v3901_v18 = vsub.s32 32, %v3900_v11  ;;  %v3905_v34 = vsub.s32 4294967266, %v3900_v11  ;;  %v3902_v38 = vshll.u32 %v3893_v49, %v3900_v11 }
 0x43d   : > { %vm3928_vm12 = vcmp.eq.s32.totalorder %v3923_v53, 2  ;;  %vm3925_vm13 = vcmp.eq.s32.totalorder %v3923_v53, 0  ;;  %vm3924_vm15 = vcmp.lt.s32.totalorder %v3923_v53, 2 }
 0x43e   : > { %v3903_v27 = vshrl.u32 %v3885_v48, %v3901_v18  ;;  %v3906_v8 = vadd.s32 127, %v3905_v34 }
 0x440   : > { %v3904_v20 = vor.u32 %v3903_v27, %v3902_v38  ;;  %v3907_v42 = vshll.u32 %v3906_v8, 23 }
 0x442   : > { %v3908_v19 = vor.u32 4788187, %v3907_v42  ;;  %v3911_v17 = vcvt.s32.f32 %v3904_v20 }
 0x443   : > { %v4665_v13 = vpop.eup %4664 }
 0x444   : > { %v4667_v37 = vpop.eup %4666  ;;  %v3721_v36 = vxor.u32 2147483648, %v4665_v13  ;;  %v3909_v10 = vand.u32 2147483647, %v3908_v19 }
 0x445   : > { %v3718_v63 = vxor.u32 2147483648, %v4667_v37 }
 0x446   : > { %v3722_v50 = vsel %vm3720_vm6, %v3721_v36, %v4667_v37  ;;  %v3912_v28 = vmul.f32 %v3911_v17, %v3909_v10 }
 0x447   : > { %v3719_v39 = vsel %vm3717_vm7, %v4665_v13, %v3718_v63 }
 0x448   : > { %v3723_v1 = vsel %vm3716_vm8, %v3719_v39, %v3722_v50  ;;  %v3913_v45 = vxor.u32 2147483648, %v3912_v28 }
 0x449   : > { %v3724_v55 = vsel %vm3713_vm9, nan, %v3723_v1 }
 0x44a   : > { %v4028_v43 = vmul.f32 %v3990_v30, %v3724_v55  ;;  %v3914_v33 = vsel %vm3831_vm10, %v3913_v45, %v3912_v28 }
 0x44b   : > { %v3917_v56 = vsel %vm3830_vm11, %v7261_v58, %v3914_v33 }
 0x44c   : > { %4044 = vst [vmem:[%s6281_s28 + $0x68] sm:$0xff] %v4028_v43  ;;  %4668 = vcosq.f32 %v3917_v56 }
 0x44d   : > { %4670 = vsinq.f32 %v3917_v56 }
 0x456   : > { %v4669_v46 = vpop.eup %4668 }
 0x457   : > { %v4671_v31 = vpop.eup %4670  ;;  %v3929_v2 = vxor.u32 2147483648, %v4669_v46 }
 0x458   : > { %v3926_v62 = vxor.u32 2147483648, %v4671_v31 }
 0x459   : > { %v3930_v61 = vsel %vm3928_vm12, %v3929_v2, %v4671_v31 }
 0x45a   : > { %v3927_v15 = vsel %vm3925_vm13, %v4669_v46, %v3926_v62 }
 0x45b   : > { %v3931_v54 = vsel %vm3924_vm15, %v3927_v15, %v3930_v61 }
 0x45c   : > { %v3932_v60 = vsel %vm3921_vm0, nan, %v3931_v54 }
 0x45d   : > { %v4030_v14 = vmul.f32 %v3998_v7, %v3932_v60 }
 0x45f   : > { %4046 = vst [vmem:[%s6281_s28 + $0x78] sm:$0xff] %v4030_v14 }
 0x460   : > { %4833 = shalt.err (!%p4830_p8)
}
 0x461   : > { %s4834_s25 = scalar_lea.hbm %s7409_s23, 2048  ;;  %s4838_s30 = scalar_lea.hbm %s7458_s5, 8192 }
 0x462   : > { %p4835_p2 = scmp.ne.s32.totalorder %s7409_s23, %s4834_s25  ;;  %p4839_p3 = scmp.lt.u32.totalorder %s7409_s23, %s7458_s5 }
 0x463   : > { %p4840_p10 = scmp.lt.u32.totalorder %s4838_s30, %s4834_s25  ;;  %p4842_p7 = scmp.lt.u32.totalorder %s4834_s25, %s7409_s23 }
 0x464   : > { %p4836_p5 = pnand %p4835_p2, %p7886_p1 }
 0x465   : > { %p4841_p11 = por %p4840_p10, %p4839_p3 }
 0x466   : > { %p4837_p9 = pneg %p4836_p5 }
 0x467   : > { %p4843_p12 = por %p4842_p7, %p4841_p11 }
 0x469   : > { %p4844_p4 = pnand %p4843_p12, %p4837_p9 }
 0x46b   : > { %4847 = shalt.err (!%p4844_p4)
}
 0x46c   : > { %4530 = dma.vmem_to_hbm [thread:$0]  (%p7886_p1), %s7411_s8, 2048, %s7409_s23, %s4048_s10  }
 0x46d PF: > { %p4562_p13 = scmp.ge.s32.totalorder %s4898_s21, 2  ;;  %s4074_s28 = sand.u32 1, %s4886_s18  }
 0x46e   : > { %p7887_p0 = scmp.ne.s32.totalorder %s7624_s12, 0  ;;  %s4075_s6 = scalar_lea.sflag [#allocation4], %s4074_s28 }
 0x470   : > { %p4550_p6 = pnand %p4562_p13, %p7887_p0 }
 0x472   : > { %4881 = dma.done.wait (!%p4550_p6), %s4075_s6, 2048  }
 0x473   : > { %4883 = vsyncadd (!%p4550_p6), %s4075_s6, 4294965248  ;;  %p18_p8 = scmp.ge.s32.totalorder %s5088_s13, 6   ;;  %s7888_s18 = smov %s4890_s19 }
 0x474   : > { %s7889_s19 = smov %s4894_s20  ;;  %s7890_s20 = smov %s5105_s27 }
 0x475   : > { %s7891_s21 = smov %s5088_s13  ;;  %20 = sbr.rel (!%p18_p8) target bundleno = 6 (0x6), region = 100 }
 0x47c   :  { %4080 = vsyncpa [#allocation3], 1 }
 0x47d   :  { %4082 = vsyncpa [#allocation3 + $0x1], 1 }
 0x47e   :  { %4083 = vsyncpa [#allocation6], 1 }
 0x47f   :  { %4084 = vsyncpa [#allocation9], 1 }
 0x480   :  { %4085 = vsyncpa [#allocation4], 1 }
 0x481   :  { %4087 = vsyncpa [#allocation4 + $0x1], 1 }

</bundles_post_ra>
